<compile_context>
chip_gen: v7x
topology: tpu7x:2x2x1
jax: 0.10.0
libtpu: 0.0.40
codegen_flags: <defaults>
</compile_context>

<pallas_src>
import numpy as np
import jax
import jax.numpy as jnp
from jax import lax
from jax.experimental import pallas as pl
from jax.experimental.pallas import tpu as pltpu

NEG_SLOPE = 0.2          # LeakyReLU(negative_slope=0.2)
LN_EPS = 1e-5            # torch.nn.LayerNorm default eps


def _round_up(v, m):
    return ((v + m - 1) // m) * m


# ----------------------------------------------------------------------------
# Kernel 1: fully fused MLP:  (x @ W1 + b1) -> LayerNorm -> LeakyReLU -> @ W2 + b2
# bf16 matmul operands, f32 accumulation; h lives only in VMEM/vregs.
# ----------------------------------------------------------------------------
def _fused_mlp_kernel(x_ref, w1_ref, b1_ref, g1_ref, beta1_ref,
                      w2_ref, b2_ref, o_ref):
    y = jnp.dot(x_ref[...], w1_ref[...], preferred_element_type=jnp.float32)
    y = y + b1_ref[...]                                   # (1, HID) broadcast
    # Row-wise LayerNorm over the feature dim (f32).
    mean = jnp.mean(y, axis=-1, keepdims=True)
    c = y - mean
    var = jnp.mean(c * c, axis=-1, keepdims=True)
    yn = c * lax.rsqrt(var + LN_EPS)
    yn = yn * g1_ref[...] + beta1_ref[...]
    # LeakyReLU(0.2); Dropout == identity at inference.
    h = jnp.where(yn >= 0, yn, NEG_SLOPE * yn)
    out = jnp.dot(h.astype(w2_ref.dtype), w2_ref[...],
                  preferred_element_type=jnp.float32)
    o_ref[...] = out + b2_ref[...]


def fused_mlp_pallas(x, w1, b1, g1, beta1, w2, b2, *, row_tile=256):
    n, in_f = x.shape
    hid = w1.shape[1]
    out_f = w2.shape[1]

    # bf16 operands for the MXU (halves the dominant W1 HBM stream).
    xc = x.astype(jnp.bfloat16)
    w1c = w1.astype(jnp.bfloat16)
    w2c = w2.astype(jnp.bfloat16)

    # Row tile: up to `row_tile` rows per grid step; small inputs use one
    # block rounded up to the sublane granule (8).
    tm = row_tile if n >= row_tile else max(8, _round_up(n, 8))
    n_pad = _round_up(n, tm)
    if n_pad != n:
        xc = jnp.pad(xc, ((0, n_pad - n), (0, 0)))

    b1_2 = b1.reshape(1, hid).astype(jnp.float32)
    g1_2 = g1.reshape(1, hid).astype(jnp.float32)
    beta1_2 = beta1.reshape(1, hid).astype(jnp.float32)
    b2_2 = b2.reshape(1, out_f).astype(jnp.float32)

    out = pl.pallas_call(
        _fused_mlp_kernel,
        out_shape=jax.ShapeDtypeStruct((n_pad, out_f), jnp.float32),
        grid=(n_pad // tm,),
        in_specs=[
            pl.BlockSpec((tm, in_f), lambda i: (i, 0)),      # x row tile
            pl.BlockSpec((in_f, hid), lambda i: (0, 0)),     # W1 (resident)
            pl.BlockSpec((1, hid), lambda i: (0, 0)),        # b1
            pl.BlockSpec((1, hid), lambda i: (0, 0)),        # gamma
            pl.BlockSpec((1, hid), lambda i: (0, 0)),        # beta
            pl.BlockSpec((hid, out_f), lambda i: (0, 0)),    # W_last
            pl.BlockSpec((1, out_f), lambda i: (0, 0)),      # b_last
        ],
        out_specs=pl.BlockSpec((tm, out_f), lambda i: (i, 0)),
        compiler_params=pltpu.CompilerParams(
            dimension_semantics=("parallel",),               # megacore on v7x
            vmem_limit_bytes=32 * 1024 * 1024),              # <= 64 MiB (v7x)
    )(xc, w1c, b1_2, g1_2, beta1_2, w2c, b2_2)
    return out[:n]


# ----------------------------------------------------------------------------
# Kernel 2: edge embeddings — single "two-hot" (E, 2V) matrix multiplied by a
# host-built block-diagonal table (2V, 2D); output comes out lane-dense with
# the dist/ang embeddings already concatenated (no in-kernel concat).
# ----------------------------------------------------------------------------
def _edge_embed_kernel(d_ref, a_ref, tab_ref, o_ref):
    e = d_ref.shape[0]
    two_v = tab_ref.shape[0]
    iota = lax.broadcasted_iota(jnp.int32, (e, two_v), 1)
    two_hot = jnp.logical_or(d_ref[...] == iota,
                             a_ref[...] == iota).astype(jnp.float32)
    o_ref[...] = jnp.dot(two_hot, tab_ref[...],
                         preferred_element_type=jnp.float32)


def edge_embed_pallas(dist_idx, ang_idx, dist_table, ang_table):
    e = dist_idx.shape[0]
    vocab, emb = dist_table.shape
    two_v = 2 * vocab
    # Block-diagonal table [[dist, 0], [0, ang]] -> one MXU op = concat lookup.
    tab = jnp.zeros((two_v, 2 * emb), jnp.float32)
    tab = tab.at[:vocab, :emb].set(dist_table.astype(jnp.float32))
    tab = tab.at[vocab:, emb:].set(ang_table.astype(jnp.float32))

    # Clamp OOB indices (jnp-gather behaviour; torch nn.Embedding would raise).
    d = jnp.clip(dist_idx.astype(jnp.int32), 0, vocab - 1)
    a = jnp.clip(ang_idx.astype(jnp.int32), 0, vocab - 1) + vocab

    e_pad = max(8, _round_up(e, 8))
    if e_pad != e:
        d = jnp.pad(d, (0, e_pad - e), constant_values=-1)   # no match -> zeros
        a = jnp.pad(a, (0, e_pad - e), constant_values=-1)
    d2 = d.reshape(e_pad, 1)
    a2 = a.reshape(e_pad, 1)

    out = pl.pallas_call(
        _edge_embed_kernel,
        out_shape=jax.ShapeDtypeStruct((e_pad, 2 * emb), jnp.float32),
        grid=(1,),
        in_specs=[
            pl.BlockSpec((e_pad, 1), lambda i: (0, 0)),
            pl.BlockSpec((e_pad, 1), lambda i: (0, 0)),
            pl.BlockSpec((two_v, 2 * emb), lambda i: (0, 0)),
        ],
        out_specs=pl.BlockSpec((e_pad, 2 * emb), lambda i: (0, 0)),
    )(d2, a2, tab)
    return out[:e]


# ----------------------------------------------------------------------------
# Full preprocess forward (glue in plain JAX / numpy, hot paths in Pallas)
# ----------------------------------------------------------------------------
def preprocess_forward(params, x, dist_idx, ang_idx):
    out = fused_mlp_pallas(x, params["w1"], params["b1"],
                           params["g1"], params["beta1"],
                           params["w_last"], params["b_last"])
    edge = edge_embed_pallas(dist_idx, ang_idx,
                             params["dist_table"], params["ang_table"])
    return out, edge


def preprocess_reference(params, x, dist_idx, ang_idx):
    hp = jax.lax.Precision.HIGHEST
    y = jnp.dot(x, params["w1"], precision=hp) + params["b1"]
    mean = jnp.mean(y, axis=-1, keepdims=True)
    var = jnp.mean((y - mean) ** 2, axis=-1, keepdims=True)
    yn = (y - mean) / jnp.sqrt(var + LN_EPS) * params["g1"] + params["beta1"]
    h = jnp.where(yn >= 0, yn, NEG_SLOPE * yn)
    out = jnp.dot(h, params["w_last"], precision=hp) + params["b_last"]
    edge = jnp.concatenate(
        [params["dist_table"][dist_idx], params["ang_table"][ang_idx]], axis=1)
    return out, edge


if __name__ == "__main__":
    # argument = {'MLP_layernum': 2, 'attention_head_num': 4, 'initial_dim': 8,
    #             'dropout_rate': 0.1, 'norm_type': 'layer',
    #             'with_distance': 'Y', 'simple_distance': 'N'}
    N_NODES = 16
    IN_F = 1792                      # prelayernum[0] is hard-coded in the module
    HID_F = 800                      # prelayerpreset[0]
    OUT_F = 4 * 8                    # attention_head_num * initial_dim
    EMB_VOCAB, EMB_DIM = 11, 100

    key = jax.random.PRNGKey(0)
    ks = jax.random.split(key, 8)

    params = {
        "w1": (jax.random.normal(ks[0], (IN_F, HID_F), jnp.float32) * 0.02),
        "b1": (jax.random.normal(ks[1], (HID_F,), jnp.float32) * 0.02),
        "g1": jnp.ones((HID_F,), jnp.float32),       # LayerNorm default init
        "beta1": jnp.zeros((HID_F,), jnp.float32),
        "w_last": (jax.random.normal(ks[2], (HID_F, OUT_F), jnp.float32) * 0.02),
        "b_last": (jax.random.normal(ks[3], (OUT_F,), jnp.float32) * 0.02),
        "dist_table": jax.random.normal(ks[4], (EMB_VOCAB, EMB_DIM), jnp.float32),
        "ang_table": jax.random.normal(ks[5], (EMB_VOCAB, EMB_DIM), jnp.float32),
    }

    # Node features (edge_mask=None branch => input_x = data.x).
    x = jax.random.normal(ks[6], (N_NODES, IN_F), jnp.float32)
    # batch vector (sorted, two graphs of 8 nodes); with LayerNorm it does not
    # change the result, it is only documented here for fidelity.
    batch = np.array([0] * 8 + [1] * 8, np.int32)  # noqa: F841

    # --- synthetic sparse graph + edge attributes (glue, mimics set_diag) ---
    # TODO(synk): torch_sparse SparseTensor / set_diag COO bookkeeping has no
    # Pallas equivalent; it is reproduced host-side in numpy.
    nonself = sorted(set((i, (i + 1) % N_NODES) for i in range(N_NODES))
                     | set((i, (i + 3) % N_NODES) for i in range(N_NODES)))
    n_edges = len(nonself)
    edge_attr = np.asarray(
        jax.random.uniform(ks[7], (n_edges, 2), jnp.float32,
                           minval=0.0, maxval=1.05))
    attr_map = {e: edge_attr[i] for i, e in enumerate(nonself)}
    drop_edges = sorted(set(nonself) | set((i, i) for i in range(N_NODES)))
    drop_edge_attr = np.stack(
        [attr_map.get(e, np.zeros(2, np.float32)) for e in drop_edges]
    ).astype(np.float32)                       # diag rows stay all-zero

    drop_edge_attr_j = jnp.asarray(drop_edge_attr)
    dist_idx = jnp.floor(drop_edge_attr_j[:, 0] / 0.1).astype(jnp.int32)
    ang_idx = jnp.floor(drop_edge_attr_j[:, 1] / 0.1).astype(jnp.int32)

    # --- run Pallas kernels ---
    out, edge = preprocess_forward(params, x, dist_idx, ang_idx)
    out = jax.block_until_ready(out)
    edge = jax.block_until_ready(edge)

    # --- sanity check against plain-JAX (f32) reference ---
    out_ref, edge_ref = preprocess_reference(params, x, dist_idx, ang_idx)
    assert out.shape == (N_NODES, OUT_F)
    assert edge.shape == (len(drop_edges), 2 * EMB_DIM)
    # Kernel runs the matmuls in bf16 with f32 accumulation -> slightly looser
    # tolerance than the pure-f32 reference.
    np.testing.assert_allclose(np.asarray(out), np.asarray(out_ref),
                               rtol=2e-2, atol=1e-2)
    np.testing.assert_allclose(np.asarray(edge), np.asarray(edge_ref),
                               rtol=1e-5, atol=1e-5)

    print("KERNEL_OK")
</pallas_src>

<mosaic_0001>
module attributes {stable_mosaic.version = 11 : i64} {
  func.func @_fused_mlp_kernel(%arg0: i32, %arg1: memref<16x1792xbf16, #tpu.memory_space<vmem>>, %arg2: memref<1792x800xbf16, #tpu.memory_space<vmem>>, %arg3: memref<1x800xf32, #tpu.memory_space<vmem>>, %arg4: memref<1x800xf32, #tpu.memory_space<vmem>>, %arg5: memref<1x800xf32, #tpu.memory_space<vmem>>, %arg6: memref<800x32xbf16, #tpu.memory_space<vmem>>, %arg7: memref<1x32xf32, #tpu.memory_space<vmem>>, %arg8: memref<16x32xf32, #tpu.memory_space<vmem>>) attributes {dimension_semantics = [#tpu.dimension_semantics<parallel>], iteration_bounds = array<i64: 1>, scalar_prefetch = 0 : i64, scratch_operands = 0 : i64, tpu.core_type = #tpu.core_type<tc>, window_params = [{transform_indices = @transform_0, window_bounds = array<i64: 16, 1792>}, {pipeline_mode = #tpu.pipeline_mode<synchronous>, transform_indices = @transform_1, window_bounds = array<i64: 1792, 800>}, {pipeline_mode = #tpu.pipeline_mode<synchronous>, transform_indices = @transform_2, window_bounds = array<i64: 1, 800>}, {pipeline_mode = #tpu.pipeline_mode<synchronous>, transform_indices = @transform_3, window_bounds = array<i64: 1, 800>}, {pipeline_mode = #tpu.pipeline_mode<synchronous>, transform_indices = @transform_4, window_bounds = array<i64: 1, 800>}, {pipeline_mode = #tpu.pipeline_mode<synchronous>, transform_indices = @transform_5, window_bounds = array<i64: 800, 32>}, {pipeline_mode = #tpu.pipeline_mode<synchronous>, transform_indices = @transform_6, window_bounds = array<i64: 1, 32>}, {transform_indices = @transform_7, window_bounds = array<i64: 16, 32>}]} {
    %c0 = arith.constant 0 : index
    %c0_0 = arith.constant 0 : index
    %0 = vector.load %arg1[%c0, %c0_0] : memref<16x1792xbf16, #tpu.memory_space<vmem>>, vector<16x1792xbf16>
    %c0_1 = arith.constant 0 : index
    %c0_2 = arith.constant 0 : index
    %1 = vector.load %arg2[%c0_1, %c0_2] : memref<1792x800xbf16, #tpu.memory_space<vmem>>, vector<1792x800xbf16>
    %cst = arith.constant dense<0.000000e+00> : vector<16x800xf32>
    %2 = tpu.matmul %0, %1, %cst {dimension_numbers = #tpu.dot_dimension_numbers<[1], [0], [0], [1], [0, 0, 1, 1], [], []>} : vector<16x1792xbf16>, vector<1792x800xbf16>, vector<16x800xf32> -> vector<16x800xf32>
    %c0_3 = arith.constant 0 : index
    %c0_4 = arith.constant 0 : index
    %3 = vector.load %arg3[%c0_3, %c0_4] : memref<1x800xf32, #tpu.memory_space<vmem>>, vector<1x800xf32>
    %4 = vector.broadcast %3 : vector<1x800xf32> to vector<16x800xf32>
    %5 = arith.addf %2, %4 : vector<16x800xf32>
    %cst_5 = arith.constant dense<0.000000e+00> : vector<16xf32>
    %6 = vector.multi_reduction <add>, %5, %cst_5 [1] : vector<16x800xf32> to vector<16xf32>
    %7 = vector.shape_cast %6 : vector<16xf32> to vector<16x1xf32>
    %cst_6 = arith.constant 8.000000e+02 : f32
    %8 = vector.broadcast %cst_6 : f32 to vector<16x1xf32>
    %9 = arith.divf %7, %8 : vector<16x1xf32>
    %10 = vector.broadcast %9 : vector<16x1xf32> to vector<16x800xf32>
    %11 = arith.subf %5, %10 : vector<16x800xf32>
    %12 = arith.mulf %11, %11 : vector<16x800xf32>
    %cst_7 = arith.constant dense<0.000000e+00> : vector<16xf32>
    %13 = vector.multi_reduction <add>, %12, %cst_7 [1] : vector<16x800xf32> to vector<16xf32>
    %14 = vector.shape_cast %13 : vector<16xf32> to vector<16x1xf32>
    %cst_8 = arith.constant 8.000000e+02 : f32
    %15 = vector.broadcast %cst_8 : f32 to vector<16x1xf32>
    %16 = arith.divf %14, %15 : vector<16x1xf32>
    %cst_9 = arith.constant 9.99999974E-6 : f32
    %17 = vector.broadcast %cst_9 : f32 to vector<16x1xf32>
    %18 = arith.addf %16, %17 : vector<16x1xf32>
    %19 = math.rsqrt %18 : vector<16x1xf32>
    %20 = vector.broadcast %19 : vector<16x1xf32> to vector<16x800xf32>
    %21 = arith.mulf %11, %20 : vector<16x800xf32>
    %c0_10 = arith.constant 0 : index
    %c0_11 = arith.constant 0 : index
    %22 = vector.load %arg4[%c0_10, %c0_11] : memref<1x800xf32, #tpu.memory_space<vmem>>, vector<1x800xf32>
    %23 = vector.broadcast %22 : vector<1x800xf32> to vector<16x800xf32>
    %24 = arith.mulf %21, %23 : vector<16x800xf32>
    %c0_12 = arith.constant 0 : index
    %c0_13 = arith.constant 0 : index
    %25 = vector.load %arg5[%c0_12, %c0_13] : memref<1x800xf32, #tpu.memory_space<vmem>>, vector<1x800xf32>
    %26 = vector.broadcast %25 : vector<1x800xf32> to vector<16x800xf32>
    %27 = arith.addf %24, %26 : vector<16x800xf32>
    %cst_14 = arith.constant 0.000000e+00 : f32
    %28 = vector.broadcast %cst_14 : f32 to vector<16x800xf32>
    %29 = arith.cmpf oge, %27, %28 : vector<16x800xf32>
    %cst_15 = arith.constant 2.000000e-01 : f32
    %30 = vector.broadcast %cst_15 : f32 to vector<16x800xf32>
    %31 = arith.mulf %30, %27 : vector<16x800xf32>
    %32 = arith.select %29, %27, %31 : vector<16x800xi1>, vector<16x800xf32>
    %33 = arith.truncf %32 : vector<16x800xf32> to vector<16x800xbf16>
    %c0_16 = arith.constant 0 : index
    %c0_17 = arith.constant 0 : index
    %34 = vector.load %arg6[%c0_16, %c0_17] : memref<800x32xbf16, #tpu.memory_space<vmem>>, vector<800x32xbf16>
    %cst_18 = arith.constant dense<0.000000e+00> : vector<16x32xf32>
    %35 = tpu.matmul %33, %34, %cst_18 {dimension_numbers = #tpu.dot_dimension_numbers<[1], [0], [0], [1], [0, 0, 1, 1], [], []>} : vector<16x800xbf16>, vector<800x32xbf16>, vector<16x32xf32> -> vector<16x32xf32>
    %c0_19 = arith.constant 0 : index
    %c0_20 = arith.constant 0 : index
    %36 = vector.load %arg7[%c0_19, %c0_20] : memref<1x32xf32, #tpu.memory_space<vmem>>, vector<1x32xf32>
    %37 = vector.broadcast %36 : vector<1x32xf32> to vector<16x32xf32>
    %38 = arith.addf %35, %37 : vector<16x32xf32>
    %c0_21 = arith.constant 0 : index
    %c0_22 = arith.constant 0 : index
    %39 = vector.load %arg8[%c0_21, %c0_22] : memref<16x32xf32, #tpu.memory_space<vmem>>, vector<16x32xf32>
    tpu.vector_store %arg8[%c0_21, %c0_22], %38 {strides = array<i32>} : memref<16x32xf32, #tpu.memory_space<vmem>>, vector<16x32xf32>,
    return
  }
  func.func @transform_0(%arg0: i32) -> (i32, i32) {
    %c0_i32 = arith.constant 0 : i32
    %c0_i32_0 = arith.constant 0 : i32
    return %arg0, %c0_i32 : i32, i32
  }
  func.func @transform_1(%arg0: i32) -> (i32, i32) {
    %c0_i32 = arith.constant 0 : i32
    %c0_i32_0 = arith.constant 0 : i32
    %c0_i32_1 = arith.constant 0 : i32
    return %c0_i32, %c0_i32_0 : i32, i32
  }
  func.func @transform_2(%arg0: i32) -> (i32, i32) {
    %c0_i32 = arith.constant 0 : i32
    %c0_i32_0 = arith.constant 0 : i32
    %c0_i32_1 = arith.constant 0 : i32
    return %c0_i32, %c0_i32_0 : i32, i32
  }
  func.func @transform_3(%arg0: i32) -> (i32, i32) {
    %c0_i32 = arith.constant 0 : i32
    %c0_i32_0 = arith.constant 0 : i32
    %c0_i32_1 = arith.constant 0 : i32
    return %c0_i32, %c0_i32_0 : i32, i32
  }
  func.func @transform_4(%arg0: i32) -> (i32, i32) {
    %c0_i32 = arith.constant 0 : i32
    %c0_i32_0 = arith.constant 0 : i32
    %c0_i32_1 = arith.constant 0 : i32
    return %c0_i32, %c0_i32_0 : i32, i32
  }
  func.func @transform_5(%arg0: i32) -> (i32, i32) {
    %c0_i32 = arith.constant 0 : i32
    %c0_i32_0 = arith.constant 0 : i32
    %c0_i32_1 = arith.constant 0 : i32
    return %c0_i32, %c0_i32_0 : i32, i32
  }
  func.func @transform_6(%arg0: i32) -> (i32, i32) {
    %c0_i32 = arith.constant 0 : i32
    %c0_i32_0 = arith.constant 0 : i32
    %c0_i32_1 = arith.constant 0 : i32
    return %c0_i32, %c0_i32_0 : i32, i32
  }
  func.func @transform_7(%arg0: i32) -> (i32, i32) {
    %c0_i32 = arith.constant 0 : i32
    %c0_i32_0 = arith.constant 0 : i32
    return %arg0, %c0_i32 : i32, i32
  }
}

</mosaic_0001>

<bundles_post_ra>
// kernel: tpu_custom_call.1
= control target key start
LH: loop header
LB: loop body
LE: loop exit
PB: predicated region body
PF: predicated region fallthrough
CT: control target
= control target key end

     0   :  { %s12488_s0 = inlined_call_operand.vmem [shape: bf16[16,1792], index: 0, kind: input, shape index: {}]   ;;  %s12489_s1 = inlined_call_operand.vmem [shape: bf16[1792,800], index: 1, kind: input, shape index: {}]   ;;  %s12490_s2 = inlined_call_operand.vmem [shape: f32[1,800], index: 2, kind: input, shape index: {}]   ;;  %s12491_s3 = inlined_call_operand.vmem [shape: f32[1,800], index: 3, kind: input, shape index: {}]   ;;  %s12492_s4 = inlined_call_operand.vmem [shape: f32[1,800], index: 4, kind: input, shape index: {}]   ;;  %s12493_s5 = inlined_call_operand.vmem [shape: bf16[800,32], index: 5, kind: input, shape index: {}]   ;;  %s12494_s6 = inlined_call_operand.vmem [shape: f32[1,32], index: 6, kind: input, shape index: {}]   ;;  %s12495_s7 = inlined_call_operand.hbm [shape: f32[16,32], index: 7, kind: output, shape index: {}]  }
   0x1   :  { %v8268_v0 = vld [vmem:[%s12489_s1 + $0x4] ss:$28 sps:$4 sm:$0xff]   ;;  %v8274_v4 = vld [vmem:[%s12489_s1 + $0x3c] ss:$28 sps:$4 sm:$0xff]   ;;  %v8280_v8 = vld [vmem:[%s12489_s1 + $0x74] ss:$28 sps:$4 sm:$0xff]  }
   0x2   :  { %v8270_v1 = vld [vmem:[%s12489_s1 + $0x384] ss:$28 sps:$4 sm:$0xff]   ;;  %5077 = vmatprep.subr.bf16.mxu1 %v8268_v0  ;;  %v8276_v5 = vld [vmem:[%s12489_s1 + $0x3bc] ss:$28 sps:$4 sm:$0xff]   ;;  %v8282_v9 = vld [vmem:[%s12489_s1 + $0x3f4] ss:$28 sps:$4 sm:$0xff]  }
   0x3   :  { %v8272_v2 = vld [vmem:[%s12489_s1] ss:$28 sps:$4 sm:$0xff]   ;;  %5120 = vmatprep.subr.bf16.mxu0 %v8270_v1  ;;  %v8278_v6 = vld [vmem:[%s12489_s1 + $0x38] ss:$28 sps:$4 sm:$0xff]   ;;  %v8284_v10 = vld [vmem:[%s12489_s1 + $0x70] ss:$28 sps:$4 sm:$0xff]  }
   0x4   :  { %v8273_v3 = vld [vmem:[%s12489_s1 + $0x380] ss:$28 sps:$4 sm:$0xff]   ;;  %5078 = vmatpush1.bf16.msra.mxu1 %v8272_v2  ;;  %v8279_v7 = vld [vmem:[%s12489_s1 + $0x3b8] ss:$28 sps:$4 sm:$0xff]   ;;  %v8285_v11 = vld [vmem:[%s12489_s1 + $0x3f0] ss:$28 sps:$4 sm:$0xff]  }
   0x5   :  { %5121 = vmatpush1.bf16.msra.mxu0 %v8273_v3  ;;  %5079 = vmatprep.subr.bf16.mxu1 %v8274_v4  ;;  %v8286_v12 = vld [vmem:[%s12489_s1 + $0xac] ss:$28 sps:$4 sm:$0xff]   ;;  %v8292_v16 = vld [vmem:[%s12489_s1 + $0xe4] ss:$28 sps:$4 sm:$0xff]   ;;  %v8298_v20 = vld [vmem:[%s12489_s1 + $0x11c] ss:$28 sps:$4 sm:$0xff]  }
   0x6   :  { %5122 = vmatprep.subr.bf16.mxu0 %v8276_v5  ;;  %v8288_v13 = vld [vmem:[%s12489_s1 + $0x42c] ss:$28 sps:$4 sm:$0xff]   ;;  %v8294_v17 = vld [vmem:[%s12489_s1 + $0x464] ss:$28 sps:$4 sm:$0xff]   ;;  %v8300_v21 = vld [vmem:[%s12489_s1 + $0x49c] ss:$28 sps:$4 sm:$0xff]  }
   0x7   :  { %v8290_v14 = vld [vmem:[%s12489_s1 + $0xa8] ss:$28 sps:$4 sm:$0xff]   ;;  %v8296_v18 = vld [vmem:[%s12489_s1 + $0xe0] ss:$28 sps:$4 sm:$0xff]   ;;  %v8302_v22 = vld [vmem:[%s12489_s1 + $0x118] ss:$28 sps:$4 sm:$0xff]  }
   0x8   :  { %5080 = vmatpush1.bf16.msra.mxu1 %v8278_v6  ;;  %v8291_v15 = vld [vmem:[%s12489_s1 + $0x428] ss:$28 sps:$4 sm:$0xff]   ;;  %v8297_v19 = vld [vmem:[%s12489_s1 + $0x460] ss:$28 sps:$4 sm:$0xff]   ;;  %v8303_v23 = vld [vmem:[%s12489_s1 + $0x498] ss:$28 sps:$4 sm:$0xff]  }
   0x9   :  { %5123 = vmatpush1.bf16.msra.mxu0 %v8279_v7  ;;  %5081 = vmatprep.subr.bf16.mxu1 %v8280_v8  ;;  %v8304_v24 = vld [vmem:[%s12489_s1 + $0x154] ss:$28 sps:$4 sm:$0xff]   ;;  %v8310_v28 = vld [vmem:[%s12489_s1 + $0x18c] ss:$28 sps:$4 sm:$0xff]   ;;  %v8316_v32 = vld [vmem:[%s12489_s1 + $0x1c4] ss:$28 sps:$4 sm:$0xff]  }
   0xa   :  { %5124 = vmatprep.subr.bf16.mxu0 %v8282_v9  ;;  %v8306_v25 = vld [vmem:[%s12489_s1 + $0x4d4] ss:$28 sps:$4 sm:$0xff]   ;;  %v8312_v29 = vld [vmem:[%s12489_s1 + $0x50c] ss:$28 sps:$4 sm:$0xff]   ;;  %v8318_v33 = vld [vmem:[%s12489_s1 + $0x544] ss:$28 sps:$4 sm:$0xff]  }
   0xb   :  { %v8308_v26 = vld [vmem:[%s12489_s1 + $0x150] ss:$28 sps:$4 sm:$0xff]   ;;  %v8314_v30 = vld [vmem:[%s12489_s1 + $0x188] ss:$28 sps:$4 sm:$0xff]   ;;  %v8320_v34 = vld [vmem:[%s12489_s1 + $0x1c0] ss:$28 sps:$4 sm:$0xff]  }
   0xc   :  { %5082 = vmatpush1.bf16.msra.mxu1 %v8284_v10  ;;  %v8309_v27 = vld [vmem:[%s12489_s1 + $0x4d0] ss:$28 sps:$4 sm:$0xff]   ;;  %v8315_v31 = vld [vmem:[%s12489_s1 + $0x508] ss:$28 sps:$4 sm:$0xff]   ;;  %v8321_v35 = vld [vmem:[%s12489_s1 + $0x540] ss:$28 sps:$4 sm:$0xff]  }
   0xd   :  { %5125 = vmatpush1.bf16.msra.mxu0 %v8285_v11  ;;  %5083 = vmatprep.subr.bf16.mxu1 %v8286_v12  ;;  %v8322_v36 = vld [vmem:[%s12489_s1 + $0x1fc] ss:$28 sps:$4 sm:$0xff]   ;;  %v8328_v40 = vld [vmem:[%s12489_s1 + $0x234] ss:$28 sps:$4 sm:$0xff]   ;;  %v8334_v44 = vld [vmem:[%s12489_s1 + $0x26c] ss:$28 sps:$4 sm:$0xff]  }
   0xe   :  { %5126 = vmatprep.subr.bf16.mxu0 %v8288_v13  ;;  %v8324_v37 = vld [vmem:[%s12489_s1 + $0x57c] ss:$28 sps:$4 sm:$0xff]   ;;  %v8330_v41 = vld [vmem:[%s12489_s1 + $0x5b4] ss:$28 sps:$4 sm:$0xff]   ;;  %v8336_v45 = vld [vmem:[%s12489_s1 + $0x5ec] ss:$28 sps:$4 sm:$0xff]  }
   0xf   :  { %v8326_v38 = vld [vmem:[%s12489_s1 + $0x1f8] ss:$28 sps:$4 sm:$0xff]   ;;  %v8332_v42 = vld [vmem:[%s12489_s1 + $0x230] ss:$28 sps:$4 sm:$0xff]   ;;  %v8338_v46 = vld [vmem:[%s12489_s1 + $0x268] ss:$28 sps:$4 sm:$0xff]  }
  0x10   :  { %5084 = vmatpush1.bf16.msra.mxu1 %v8290_v14  ;;  %v8327_v39 = vld [vmem:[%s12489_s1 + $0x578] ss:$28 sps:$4 sm:$0xff]   ;;  %v8333_v43 = vld [vmem:[%s12489_s1 + $0x5b0] ss:$28 sps:$4 sm:$0xff]   ;;  %v8339_v47 = vld [vmem:[%s12489_s1 + $0x5e8] ss:$28 sps:$4 sm:$0xff]  }
  0x11   :  { %5127 = vmatpush1.bf16.msra.mxu0 %v8291_v15  ;;  %5085 = vmatprep.subr.bf16.mxu1 %v8292_v16  ;;  %v8364_v48 = vld [vmem:[%s12488_s0 + $0x4] ss:$56 sps:$4 sm:$0xff]   ;;  %v8350_v56 = vld [vmem:[%s12489_s1 + $0x2d8] ss:$28 sps:$4 sm:$0xff]   ;;  %v8356_v60 = vld [vmem:[%s12489_s1 + $0x310] ss:$28 sps:$4 sm:$0xff]  }
  0x12   :  { %5128 = vmatprep.subr.bf16.mxu0 %v8294_v17  ;;  %v9702_v49 = vld [vmem:[%s12488_s0 + $0xc] ss:$56 sps:$4 sm:$0xff]   ;;  %5109 = vmatprep.mubr.bf16.mxu1 %v8364_v48  ;;  %v8344_v52 = vld [vmem:[%s12489_s1 + $0x2a0] ss:$28 sps:$4 sm:$0xff]   ;;  %v8351_v57 = vld [vmem:[%s12489_s1 + $0x658] ss:$28 sps:$4 sm:$0xff]  }
  0x13   :  { %v8340_v50 = vld [vmem:[%s12489_s1 + $0x2a4] ss:$28 sps:$4 sm:$0xff]   ;;  %5152 = vmatprep.mubr.bf16.mxu0 %v9702_v49  ;;  %v8346_v54 = vld [vmem:[%s12489_s1 + $0x2dc] ss:$28 sps:$4 sm:$0xff]   ;;  %v8352_v58 = vld [vmem:[%s12489_s1 + $0x314] ss:$28 sps:$4 sm:$0xff]  }
  0x14   :  { %5086 = vmatpush1.bf16.msra.mxu1 %v8296_v18  ;;  %v8342_v51 = vld [vmem:[%s12489_s1 + $0x624] ss:$28 sps:$4 sm:$0xff]   ;;  %v8348_v55 = vld [vmem:[%s12489_s1 + $0x65c] ss:$28 sps:$4 sm:$0xff]   ;;  %v8354_v59 = vld [vmem:[%s12489_s1 + $0x694] ss:$28 sps:$4 sm:$0xff]  }
  0x15   :  { %5129 = vmatpush1.bf16.msra.mxu0 %v8297_v19  ;;  %5087 = vmatprep.subr.bf16.mxu1 %v8298_v20  ;;  %v8345_v53 = vld [vmem:[%s12489_s1 + $0x620] ss:$28 sps:$4 sm:$0xff]   ;;  %v8357_v61 = vld [vmem:[%s12489_s1 + $0x690] ss:$28 sps:$4 sm:$0xff]   ;;  %v8362_v0 = vld [vmem:[%s12489_s1 + $0x348] ss:$28 sps:$4 sm:$0xff]  }
  0x16   :  { %5130 = vmatprep.subr.bf16.mxu0 %v8300_v21  ;;  %v8358_v62 = vld [vmem:[%s12489_s1 + $0x34c] ss:$28 sps:$4 sm:$0xff]   ;;  %v8370_v2 = vld [vmem:[%s12489_s1 + $0x704] ss:$28 sps:$4 sm:$0xff]   ;;  %v8378_v8 = vld [vmem:[%s12489_s1 + $0x73c] ss:$28 sps:$4 sm:$0xff]  }
  0x17   :  { %v8360_v63 = vld [vmem:[%s12489_s1 + $0x6cc] ss:$28 sps:$4 sm:$0xff]   ;;  %v8368_v4 = vld [vmem:[%s12489_s1 + $0x700] ss:$28 sps:$4 sm:$0xff]   ;;  %v8376_v10 = vld [vmem:[%s12489_s1 + $0x738] ss:$28 sps:$4 sm:$0xff]  }
  0x18   :  { %5088 = vmatpush1.bf16.msra.mxu1 %v8302_v22  ;;  %v8363_v1 = vld [vmem:[%s12489_s1 + $0x6c8] ss:$28 sps:$4 sm:$0xff]   ;;  %v9768_v6 = vld [vmem:[%s12488_s0] ss:$56 sps:$4 sm:$0xff]   ;;  %v8384_v12 = vld [vmem:[%s12489_s1 + $0x774] ss:$28 sps:$4 sm:$0xff]  }
  0x19   :  { %5131 = vmatpush1.bf16.msra.mxu0 %v8303_v23  ;;  %5089 = vmatprep.subr.bf16.mxu1 %v8304_v24  ;;  %v8373_v3 = vld [vmem:[%s12489_s1 + $0xc] ss:$28 sps:$4 sm:$0xff]   ;;  %v8381_v9 = vld [vmem:[%s12489_s1 + $0x44] ss:$28 sps:$4 sm:$0xff]   ;;  %v8387_v13 = vld [vmem:[%s12489_s1 + $0x7c] ss:$28 sps:$4 sm:$0xff]  }
  0x1a   :  { %5132 = vmatprep.subr.bf16.mxu0 %v8306_v25  ;;  %v8371_v5 = vld [vmem:[%s12489_s1 + $0x8] ss:$28 sps:$4 sm:$0xff]   ;;  %v8379_v11 = vld [vmem:[%s12489_s1 + $0x40] ss:$28 sps:$4 sm:$0xff]   ;;  %v8382_v14 = vld [vmem:[%s12489_s1 + $0x770] ss:$28 sps:$4 sm:$0xff]  }
  0x1b   :  { %v9773_v7 = vld [vmem:[%s12488_s0 + $0x8] ss:$56 sps:$4 sm:$0xff]   ;;  %v8385_v15 = vld [vmem:[%s12489_s1 + $0x78] ss:$28 sps:$4 sm:$0xff]   ;;  %v8391_v19 = vld [vmem:[%s12489_s1 + $0xb0] ss:$28 sps:$4 sm:$0xff]  }
  0x1c   :  { %5090 = vmatpush1.bf16.msra.mxu1 %v8308_v26  ;;  %v8390_v16 = vld [vmem:[%s12489_s1 + $0x7ac] ss:$28 sps:$4 sm:$0xff]   ;;  %v8393_v17 = vld [vmem:[%s12489_s1 + $0xb4] ss:$28 sps:$4 sm:$0xff]   ;;  %v8396_v20 = vld [vmem:[%s12489_s1 + $0x7e4] ss:$28 sps:$4 sm:$0xff]  }
  0x1d   :  { %5133 = vmatpush1.bf16.msra.mxu0 %v8309_v27  ;;  %5091 = vmatprep.subr.bf16.mxu1 %v8310_v28  ;;  %v8388_v18 = vld [vmem:[%s12489_s1 + $0x7a8] ss:$28 sps:$4 sm:$0xff]   ;;  %v8394_v22 = vld [vmem:[%s12489_s1 + $0x7e0] ss:$28 sps:$4 sm:$0xff]   ;;  %v8400_v26 = vld [vmem:[%s12489_s1 + $0x818] ss:$28 sps:$4 sm:$0xff]  }
  0x1e   :  { %5134 = vmatprep.subr.bf16.mxu0 %v8312_v29  ;;  %v8399_v21 = vld [vmem:[%s12489_s1 + $0xec] ss:$28 sps:$4 sm:$0xff]   ;;  %v8402_v24 = vld [vmem:[%s12489_s1 + $0x81c] ss:$28 sps:$4 sm:$0xff]   ;;  %v8405_v25 = vld [vmem:[%s12489_s1 + $0x124] ss:$28 sps:$4 sm:$0xff]  }
  0x1f   :  { %v8397_v23 = vld [vmem:[%s12489_s1 + $0xe8] ss:$28 sps:$4 sm:$0xff]   ;;  %v8403_v27 = vld [vmem:[%s12489_s1 + $0x120] ss:$28 sps:$4 sm:$0xff]   ;;  %v8408_v28 = vld [vmem:[%s12489_s1 + $0x854] ss:$28 sps:$4 sm:$0xff]  }
  0x20   :  { %5092 = vmatpush1.bf16.msra.mxu1 %v8314_v30  ;;  %v8411_v29 = vld [vmem:[%s12489_s1 + $0x15c] ss:$28 sps:$4 sm:$0xff]   ;;  %v8406_v30 = vld [vmem:[%s12489_s1 + $0x850] ss:$28 sps:$4 sm:$0xff]  }
  0x21   :  { %5135 = vmatpush1.bf16.msra.mxu0 %v8315_v31  ;;  %5093 = vmatprep.subr.bf16.mxu1 %v8316_v32  ;;  %v8409_v31 = vld [vmem:[%s12489_s1 + $0x158] ss:$28 sps:$4 sm:$0xff]   ;;  %v8414_v32 = vld [vmem:[%s12489_s1 + $0x88c] ss:$28 sps:$4 sm:$0xff]  }
  0x22   :  { %5136 = vmatprep.subr.bf16.mxu0 %v8318_v33  ;;  %v9855_v33 = vld [vmem:[%s12488_s0 + $0x14] ss:$56 sps:$4 sm:$0xff]  }
  0x24   :  { %5094 = vmatpush1.bf16.msra.mxu1 %v8320_v34  ;;  %v8417_v34 = vld [vmem:[%s12489_s1 + $0x194] ss:$28 sps:$4 sm:$0xff]  }
  0x25   :  { %5137 = vmatpush1.bf16.msra.mxu0 %v8321_v35  ;;  %5095 = vmatprep.subr.bf16.mxu1 %v8322_v36  ;;  %v8412_v35 = vld [vmem:[%s12489_s1 + $0x888] ss:$28 sps:$4 sm:$0xff]   ;;  %v8415_v36 = vld [vmem:[%s12489_s1 + $0x190] ss:$28 sps:$4 sm:$0xff]  }
  0x26   :  { %5138 = vmatprep.subr.bf16.mxu0 %v8324_v37  ;;  %v8420_v37 = vld [vmem:[%s12489_s1 + $0x8c4] ss:$28 sps:$4 sm:$0xff]  }
  0x28   :  { %5096 = vmatpush1.bf16.msra.mxu1 %v8326_v38  ;;  %v8423_v38 = vld [vmem:[%s12489_s1 + $0x1cc] ss:$28 sps:$4 sm:$0xff]  }
  0x29   :  { %5139 = vmatpush1.bf16.msra.mxu0 %v8327_v39  ;;  %5097 = vmatprep.subr.bf16.mxu1 %v8328_v40  ;;  %v8418_v39 = vld [vmem:[%s12489_s1 + $0x8c0] ss:$28 sps:$4 sm:$0xff]   ;;  %v8421_v40 = vld [vmem:[%s12489_s1 + $0x1c8] ss:$28 sps:$4 sm:$0xff]  }
  0x2a   :  { %5140 = vmatprep.subr.bf16.mxu0 %v8330_v41  ;;  %v8426_v41 = vld [vmem:[%s12489_s1 + $0x8fc] ss:$28 sps:$4 sm:$0xff]  }
  0x2c   :  { %5098 = vmatpush1.bf16.msra.mxu1 %v8332_v42  ;;  %v8429_v42 = vld [vmem:[%s12489_s1 + $0x204] ss:$28 sps:$4 sm:$0xff]  }
  0x2d   :  { %5141 = vmatpush1.bf16.msra.mxu0 %v8333_v43  ;;  %5099 = vmatprep.subr.bf16.mxu1 %v8334_v44  ;;  %v8424_v43 = vld [vmem:[%s12489_s1 + $0x8f8] ss:$28 sps:$4 sm:$0xff]   ;;  %v8427_v44 = vld [vmem:[%s12489_s1 + $0x200] ss:$28 sps:$4 sm:$0xff]  }
  0x2e   :  { %5142 = vmatprep.subr.bf16.mxu0 %v8336_v45  ;;  %v8432_v45 = vld [vmem:[%s12489_s1 + $0x934] ss:$28 sps:$4 sm:$0xff]  }
  0x30   :  { %5100 = vmatpush1.bf16.msra.mxu1 %v8338_v46  ;;  %v8435_v46 = vld [vmem:[%s12489_s1 + $0x23c] ss:$28 sps:$4 sm:$0xff]  }
  0x31   :  { %5143 = vmatpush1.bf16.msra.mxu0 %v8339_v47  ;;  %5101 = vmatprep.subr.bf16.mxu1 %v8340_v50  ;;  %v8430_v47 = vld [vmem:[%s12489_s1 + $0x930] ss:$28 sps:$4 sm:$0xff]  }
  0x32   :  { %5144 = vmatprep.subr.bf16.mxu0 %v8342_v51  ;;  %v8438_v50 = vld [vmem:[%s12489_s1 + $0x96c] ss:$28 sps:$4 sm:$0xff]   ;;  %v8441_v51 = vld [vmem:[%s12489_s1 + $0x274] ss:$28 sps:$4 sm:$0xff]  }
  0x34   :  { %5102 = vmatpush1.bf16.msra.mxu1 %v8344_v52  ;;  %v8436_v52 = vld [vmem:[%s12489_s1 + $0x968] ss:$28 sps:$4 sm:$0xff]  }
  0x35   :  { %5145 = vmatpush1.bf16.msra.mxu0 %v8345_v53  ;;  %5103 = vmatprep.subr.bf16.mxu1 %v8346_v54  ;;  %v8439_v53 = vld [vmem:[%s12489_s1 + $0x270] ss:$28 sps:$4 sm:$0xff]   ;;  %v8444_v54 = vld [vmem:[%s12489_s1 + $0x9a4] ss:$28 sps:$4 sm:$0xff]  }
  0x36   :  { %5146 = vmatprep.subr.bf16.mxu0 %v8348_v55  ;;  %v8447_v55 = vld [vmem:[%s12489_s1 + $0x2ac] ss:$28 sps:$4 sm:$0xff]  }
  0x38   :  { %5104 = vmatpush1.bf16.msra.mxu1 %v8350_v56  ;;  %v8442_v56 = vld [vmem:[%s12489_s1 + $0x9a0] ss:$28 sps:$4 sm:$0xff]  }
  0x39   :  { %5147 = vmatpush1.bf16.msra.mxu0 %v8351_v57  ;;  %5105 = vmatprep.subr.bf16.mxu1 %v8352_v58  ;;  %v8445_v57 = vld [vmem:[%s12489_s1 + $0x2a8] ss:$28 sps:$4 sm:$0xff]   ;;  %v8450_v58 = vld [vmem:[%s12489_s1 + $0x9dc] ss:$28 sps:$4 sm:$0xff]  }
  0x3a   :  { %5148 = vmatprep.subr.bf16.mxu0 %v8354_v59  ;;  %v8453_v59 = vld [vmem:[%s12489_s1 + $0x2e4] ss:$28 sps:$4 sm:$0xff]  }
  0x3c   :  { %5106 = vmatpush1.bf16.msra.mxu1 %v8356_v60  ;;  %v8448_v60 = vld [vmem:[%s12489_s1 + $0x9d8] ss:$28 sps:$4 sm:$0xff]  }
  0x3d   :  { %5149 = vmatpush1.bf16.msra.mxu0 %v8357_v61  ;;  %5107 = vmatprep.subr.bf16.mxu1 %v8358_v62  ;;  %v8451_v61 = vld [vmem:[%s12489_s1 + $0x2e0] ss:$28 sps:$4 sm:$0xff]   ;;  %v8456_v62 = vld [vmem:[%s12489_s1 + $0xa14] ss:$28 sps:$4 sm:$0xff]  }
  0x3e   :  { %5150 = vmatprep.subr.bf16.mxu0 %v8360_v63  ;;  %v8459_v63 = vld [vmem:[%s12489_s1 + $0x31c] ss:$28 sps:$4 sm:$0xff]  }
  0x40   :  { %5108 = vmatpush1.bf16.msra.mxu1 %v8362_v0  ;;  %v8454_v0 = vld [vmem:[%s12489_s1 + $0xa10] ss:$28 sps:$4 sm:$0xff]  }
  0x41   :  { %5151 = vmatpush1.bf16.msra.mxu0 %v8363_v1  ;;  %5378 = vmatprep.subr.bf16.mxu1 %v8373_v3  ;;  %v8457_v1 = vld [vmem:[%s12489_s1 + $0x318] ss:$28 sps:$4 sm:$0xff]  }
  0x42   :  { %5163 = vmatprep.subr.bf16.mxu0 %v8370_v2  ;;  %v8462_v2 = vld [vmem:[%s12489_s1 + $0xa4c] ss:$28 sps:$4 sm:$0xff]   ;;  %v8465_v3 = vld [vmem:[%s12489_s1 + $0x354] ss:$28 sps:$4 sm:$0xff]  }
  0x43   :  { %5110 = vmatmul.mubr.bf16.vlgmr.msra.gmra.mrb[0].mxu1 %v9768_v6 }
  0x44   :  { %5153 = vmatmul.mubr.bf16.vlgmr.msra.gmra.mrb[0].mxu0 %v9773_v7  ;;  %5379 = vmatpush1.bf16.msra.mxu1 %v8371_v5  ;;  %v8463_v5 = vld [vmem:[%s12489_s1 + $0x350] ss:$28 sps:$4 sm:$0xff]  }
  0x45   :  { %5164 = vmatpush1.bf16.msra.mxu0 %v8368_v4  ;;  %5380 = vmatprep.subr.bf16.mxu1 %v8381_v9  ;;  %v8460_v4 = vld [vmem:[%s12489_s1 + $0xa48] ss:$28 sps:$4 sm:$0xff]  }
  0x46   :  { %5165 = vmatprep.subr.bf16.mxu0 %v8378_v8  ;;  %5410 = vmatprep.mubr.bf16.mxu1 %v8364_v48  ;;  %v8433_v48 = vld [vmem:[%s12489_s1 + $0x238] ss:$28 sps:$4 sm:$0xff]   ;;  %v8470_v8 = vld [vmem:[%s12489_s1 + $0xa84] ss:$28 sps:$4 sm:$0xff]   ;;  %v8473_v9 = vld [vmem:[%s12489_s1 + $0x38c] ss:$28 sps:$4 sm:$0xff]  }
  0x47   :  { %5195 = vmatprep.mubr.bf16.mxu0 %v9855_v33 }
  0x48   :  { %5381 = vmatpush1.bf16.msra.mxu1 %v8379_v11  ;;  %v8471_v11 = vld [vmem:[%s12489_s1 + $0x388] ss:$28 sps:$4 sm:$0xff]  }
  0x49   :  { %5166 = vmatpush1.bf16.msra.mxu0 %v8376_v10  ;;  %5382 = vmatprep.subr.bf16.mxu1 %v8387_v13  ;;  %v8468_v10 = vld [vmem:[%s12489_s1 + $0xa80] ss:$28 sps:$4 sm:$0xff]  }
  0x4a   :  { %5167 = vmatprep.subr.bf16.mxu0 %v8384_v12  ;;  %v9978_v12 = vld [vmem:[%s12488_s0 + $0x10] ss:$56 sps:$4 sm:$0xff]   ;;  %v8477_v13 = vld [vmem:[%s12489_s1 + $0xabc] ss:$28 sps:$4 sm:$0xff]  }
  0x4c   :  { %5383 = vmatpush1.bf16.msra.mxu1 %v8385_v15  ;;  %v8475_v15 = vld [vmem:[%s12489_s1 + $0xab8] ss:$28 sps:$4 sm:$0xff]  }
  0x4d   :  { %5168 = vmatpush1.bf16.msra.mxu0 %v8382_v14  ;;  %5384 = vmatprep.subr.bf16.mxu1 %v8393_v17  ;;  %v8480_v14 = vld [vmem:[%s12489_s1 + $0x3c4] ss:$28 sps:$4 sm:$0xff]   ;;  %v8483_v17 = vld [vmem:[%s12489_s1 + $0xaf4] ss:$28 sps:$4 sm:$0xff]  }
  0x4e   :  { %5169 = vmatprep.subr.bf16.mxu0 %v8390_v16  ;;  %v8478_v16 = vld [vmem:[%s12489_s1 + $0x3c0] ss:$28 sps:$4 sm:$0xff]  }
  0x50   :  { %5385 = vmatpush1.bf16.msra.mxu1 %v8391_v19  ;;  %v8481_v19 = vld [vmem:[%s12489_s1 + $0xaf0] ss:$28 sps:$4 sm:$0xff]  }
  0x51   :  { %5170 = vmatpush1.bf16.msra.mxu0 %v8388_v18  ;;  %5386 = vmatprep.subr.bf16.mxu1 %v8399_v21  ;;  %v10000_v18 = vld [vmem:[%s12488_s0 + $0x1c] ss:$56 sps:$4 sm:$0xff]   ;;  %v8489_v21 = vld [vmem:[%s12489_s1 + $0xb2c] ss:$28 sps:$4 sm:$0xff]  }
  0x52   :  { %5171 = vmatprep.subr.bf16.mxu0 %v8396_v20  ;;  %v8484_v20 = vld [vmem:[%s12489_s1 + $0x3f8] ss:$28 sps:$4 sm:$0xff]  }
  0x54   :  { %5387 = vmatpush1.bf16.msra.mxu1 %v8397_v23  ;;  %v8490_v23 = vld [vmem:[%s12489_s1 + $0x430] ss:$28 sps:$4 sm:$0xff]  }
  0x55   :  { %5172 = vmatpush1.bf16.msra.mxu0 %v8394_v22  ;;  %5388 = vmatprep.subr.bf16.mxu1 %v8405_v25  ;;  %v8487_v22 = vld [vmem:[%s12489_s1 + $0xb28] ss:$28 sps:$4 sm:$0xff]  }
  0x56   :  { %5173 = vmatprep.subr.bf16.mxu0 %v8402_v24  ;;  %v8495_v24 = vld [vmem:[%s12489_s1 + $0xb64] ss:$28 sps:$4 sm:$0xff]   ;;  %v8498_v25 = vld [vmem:[%s12489_s1 + $0x46c] ss:$28 sps:$4 sm:$0xff]  }
  0x58   :  { %5389 = vmatpush1.bf16.msra.mxu1 %v8403_v27  ;;  %v8496_v27 = vld [vmem:[%s12489_s1 + $0x468] ss:$28 sps:$4 sm:$0xff]  }
  0x59   :  { %5174 = vmatpush1.bf16.msra.mxu0 %v8400_v26  ;;  %5390 = vmatprep.subr.bf16.mxu1 %v8411_v29  ;;  %v8493_v26 = vld [vmem:[%s12489_s1 + $0xb60] ss:$28 sps:$4 sm:$0xff]  }
  0x5a   :  { %5175 = vmatprep.subr.bf16.mxu0 %v8408_v28  ;;  %v8501_v28 = vld [vmem:[%s12489_s1 + $0xb9c] ss:$28 sps:$4 sm:$0xff]   ;;  %v8504_v29 = vld [vmem:[%s12489_s1 + $0x4a4] ss:$28 sps:$4 sm:$0xff]  }
  0x5c   :  { %5391 = vmatpush1.bf16.msra.mxu1 %v8409_v31  ;;  %v8502_v31 = vld [vmem:[%s12489_s1 + $0x4a0] ss:$28 sps:$4 sm:$0xff]  }
  0x5d   :  { %5176 = vmatpush1.bf16.msra.mxu0 %v8406_v30  ;;  %5392 = vmatprep.subr.bf16.mxu1 %v8417_v34  ;;  %v8499_v30 = vld [vmem:[%s12489_s1 + $0xb98] ss:$28 sps:$4 sm:$0xff]  }
  0x5e   :  { %5177 = vmatprep.subr.bf16.mxu0 %v8414_v32  ;;  %v8507_v32 = vld [vmem:[%s12489_s1 + $0xbd4] ss:$28 sps:$4 sm:$0xff]   ;;  %v8510_v34 = vld [vmem:[%s12489_s1 + $0x4dc] ss:$28 sps:$4 sm:$0xff]  }
  0x60   :  { %5393 = vmatpush1.bf16.msra.mxu1 %v8415_v36  ;;  %v8508_v36 = vld [vmem:[%s12489_s1 + $0x4d8] ss:$28 sps:$4 sm:$0xff]  }
  0x61   :  { %5178 = vmatpush1.bf16.msra.mxu0 %v8412_v35  ;;  %5394 = vmatprep.subr.bf16.mxu1 %v8423_v38  ;;  %v8505_v35 = vld [vmem:[%s12489_s1 + $0xbd0] ss:$28 sps:$4 sm:$0xff]  }
  0x62   :  { %5179 = vmatprep.subr.bf16.mxu0 %v8420_v37  ;;  %v8513_v37 = vld [vmem:[%s12489_s1 + $0xc0c] ss:$28 sps:$4 sm:$0xff]   ;;  %v8516_v38 = vld [vmem:[%s12489_s1 + $0x514] ss:$28 sps:$4 sm:$0xff]  }
  0x64   :  { %5395 = vmatpush1.bf16.msra.mxu1 %v8421_v40  ;;  %v8514_v40 = vld [vmem:[%s12489_s1 + $0x510] ss:$28 sps:$4 sm:$0xff]  }
  0x65   :  { %5180 = vmatpush1.bf16.msra.mxu0 %v8418_v39  ;;  %5396 = vmatprep.subr.bf16.mxu1 %v8429_v42  ;;  %v8511_v39 = vld [vmem:[%s12489_s1 + $0xc08] ss:$28 sps:$4 sm:$0xff]  }
  0x66   :  { %5181 = vmatprep.subr.bf16.mxu0 %v8426_v41  ;;  %v8519_v41 = vld [vmem:[%s12489_s1 + $0xc44] ss:$28 sps:$4 sm:$0xff]   ;;  %v8522_v42 = vld [vmem:[%s12489_s1 + $0x54c] ss:$28 sps:$4 sm:$0xff]  }
  0x68   :  { %5397 = vmatpush1.bf16.msra.mxu1 %v8427_v44  ;;  %v8520_v44 = vld [vmem:[%s12489_s1 + $0x548] ss:$28 sps:$4 sm:$0xff]  }
  0x69   :  { %5182 = vmatpush1.bf16.msra.mxu0 %v8424_v43  ;;  %5398 = vmatprep.subr.bf16.mxu1 %v8435_v46  ;;  %v8517_v43 = vld [vmem:[%s12489_s1 + $0xc40] ss:$28 sps:$4 sm:$0xff]  }
  0x6a   :  { %5183 = vmatprep.subr.bf16.mxu0 %v8432_v45  ;;  %v8525_v45 = vld [vmem:[%s12489_s1 + $0xc7c] ss:$28 sps:$4 sm:$0xff]   ;;  %v8528_v46 = vld [vmem:[%s12489_s1 + $0x584] ss:$28 sps:$4 sm:$0xff]  }
  0x6c   :  { %5399 = vmatpush1.bf16.msra.mxu1 %v8433_v48  ;;  %v8526_v48 = vld [vmem:[%s12489_s1 + $0x580] ss:$28 sps:$4 sm:$0xff]  }
  0x6d   :  { %5184 = vmatpush1.bf16.msra.mxu0 %v8430_v47  ;;  %5400 = vmatprep.subr.bf16.mxu1 %v8441_v51  ;;  %v8523_v47 = vld [vmem:[%s12489_s1 + $0xc78] ss:$28 sps:$4 sm:$0xff]  }
  0x6e   :  { %5185 = vmatprep.subr.bf16.mxu0 %v8438_v50  ;;  %v8531_v50 = vld [vmem:[%s12489_s1 + $0xcb4] ss:$28 sps:$4 sm:$0xff]   ;;  %v8534_v51 = vld [vmem:[%s12489_s1 + $0x5bc] ss:$28 sps:$4 sm:$0xff]  }
  0x70   :  { %5401 = vmatpush1.bf16.msra.mxu1 %v8439_v53  ;;  %v8532_v53 = vld [vmem:[%s12489_s1 + $0x5b8] ss:$28 sps:$4 sm:$0xff]  }
  0x71   :  { %5186 = vmatpush1.bf16.msra.mxu0 %v8436_v52  ;;  %5402 = vmatprep.subr.bf16.mxu1 %v8447_v55  ;;  %v8529_v52 = vld [vmem:[%s12489_s1 + $0xcb0] ss:$28 sps:$4 sm:$0xff]  }
  0x72   :  { %5187 = vmatprep.subr.bf16.mxu0 %v8444_v54  ;;  %v8537_v54 = vld [vmem:[%s12489_s1 + $0xcec] ss:$28 sps:$4 sm:$0xff]   ;;  %v8540_v55 = vld [vmem:[%s12489_s1 + $0x5f4] ss:$28 sps:$4 sm:$0xff]  }
  0x74   :  { %5403 = vmatpush1.bf16.msra.mxu1 %v8445_v57  ;;  %v8538_v57 = vld [vmem:[%s12489_s1 + $0x5f0] ss:$28 sps:$4 sm:$0xff]  }
  0x75   :  { %5188 = vmatpush1.bf16.msra.mxu0 %v8442_v56  ;;  %5404 = vmatprep.subr.bf16.mxu1 %v8453_v59  ;;  %v8535_v56 = vld [vmem:[%s12489_s1 + $0xce8] ss:$28 sps:$4 sm:$0xff]  }
  0x76   :  { %5189 = vmatprep.subr.bf16.mxu0 %v8450_v58  ;;  %v8543_v58 = vld [vmem:[%s12489_s1 + $0xd24] ss:$28 sps:$4 sm:$0xff]   ;;  %v8546_v59 = vld [vmem:[%s12489_s1 + $0x62c] ss:$28 sps:$4 sm:$0xff]  }
  0x78   :  { %5405 = vmatpush1.bf16.msra.mxu1 %v8451_v61  ;;  %v8544_v61 = vld [vmem:[%s12489_s1 + $0x628] ss:$28 sps:$4 sm:$0xff]  }
  0x79   :  { %5190 = vmatpush1.bf16.msra.mxu0 %v8448_v60  ;;  %5406 = vmatprep.subr.bf16.mxu1 %v8459_v63  ;;  %v8541_v60 = vld [vmem:[%s12489_s1 + $0xd20] ss:$28 sps:$4 sm:$0xff]  }
  0x7a   :  { %5191 = vmatprep.subr.bf16.mxu0 %v8456_v62  ;;  %v8549_v62 = vld [vmem:[%s12489_s1 + $0xd5c] ss:$28 sps:$4 sm:$0xff]   ;;  %v8552_v63 = vld [vmem:[%s12489_s1 + $0x664] ss:$28 sps:$4 sm:$0xff]  }
  0x7c   :  { %5407 = vmatpush1.bf16.msra.mxu1 %v8457_v1  ;;  %v8550_v1 = vld [vmem:[%s12489_s1 + $0x660] ss:$28 sps:$4 sm:$0xff]  }
  0x7d   :  { %5192 = vmatpush1.bf16.msra.mxu0 %v8454_v0  ;;  %5408 = vmatprep.subr.bf16.mxu1 %v8465_v3  ;;  %v8547_v0 = vld [vmem:[%s12489_s1 + $0xd58] ss:$28 sps:$4 sm:$0xff]  }
  0x7e   :  { %5193 = vmatprep.subr.bf16.mxu0 %v8462_v2  ;;  %v8555_v2 = vld [vmem:[%s12489_s1 + $0xd94] ss:$28 sps:$4 sm:$0xff]   ;;  %v8558_v3 = vld [vmem:[%s12489_s1 + $0x69c] ss:$28 sps:$4 sm:$0xff]  }
  0x80   :  { %5409 = vmatpush1.bf16.msra.mxu1 %v8463_v5  ;;  %v8556_v5 = vld [vmem:[%s12489_s1 + $0x698] ss:$28 sps:$4 sm:$0xff]  }
  0x81   :  { %5194 = vmatpush1.bf16.msra.mxu0 %v8460_v4  ;;  %5421 = vmatprep.subr.bf16.mxu1 %v8473_v9  ;;  %v8553_v4 = vld [vmem:[%s12489_s1 + $0xd90] ss:$28 sps:$4 sm:$0xff]  }
  0x82   :  { %5206 = vmatprep.subr.bf16.mxu0 %v8470_v8  ;;  %v8561_v8 = vld [vmem:[%s12489_s1 + $0xdcc] ss:$28 sps:$4 sm:$0xff]   ;;  %v8564_v9 = vld [vmem:[%s12489_s1 + $0x6d4] ss:$28 sps:$4 sm:$0xff]  }
  0x83   :  { %5411 = vmatmul.mubr.bf16.vlgmr.msra.gmra.mrb[4].mxu1 %v9768_v6  ;;  %v8486_v6 = vld [vmem:[%s12489_s1 + $0x3fc] ss:$28 sps:$4 sm:$0xff]  }
  0x84   :  { %5196 = vmatmul.mubr.bf16.vlgmr.msra.gmra.mrb[0].mxu0 %v9978_v12  ;;  %5422 = vmatpush1.bf16.msra.mxu1 %v8471_v11  ;;  %v8562_v11 = vld [vmem:[%s12489_s1 + $0x6d0] ss:$28 sps:$4 sm:$0xff]  }
  0x85   :  { %5207 = vmatpush1.bf16.msra.mxu0 %v8468_v10  ;;  %5423 = vmatprep.subr.bf16.mxu1 %v8480_v14  ;;  %v8559_v10 = vld [vmem:[%s12489_s1 + $0xdc8] ss:$28 sps:$4 sm:$0xff]  }
  0x86   :  { %5208 = vmatprep.subr.bf16.mxu0 %v8477_v13  ;;  %5238 = vmatprep.mubr.bf16.mxu0 %v10000_v18  ;;  %v8569_v13 = vld [vmem:[%s12489_s1 + $0xe04] ss:$28 sps:$4 sm:$0xff]   ;;  %v8572_v14 = vld [vmem:[%s12489_s1 + $0x70c] ss:$28 sps:$4 sm:$0xff]  }
  0x87   :  { %5453 = vmatprep.mubr.bf16.mxu1 %v9702_v49  ;;  %v8492_v49 = vld [vmem:[%s12489_s1 + $0x434] ss:$28 sps:$4 sm:$0xff]  }
  0x88   :  { %5424 = vmatpush1.bf16.msra.mxu1 %v8478_v16  ;;  %v8570_v16 = vld [vmem:[%s12489_s1 + $0x708] ss:$28 sps:$4 sm:$0xff]  }
  0x89   :  { %5209 = vmatpush1.bf16.msra.mxu0 %v8475_v15  ;;  %5425 = vmatprep.subr.bf16.mxu1 %v8486_v6  ;;  %v8567_v15 = vld [vmem:[%s12489_s1 + $0xe00] ss:$28 sps:$4 sm:$0xff]  }
  0x8a   :  { %5210 = vmatprep.subr.bf16.mxu0 %v8483_v17  ;;  %v10184_v17 = vld [vmem:[%s12488_s0 + $0x18] ss:$56 sps:$4 sm:$0xff]  }
  0x8b   :  { %v8576_v6 = vld [vmem:[%s12489_s1 + $0xe3c] ss:$28 sps:$4 sm:$0xff]  }
  0x8c   :  { %5426 = vmatpush1.bf16.msra.mxu1 %v8484_v20  ;;  %v10195_v20 = vld [vmem:[%s12488_s0 + $0x24] ss:$56 sps:$4 sm:$0xff]  }
  0x8d   :  { %5211 = vmatpush1.bf16.msra.mxu0 %v8481_v19  ;;  %5427 = vmatprep.subr.bf16.mxu1 %v8492_v49  ;;  %v8579_v19 = vld [vmem:[%s12489_s1 + $0x744] ss:$28 sps:$4 sm:$0xff]  }
  0x8e   :  { %5212 = vmatprep.subr.bf16.mxu0 %v8489_v21  ;;  %v8574_v21 = vld [vmem:[%s12489_s1 + $0xe38] ss:$28 sps:$4 sm:$0xff]   ;;  %v8577_v49 = vld [vmem:[%s12489_s1 + $0x740] ss:$28 sps:$4 sm:$0xff]  }
  0x90   :  { %5428 = vmatpush1.bf16.msra.mxu1 %v8490_v23  ;;  %v8580_v23 = vld [vmem:[%s12489_s1 + $0xe70] ss:$28 sps:$4 sm:$0xff]  }
  0x91   :  { %5213 = vmatpush1.bf16.msra.mxu0 %v8487_v22  ;;  %5429 = vmatprep.subr.bf16.mxu1 %v8498_v25  ;;  %v8582_v22 = vld [vmem:[%s12489_s1 + $0xe74] ss:$28 sps:$4 sm:$0xff]   ;;  %v8588_v25 = vld [vmem:[%s12489_s1 + $0xeac] ss:$28 sps:$4 sm:$0xff]  }
  0x92   :  { %5214 = vmatprep.subr.bf16.mxu0 %v8495_v24  ;;  %v8583_v24 = vld [vmem:[%s12489_s1 + $0x778] ss:$28 sps:$4 sm:$0xff]  }
  0x94   :  { %5430 = vmatpush1.bf16.msra.mxu1 %v8496_v27  ;;  %v8589_v27 = vld [vmem:[%s12489_s1 + $0x7b0] ss:$28 sps:$4 sm:$0xff]  }
  0x95   :  { %5215 = vmatpush1.bf16.msra.mxu0 %v8493_v26  ;;  %5431 = vmatprep.subr.bf16.mxu1 %v8504_v29  ;;  %v8586_v26 = vld [vmem:[%s12489_s1 + $0xea8] ss:$28 sps:$4 sm:$0xff]  }
  0x96   :  { %5216 = vmatprep.subr.bf16.mxu0 %v8501_v28  ;;  %v8594_v28 = vld [vmem:[%s12489_s1 + $0xee4] ss:$28 sps:$4 sm:$0xff]   ;;  %v8597_v29 = vld [vmem:[%s12489_s1 + $0x7ec] ss:$28 sps:$4 sm:$0xff]  }
  0x98   :  { %5432 = vmatpush1.bf16.msra.mxu1 %v8502_v31  ;;  %v8595_v31 = vld [vmem:[%s12489_s1 + $0x7e8] ss:$28 sps:$4 sm:$0xff]  }
  0x99   :  { %5217 = vmatpush1.bf16.msra.mxu0 %v8499_v30  ;;  %5433 = vmatprep.subr.bf16.mxu1 %v8510_v34  ;;  %v8592_v30 = vld [vmem:[%s12489_s1 + $0xee0] ss:$28 sps:$4 sm:$0xff]  }
  0x9a   :  { %5218 = vmatprep.subr.bf16.mxu0 %v8507_v32  ;;  %v8600_v32 = vld [vmem:[%s12489_s1 + $0xf1c] ss:$28 sps:$4 sm:$0xff]   ;;  %v8603_v34 = vld [vmem:[%s12489_s1 + $0x824] ss:$28 sps:$4 sm:$0xff]  }
  0x9c   :  { %5434 = vmatpush1.bf16.msra.mxu1 %v8508_v36  ;;  %v8601_v36 = vld [vmem:[%s12489_s1 + $0x820] ss:$28 sps:$4 sm:$0xff]  }
  0x9d   :  { %5219 = vmatpush1.bf16.msra.mxu0 %v8505_v35  ;;  %5435 = vmatprep.subr.bf16.mxu1 %v8516_v38  ;;  %v8598_v35 = vld [vmem:[%s12489_s1 + $0xf18] ss:$28 sps:$4 sm:$0xff]  }
  0x9e   :  { %5220 = vmatprep.subr.bf16.mxu0 %v8513_v37  ;;  %v8606_v37 = vld [vmem:[%s12489_s1 + $0xf54] ss:$28 sps:$4 sm:$0xff]   ;;  %v8609_v38 = vld [vmem:[%s12489_s1 + $0x85c] ss:$28 sps:$4 sm:$0xff]  }
  0xa0   :  { %5436 = vmatpush1.bf16.msra.mxu1 %v8514_v40  ;;  %v8607_v40 = vld [vmem:[%s12489_s1 + $0x858] ss:$28 sps:$4 sm:$0xff]  }
  0xa1   :  { %5221 = vmatpush1.bf16.msra.mxu0 %v8511_v39  ;;  %5437 = vmatprep.subr.bf16.mxu1 %v8522_v42  ;;  %v8604_v39 = vld [vmem:[%s12489_s1 + $0xf50] ss:$28 sps:$4 sm:$0xff]  }
  0xa2   :  { %5222 = vmatprep.subr.bf16.mxu0 %v8519_v41  ;;  %v8612_v41 = vld [vmem:[%s12489_s1 + $0xf8c] ss:$28 sps:$4 sm:$0xff]   ;;  %v8615_v42 = vld [vmem:[%s12489_s1 + $0x894] ss:$28 sps:$4 sm:$0xff]  }
  0xa4   :  { %5438 = vmatpush1.bf16.msra.mxu1 %v8520_v44  ;;  %v8613_v44 = vld [vmem:[%s12489_s1 + $0x890] ss:$28 sps:$4 sm:$0xff]  }
  0xa5   :  { %5223 = vmatpush1.bf16.msra.mxu0 %v8517_v43  ;;  %5439 = vmatprep.subr.bf16.mxu1 %v8528_v46  ;;  %v8610_v43 = vld [vmem:[%s12489_s1 + $0xf88] ss:$28 sps:$4 sm:$0xff]  }
  0xa6   :  { %5224 = vmatprep.subr.bf16.mxu0 %v8525_v45  ;;  %v8618_v45 = vld [vmem:[%s12489_s1 + $0xfc4] ss:$28 sps:$4 sm:$0xff]   ;;  %v8621_v46 = vld [vmem:[%s12489_s1 + $0x8cc] ss:$28 sps:$4 sm:$0xff]  }
  0xa8   :  { %5440 = vmatpush1.bf16.msra.mxu1 %v8526_v48  ;;  %v8619_v48 = vld [vmem:[%s12489_s1 + $0x8c8] ss:$28 sps:$4 sm:$0xff]  }
  0xa9   :  { %5225 = vmatpush1.bf16.msra.mxu0 %v8523_v47  ;;  %5441 = vmatprep.subr.bf16.mxu1 %v8534_v51  ;;  %v8616_v47 = vld [vmem:[%s12489_s1 + $0xfc0] ss:$28 sps:$4 sm:$0xff]  }
  0xaa   :  { %5226 = vmatprep.subr.bf16.mxu0 %v8531_v50  ;;  %v8624_v50 = vld [vmem:[%s12489_s1 + $0xffc] ss:$28 sps:$4 sm:$0xff]   ;;  %v8627_v51 = vld [vmem:[%s12489_s1 + $0x904] ss:$28 sps:$4 sm:$0xff]  }
  0xac   :  { %5442 = vmatpush1.bf16.msra.mxu1 %v8532_v53  ;;  %v8625_v53 = vld [vmem:[%s12489_s1 + $0x900] ss:$28 sps:$4 sm:$0xff]  }
  0xad   :  { %5227 = vmatpush1.bf16.msra.mxu0 %v8529_v52  ;;  %5443 = vmatprep.subr.bf16.mxu1 %v8540_v55  ;;  %v8622_v52 = vld [vmem:[%s12489_s1 + $0xff8] ss:$28 sps:$4 sm:$0xff]  }
  0xae   :  { %5228 = vmatprep.subr.bf16.mxu0 %v8537_v54  ;;  %v8630_v54 = vld [vmem:[%s12489_s1 + $0x1034] ss:$28 sps:$4 sm:$0xff]   ;;  %v8633_v55 = vld [vmem:[%s12489_s1 + $0x93c] ss:$28 sps:$4 sm:$0xff]  }
  0xb0   :  { %5444 = vmatpush1.bf16.msra.mxu1 %v8538_v57  ;;  %v8631_v57 = vld [vmem:[%s12489_s1 + $0x938] ss:$28 sps:$4 sm:$0xff]  }
  0xb1   :  { %5229 = vmatpush1.bf16.msra.mxu0 %v8535_v56  ;;  %5445 = vmatprep.subr.bf16.mxu1 %v8546_v59  ;;  %v8628_v56 = vld [vmem:[%s12489_s1 + $0x1030] ss:$28 sps:$4 sm:$0xff]  }
  0xb2   :  { %5230 = vmatprep.subr.bf16.mxu0 %v8543_v58  ;;  %v8636_v58 = vld [vmem:[%s12489_s1 + $0x106c] ss:$28 sps:$4 sm:$0xff]   ;;  %v8639_v59 = vld [vmem:[%s12489_s1 + $0x974] ss:$28 sps:$4 sm:$0xff]  }
  0xb4   :  { %5446 = vmatpush1.bf16.msra.mxu1 %v8544_v61  ;;  %v8637_v61 = vld [vmem:[%s12489_s1 + $0x970] ss:$28 sps:$4 sm:$0xff]  }
  0xb5   :  { %5231 = vmatpush1.bf16.msra.mxu0 %v8541_v60  ;;  %5447 = vmatprep.subr.bf16.mxu1 %v8552_v63  ;;  %v8634_v60 = vld [vmem:[%s12489_s1 + $0x1068] ss:$28 sps:$4 sm:$0xff]  }
  0xb6   :  { %5232 = vmatprep.subr.bf16.mxu0 %v8549_v62  ;;  %v8642_v62 = vld [vmem:[%s12489_s1 + $0x10a4] ss:$28 sps:$4 sm:$0xff]   ;;  %v8645_v63 = vld [vmem:[%s12489_s1 + $0x9ac] ss:$28 sps:$4 sm:$0xff]  }
  0xb8   :  { %5448 = vmatpush1.bf16.msra.mxu1 %v8550_v1  ;;  %v8643_v1 = vld [vmem:[%s12489_s1 + $0x9a8] ss:$28 sps:$4 sm:$0xff]  }
  0xb9   :  { %5233 = vmatpush1.bf16.msra.mxu0 %v8547_v0  ;;  %5449 = vmatprep.subr.bf16.mxu1 %v8558_v3  ;;  %v8640_v0 = vld [vmem:[%s12489_s1 + $0x10a0] ss:$28 sps:$4 sm:$0xff]  }
  0xba   :  { %5234 = vmatprep.subr.bf16.mxu0 %v8555_v2  ;;  %v8648_v2 = vld [vmem:[%s12489_s1 + $0x10dc] ss:$28 sps:$4 sm:$0xff]   ;;  %v8651_v3 = vld [vmem:[%s12489_s1 + $0x9e4] ss:$28 sps:$4 sm:$0xff]  }
  0xbc   :  { %5450 = vmatpush1.bf16.msra.mxu1 %v8556_v5  ;;  %v8649_v5 = vld [vmem:[%s12489_s1 + $0x9e0] ss:$28 sps:$4 sm:$0xff]  }
  0xbd   :  { %5235 = vmatpush1.bf16.msra.mxu0 %v8553_v4  ;;  %5451 = vmatprep.subr.bf16.mxu1 %v8564_v9  ;;  %v8646_v4 = vld [vmem:[%s12489_s1 + $0x10d8] ss:$28 sps:$4 sm:$0xff]  }
  0xbe   :  { %5236 = vmatprep.subr.bf16.mxu0 %v8561_v8  ;;  %v8654_v8 = vld [vmem:[%s12489_s1 + $0x1114] ss:$28 sps:$4 sm:$0xff]   ;;  %v8657_v9 = vld [vmem:[%s12489_s1 + $0xa1c] ss:$28 sps:$4 sm:$0xff]  }
  0xc0   :  { %5452 = vmatpush1.bf16.msra.mxu1 %v8562_v11  ;;  %v8655_v11 = vld [vmem:[%s12489_s1 + $0xa18] ss:$28 sps:$4 sm:$0xff]  }
  0xc1   :  { %5237 = vmatpush1.bf16.msra.mxu0 %v8559_v10  ;;  %5464 = vmatprep.subr.bf16.mxu1 %v8572_v14  ;;  %v8652_v10 = vld [vmem:[%s12489_s1 + $0x1110] ss:$28 sps:$4 sm:$0xff]  }
  0xc2   :  { %5249 = vmatprep.subr.bf16.mxu0 %v8569_v13  ;;  %v8660_v13 = vld [vmem:[%s12489_s1 + $0x114c] ss:$28 sps:$4 sm:$0xff]   ;;  %v8663_v14 = vld [vmem:[%s12489_s1 + $0xa54] ss:$28 sps:$4 sm:$0xff]  }
  0xc3   :  { %5454 = vmatmul.mubr.bf16.vlgmr.msra.gmra.mrb[4].mxu1 %v9773_v7  ;;  %v8585_v7 = vld [vmem:[%s12489_s1 + $0x77c] ss:$28 sps:$4 sm:$0xff]  }
  0xc4   :  { %5239 = vmatmul.mubr.bf16.vlgmr.msra.gmra.mrb[0].mxu0 %v10184_v17  ;;  %5465 = vmatpush1.bf16.msra.mxu1 %v8570_v16  ;;  %v8661_v16 = vld [vmem:[%s12489_s1 + $0xa50] ss:$28 sps:$4 sm:$0xff]  }
  0xc5   :  { %5250 = vmatpush1.bf16.msra.mxu0 %v8567_v15  ;;  %5466 = vmatprep.subr.bf16.mxu1 %v8579_v19  ;;  %v8658_v15 = vld [vmem:[%s12489_s1 + $0x1148] ss:$28 sps:$4 sm:$0xff]  }
  0xc6   :  { %5251 = vmatprep.subr.bf16.mxu0 %v8576_v6  ;;  %5281 = vmatprep.mubr.bf16.mxu0 %v10195_v20  ;;  %v8668_v6 = vld [vmem:[%s12489_s1 + $0x1184] ss:$28 sps:$4 sm:$0xff]   ;;  %v8671_v19 = vld [vmem:[%s12489_s1 + $0xa8c] ss:$28 sps:$4 sm:$0xff]  }
  0xc7   :  { %5496 = vmatprep.mubr.bf16.mxu1 %v9855_v33  ;;  %v8591_v33 = vld [vmem:[%s12489_s1 + $0x7b4] ss:$28 sps:$4 sm:$0xff]  }
  0xc8   :  { %5467 = vmatpush1.bf16.msra.mxu1 %v8577_v49  ;;  %v8666_v49 = vld [vmem:[%s12489_s1 + $0x1180] ss:$28 sps:$4 sm:$0xff]  }
  0xc9   :  { %5252 = vmatpush1.bf16.msra.mxu0 %v8574_v21  ;;  %5468 = vmatprep.subr.bf16.mxu1 %v8585_v7  ;;  %v8672_v21 = vld [vmem:[%s12488_s0 + $0x20] ss:$56 sps:$4 sm:$0xff]  }
  0xca   :  { %5253 = vmatprep.subr.bf16.mxu0 %v8582_v22  ;;  %v8669_v22 = vld [vmem:[%s12489_s1 + $0xa88] ss:$28 sps:$4 sm:$0xff]   ;;  %v8675_v7 = vld [vmem:[%s12489_s1 + $0x11bc] ss:$28 sps:$4 sm:$0xff]  }
  0xcc   :  { %5469 = vmatpush1.bf16.msra.mxu1 %v8583_v24  ;;  %v8763_v24 = vld [vmem:[%s12488_s0 + $0x2c] ss:$56 sps:$4 sm:$0xff]  }
  0xcd   :  { %5254 = vmatpush1.bf16.msra.mxu0 %v8580_v23  ;;  %5470 = vmatprep.subr.bf16.mxu1 %v8591_v33  ;;  %v8678_v23 = vld [vmem:[%s12489_s1 + $0xac4] ss:$28 sps:$4 sm:$0xff]  }
  0xce   :  { %5255 = vmatprep.subr.bf16.mxu0 %v8588_v25  ;;  %v8673_v25 = vld [vmem:[%s12489_s1 + $0x11b8] ss:$28 sps:$4 sm:$0xff]   ;;  %v8676_v33 = vld [vmem:[%s12489_s1 + $0xac0] ss:$28 sps:$4 sm:$0xff]  }
  0xd0   :  { %5471 = vmatpush1.bf16.msra.mxu1 %v8589_v27  ;;  %v8679_v27 = vld [vmem:[%s12489_s1 + $0x11f0] ss:$28 sps:$4 sm:$0xff]  }
  0xd1   :  { %5256 = vmatpush1.bf16.msra.mxu0 %v8586_v26  ;;  %5472 = vmatprep.subr.bf16.mxu1 %v8597_v29  ;;  %v8681_v26 = vld [vmem:[%s12489_s1 + $0x11f4] ss:$28 sps:$4 sm:$0xff]   ;;  %v8687_v29 = vld [vmem:[%s12489_s1 + $0x122c] ss:$28 sps:$4 sm:$0xff]  }
  0xd2   :  { %5257 = vmatprep.subr.bf16.mxu0 %v8594_v28  ;;  %v8682_v28 = vld [vmem:[%s12489_s1 + $0xaf8] ss:$28 sps:$4 sm:$0xff]  }
  0xd4   :  { %5473 = vmatpush1.bf16.msra.mxu1 %v8595_v31  ;;  %v8688_v31 = vld [vmem:[%s12489_s1 + $0xb30] ss:$28 sps:$4 sm:$0xff]  }
  0xd5   :  { %5258 = vmatpush1.bf16.msra.mxu0 %v8592_v30  ;;  %5474 = vmatprep.subr.bf16.mxu1 %v8603_v34  ;;  %v8685_v30 = vld [vmem:[%s12489_s1 + $0x1228] ss:$28 sps:$4 sm:$0xff]  }
  0xd6   :  { %5259 = vmatprep.subr.bf16.mxu0 %v8600_v32  ;;  %v8693_v32 = vld [vmem:[%s12489_s1 + $0x1264] ss:$28 sps:$4 sm:$0xff]   ;;  %v8696_v34 = vld [vmem:[%s12489_s1 + $0xb6c] ss:$28 sps:$4 sm:$0xff]  }
  0xd8   :  { %5475 = vmatpush1.bf16.msra.mxu1 %v8601_v36  ;;  %v8694_v36 = vld [vmem:[%s12489_s1 + $0xb68] ss:$28 sps:$4 sm:$0xff]  }
  0xd9   :  { %5260 = vmatpush1.bf16.msra.mxu0 %v8598_v35  ;;  %5476 = vmatprep.subr.bf16.mxu1 %v8609_v38  ;;  %v8691_v35 = vld [vmem:[%s12489_s1 + $0x1260] ss:$28 sps:$4 sm:$0xff]  }
  0xda   :  { %5261 = vmatprep.subr.bf16.mxu0 %v8606_v37  ;;  %v8699_v37 = vld [vmem:[%s12489_s1 + $0x129c] ss:$28 sps:$4 sm:$0xff]   ;;  %v8702_v38 = vld [vmem:[%s12489_s1 + $0xba4] ss:$28 sps:$4 sm:$0xff]  }
  0xdc   :  { %5477 = vmatpush1.bf16.msra.mxu1 %v8607_v40  ;;  %v8700_v40 = vld [vmem:[%s12489_s1 + $0xba0] ss:$28 sps:$4 sm:$0xff]  }
  0xdd   :  { %5262 = vmatpush1.bf16.msra.mxu0 %v8604_v39  ;;  %5478 = vmatprep.subr.bf16.mxu1 %v8615_v42  ;;  %v8697_v39 = vld [vmem:[%s12489_s1 + $0x1298] ss:$28 sps:$4 sm:$0xff]  }
  0xde   :  { %5263 = vmatprep.subr.bf16.mxu0 %v8612_v41  ;;  %v8705_v41 = vld [vmem:[%s12489_s1 + $0x12d4] ss:$28 sps:$4 sm:$0xff]   ;;  %v8708_v42 = vld [vmem:[%s12489_s1 + $0xbdc] ss:$28 sps:$4 sm:$0xff]  }
  0xe0   :  { %5479 = vmatpush1.bf16.msra.mxu1 %v8613_v44  ;;  %v8703_v44 = vld [vmem:[%s12489_s1 + $0x12d0] ss:$28 sps:$4 sm:$0xff]  }
  0xe1   :  { %5264 = vmatpush1.bf16.msra.mxu0 %v8610_v43  ;;  %5480 = vmatprep.subr.bf16.mxu1 %v8621_v46  ;;  %v8706_v46 = vld [vmem:[%s12489_s1 + $0xbd8] ss:$28 sps:$4 sm:$0xff]  }
  0xe2   :  { %5265 = vmatprep.subr.bf16.mxu0 %v8618_v45 }
  0xe4   :  { %5481 = vmatpush1.bf16.msra.mxu1 %v8619_v48 }
  0xe5   :  { %5266 = vmatpush1.bf16.msra.mxu0 %v8616_v47  ;;  %5482 = vmatprep.subr.bf16.mxu1 %v8627_v51  ;;  %v8711_v47 = vld [vmem:[%s12489_s1 + $0x130c] ss:$28 sps:$4 sm:$0xff]  }
  0xe6   :  { %5267 = vmatprep.subr.bf16.mxu0 %v8624_v50  ;;  %v8714_v50 = vld [vmem:[%s12489_s1 + $0xc14] ss:$28 sps:$4 sm:$0xff]  }
  0xe8   :  { %5483 = vmatpush1.bf16.msra.mxu1 %v8625_v53  ;;  %v8712_v53 = vld [vmem:[%s12489_s1 + $0xc10] ss:$28 sps:$4 sm:$0xff]  }
  0xe9   :  { %5268 = vmatpush1.bf16.msra.mxu0 %v8622_v52  ;;  %5484 = vmatprep.subr.bf16.mxu1 %v8633_v55  ;;  %v8709_v52 = vld [vmem:[%s12489_s1 + $0x1308] ss:$28 sps:$4 sm:$0xff]  }
  0xea   :  { %5269 = vmatprep.subr.bf16.mxu0 %v8630_v54  ;;  %v8717_v54 = vld [vmem:[%s12489_s1 + $0x1344] ss:$28 sps:$4 sm:$0xff]   ;;  %v8720_v55 = vld [vmem:[%s12489_s1 + $0xc4c] ss:$28 sps:$4 sm:$0xff]  }
  0xec   :  { %5485 = vmatpush1.bf16.msra.mxu1 %v8631_v57  ;;  %v8718_v57 = vld [vmem:[%s12489_s1 + $0xc48] ss:$28 sps:$4 sm:$0xff]  }
  0xed   :  { %5270 = vmatpush1.bf16.msra.mxu0 %v8628_v56  ;;  %5486 = vmatprep.subr.bf16.mxu1 %v8639_v59  ;;  %v8715_v56 = vld [vmem:[%s12489_s1 + $0x1340] ss:$28 sps:$4 sm:$0xff]  }
  0xee   :  { %5271 = vmatprep.subr.bf16.mxu0 %v8636_v58  ;;  %v8723_v58 = vld [vmem:[%s12489_s1 + $0x137c] ss:$28 sps:$4 sm:$0xff]   ;;  %v8726_v59 = vld [vmem:[%s12489_s1 + $0xc84] ss:$28 sps:$4 sm:$0xff]  }
  0xf0   :  { %5487 = vmatpush1.bf16.msra.mxu1 %v8637_v61  ;;  %v8724_v61 = vld [vmem:[%s12489_s1 + $0xc80] ss:$28 sps:$4 sm:$0xff]  }
  0xf1   :  { %5272 = vmatpush1.bf16.msra.mxu0 %v8634_v60  ;;  %5488 = vmatprep.subr.bf16.mxu1 %v8645_v63  ;;  %v8721_v60 = vld [vmem:[%s12489_s1 + $0x1378] ss:$28 sps:$4 sm:$0xff]  }
  0xf2   :  { %5273 = vmatprep.subr.bf16.mxu0 %v8642_v62  ;;  %v8729_v62 = vld [vmem:[%s12489_s1 + $0x13b4] ss:$28 sps:$4 sm:$0xff]   ;;  %v8732_v63 = vld [vmem:[%s12489_s1 + $0xcbc] ss:$28 sps:$4 sm:$0xff]  }
  0xf4   :  { %5489 = vmatpush1.bf16.msra.mxu1 %v8643_v1  ;;  %v8730_v1 = vld [vmem:[%s12489_s1 + $0xcb8] ss:$28 sps:$4 sm:$0xff]  }
  0xf5   :  { %5274 = vmatpush1.bf16.msra.mxu0 %v8640_v0  ;;  %5490 = vmatprep.subr.bf16.mxu1 %v8651_v3  ;;  %v8727_v0 = vld [vmem:[%s12489_s1 + $0x13b0] ss:$28 sps:$4 sm:$0xff]  }
  0xf6   :  { %5275 = vmatprep.subr.bf16.mxu0 %v8648_v2  ;;  %v8735_v2 = vld [vmem:[%s12489_s1 + $0x13ec] ss:$28 sps:$4 sm:$0xff]   ;;  %v8738_v3 = vld [vmem:[%s12489_s1 + $0xcf4] ss:$28 sps:$4 sm:$0xff]  }
  0xf8   :  { %5491 = vmatpush1.bf16.msra.mxu1 %v8649_v5  ;;  %v8736_v5 = vld [vmem:[%s12489_s1 + $0xcf0] ss:$28 sps:$4 sm:$0xff]  }
  0xf9   :  { %5276 = vmatpush1.bf16.msra.mxu0 %v8646_v4  ;;  %5492 = vmatprep.subr.bf16.mxu1 %v8657_v9  ;;  %v8733_v4 = vld [vmem:[%s12489_s1 + $0x13e8] ss:$28 sps:$4 sm:$0xff]  }
  0xfa   :  { %5277 = vmatprep.subr.bf16.mxu0 %v8654_v8  ;;  %v8741_v8 = vld [vmem:[%s12489_s1 + $0x1424] ss:$28 sps:$4 sm:$0xff]   ;;  %v8744_v9 = vld [vmem:[%s12489_s1 + $0xd2c] ss:$28 sps:$4 sm:$0xff]  }
  0xfc   :  { %5493 = vmatpush1.bf16.msra.mxu1 %v8655_v11  ;;  %v8742_v11 = vld [vmem:[%s12489_s1 + $0xd28] ss:$28 sps:$4 sm:$0xff]  }
  0xfd   :  { %5278 = vmatpush1.bf16.msra.mxu0 %v8652_v10  ;;  %5494 = vmatprep.subr.bf16.mxu1 %v8663_v14  ;;  %v8739_v10 = vld [vmem:[%s12489_s1 + $0x1420] ss:$28 sps:$4 sm:$0xff]  }
  0xfe   :  { %5279 = vmatprep.subr.bf16.mxu0 %v8660_v13  ;;  %v8747_v13 = vld [vmem:[%s12489_s1 + $0x145c] ss:$28 sps:$4 sm:$0xff]   ;;  %v8750_v14 = vld [vmem:[%s12489_s1 + $0xd64] ss:$28 sps:$4 sm:$0xff]  }
 0x100   :  { %5495 = vmatpush1.bf16.msra.mxu1 %v8661_v16  ;;  %v8748_v16 = vld [vmem:[%s12489_s1 + $0xd60] ss:$28 sps:$4 sm:$0xff]  }
 0x101   :  { %5280 = vmatpush1.bf16.msra.mxu0 %v8658_v15  ;;  %5507 = vmatprep.subr.bf16.mxu1 %v8671_v19  ;;  %v8745_v15 = vld [vmem:[%s12489_s1 + $0x1458] ss:$28 sps:$4 sm:$0xff]  }
 0x102   :  { %5292 = vmatprep.subr.bf16.mxu0 %v8668_v6  ;;  %v8753_v6 = vld [vmem:[%s12489_s1 + $0x1494] ss:$28 sps:$4 sm:$0xff]   ;;  %v8756_v19 = vld [vmem:[%s12489_s1 + $0xd9c] ss:$28 sps:$4 sm:$0xff]  }
 0x103   :  { %5497 = vmatmul.mubr.bf16.vlgmr.msra.gmra.mrb[4].mxu1 %v9978_v12  ;;  %v8684_v12 = vld [vmem:[%s12489_s1 + $0xafc] ss:$28 sps:$4 sm:$0xff]  }
 0x104   :  { %5282 = vmatmul.mubr.bf16.vlgmr.msra.gmra.mrb[0].mxu0 %v8672_v21  ;;  %5508 = vmatpush1.bf16.msra.mxu1 %v8669_v22  ;;  %v8751_v21 = vld [vmem:[%s12489_s1 + $0x1490] ss:$28 sps:$4 sm:$0xff]  }
 0x105   :  { %5293 = vmatpush1.bf16.msra.mxu0 %v8666_v49  ;;  %5509 = vmatprep.subr.bf16.mxu1 %v8678_v23  ;;  %v8754_v49 = vld [vmem:[%s12489_s1 + $0xd98] ss:$28 sps:$4 sm:$0xff]   ;;  %v8759_v22 = vld [vmem:[%s12489_s1 + $0x14cc] ss:$28 sps:$4 sm:$0xff]  }
 0x106   :  { %5294 = vmatprep.subr.bf16.mxu0 %v8675_v7  ;;  %5324 = vmatprep.mubr.bf16.mxu0 %v8763_v24  ;;  %v8762_v7 = vld [vmem:[%s12489_s1 + $0xdd4] ss:$28 sps:$4 sm:$0xff]   ;;  %v8757_v23 = vld [vmem:[%s12489_s1 + $0x14c8] ss:$28 sps:$4 sm:$0xff]  }
 0x107   :  { %5539 = vmatprep.mubr.bf16.mxu1 %v10000_v18  ;;  %v8690_v18 = vld [vmem:[%s12489_s1 + $0xb34] ss:$28 sps:$4 sm:$0xff]  }
 0x108   :  { %5510 = vmatpush1.bf16.msra.mxu1 %v8676_v33  ;;  %v8760_v24 = vld [vmem:[%s12489_s1 + $0xdd0] ss:$28 sps:$4 sm:$0xff]  }
 0x109   :  { %5295 = vmatpush1.bf16.msra.mxu0 %v8673_v25  ;;  %5511 = vmatprep.subr.bf16.mxu1 %v8684_v12  ;;  %v8767_v25 = vld [vmem:[%s12489_s1 + $0x1504] ss:$28 sps:$4 sm:$0xff]   ;;  %v8770_v33 = vld [vmem:[%s12489_s1 + $0xe0c] ss:$28 sps:$4 sm:$0xff]  }
 0x10a   :  { %5296 = vmatprep.subr.bf16.mxu0 %v8681_v26  ;;  %v8771_v26 = vld [vmem:[%s12488_s0 + $0x28] ss:$56 sps:$4 sm:$0xff]  }
 0x10b   :  { %v8765_v12 = vld [vmem:[%s12489_s1 + $0x1500] ss:$28 sps:$4 sm:$0xff]  }
 0x10c   :  { %5512 = vmatpush1.bf16.msra.mxu1 %v8682_v28  ;;  %v8774_v28 = vld [vmem:[%s12489_s1 + $0x153c] ss:$28 sps:$4 sm:$0xff]  }
 0x10d   :  { %5297 = vmatpush1.bf16.msra.mxu0 %v8679_v27  ;;  %5513 = vmatprep.subr.bf16.mxu1 %v8690_v18  ;;  %v8768_v27 = vld [vmem:[%s12489_s1 + $0xe08] ss:$28 sps:$4 sm:$0xff]   ;;  %v8862_v18 = vld [vmem:[%s12488_s0 + $0x34] ss:$56 sps:$4 sm:$0xff]  }
 0x10e   :  { %5298 = vmatprep.subr.bf16.mxu0 %v8687_v29  ;;  %v8777_v29 = vld [vmem:[%s12489_s1 + $0xe44] ss:$28 sps:$4 sm:$0xff]  }
 0x110   :  { %5514 = vmatpush1.bf16.msra.mxu1 %v8688_v31  ;;  %v8775_v31 = vld [vmem:[%s12489_s1 + $0xe40] ss:$28 sps:$4 sm:$0xff]  }
 0x111   :  { %5299 = vmatpush1.bf16.msra.mxu0 %v8685_v30  ;;  %5515 = vmatprep.subr.bf16.mxu1 %v8696_v34  ;;  %v8772_v30 = vld [vmem:[%s12489_s1 + $0x1538] ss:$28 sps:$4 sm:$0xff]   ;;  %v8778_v34 = vld [vmem:[%s12489_s1 + $0x1570] ss:$28 sps:$4 sm:$0xff]  }
 0x112   :  { %5300 = vmatprep.subr.bf16.mxu0 %v8693_v32  ;;  %v8780_v32 = vld [vmem:[%s12489_s1 + $0x1574] ss:$28 sps:$4 sm:$0xff]  }
 0x114   :  { %5516 = vmatpush1.bf16.msra.mxu1 %v8694_v36  ;;  %v8786_v36 = vld [vmem:[%s12489_s1 + $0x15ac] ss:$28 sps:$4 sm:$0xff]  }
 0x115   :  { %5301 = vmatpush1.bf16.msra.mxu0 %v8691_v35  ;;  %5517 = vmatprep.subr.bf16.mxu1 %v8702_v38  ;;  %v8781_v35 = vld [vmem:[%s12489_s1 + $0xe78] ss:$28 sps:$4 sm:$0xff]   ;;  %v8787_v38 = vld [vmem:[%s12489_s1 + $0xeb0] ss:$28 sps:$4 sm:$0xff]  }
 0x116   :  { %5302 = vmatprep.subr.bf16.mxu0 %v8699_v37  ;;  %v10461_v43 = vpop.f32.mrb[0].mxu1  ;;  %v8784_v37 = vld [vmem:[%s12489_s1 + $0x15a8] ss:$28 sps:$4 sm:$0xff]  }
 0x117   :  { %v10466_v45 = vpop.f32.mrb[1].mxu1 }
 0x118   :  { %5518 = vmatpush1.bf16.msra.mxu1 %v8700_v40  ;;  %v10474_v48 = vpop.f32.mrb[2].mxu1  ;;  %v8795_v40 = vld [vmem:[%s12489_s1 + $0xeec] ss:$28 sps:$4 sm:$0xff]  }
 0x119   :  { %5303 = vmatpush1.bf16.msra.mxu0 %v8697_v39  ;;  %5519 = vmatprep.subr.bf16.mxu1 %v8708_v42  ;;  %v10479_v51 = vpop.f32.mrb[3].mxu1  ;;  %v8792_v39 = vld [vmem:[%s12489_s1 + $0x15e4] ss:$28 sps:$4 sm:$0xff]  }
 0x11a   :  { %5304 = vmatprep.subr.bf16.mxu0 %v8705_v41  ;;  %v8790_v41 = vld [vmem:[%s12489_s1 + $0x15e0] ss:$28 sps:$4 sm:$0xff]   ;;  %v8793_v42 = vld [vmem:[%s12489_s1 + $0xee8] ss:$28 sps:$4 sm:$0xff]  }
 0x11c   :  { %5520 = vmatpush1.bf16.msra.mxu1 %v8706_v46  ;;  %v8801_v46 = vld [vmem:[%s12489_s1 + $0xf24] ss:$28 sps:$4 sm:$0xff]  }
 0x11d   :  { %5305 = vmatpush1.bf16.msra.mxu0 %v8703_v44  ;;  %5521 = vmatprep.subr.bf16.mxu1 %v8714_v50  ;;  %v8798_v44 = vld [vmem:[%s12489_s1 + $0x161c] ss:$28 sps:$4 sm:$0xff]  }
 0x11e   :  { %5306 = vmatprep.subr.bf16.mxu0 %v8711_v47  ;;  %v8796_v47 = vld [vmem:[%s12489_s1 + $0x1618] ss:$28 sps:$4 sm:$0xff]   ;;  %v8799_v50 = vld [vmem:[%s12489_s1 + $0xf20] ss:$28 sps:$4 sm:$0xff]  }
 0x120   :  { %5522 = vmatpush1.bf16.msra.mxu1 %v8712_v53  ;;  %v8807_v53 = vld [vmem:[%s12489_s1 + $0xf5c] ss:$28 sps:$4 sm:$0xff]  }
 0x121   :  { %5307 = vmatpush1.bf16.msra.mxu0 %v8709_v52  ;;  %5523 = vmatprep.subr.bf16.mxu1 %v8720_v55  ;;  %v8804_v52 = vld [vmem:[%s12489_s1 + $0x1654] ss:$28 sps:$4 sm:$0xff]  }
 0x122   :  { %5308 = vmatprep.subr.bf16.mxu0 %v8717_v54  ;;  %v8802_v54 = vld [vmem:[%s12489_s1 + $0x1650] ss:$28 sps:$4 sm:$0xff]   ;;  %v8805_v55 = vld [vmem:[%s12489_s1 + $0xf58] ss:$28 sps:$4 sm:$0xff]  }
 0x124   :  { %5524 = vmatpush1.bf16.msra.mxu1 %v8718_v57  ;;  %v8813_v57 = vld [vmem:[%s12489_s1 + $0xf94] ss:$28 sps:$4 sm:$0xff]  }
 0x125   :  { %5309 = vmatpush1.bf16.msra.mxu0 %v8715_v56  ;;  %5525 = vmatprep.subr.bf16.mxu1 %v8726_v59  ;;  %v8810_v56 = vld [vmem:[%s12489_s1 + $0x168c] ss:$28 sps:$4 sm:$0xff]  }
 0x126   :  { %5310 = vmatprep.subr.bf16.mxu0 %v8723_v58  ;;  %v8808_v58 = vld [vmem:[%s12489_s1 + $0x1688] ss:$28 sps:$4 sm:$0xff]   ;;  %v8811_v59 = vld [vmem:[%s12489_s1 + $0xf90] ss:$28 sps:$4 sm:$0xff]  }
 0x128   :  { %5526 = vmatpush1.bf16.msra.mxu1 %v8724_v61  ;;  %v8819_v61 = vld [vmem:[%s12489_s1 + $0xfcc] ss:$28 sps:$4 sm:$0xff]  }
 0x129   :  { %5311 = vmatpush1.bf16.msra.mxu0 %v8721_v60  ;;  %5527 = vmatprep.subr.bf16.mxu1 %v8732_v63  ;;  %v8816_v60 = vld [vmem:[%s12489_s1 + $0x16c4] ss:$28 sps:$4 sm:$0xff]  }
 0x12a   :  { %5312 = vmatprep.subr.bf16.mxu0 %v8729_v62  ;;  %v8814_v62 = vld [vmem:[%s12489_s1 + $0x16c0] ss:$28 sps:$4 sm:$0xff]   ;;  %v8817_v63 = vld [vmem:[%s12489_s1 + $0xfc8] ss:$28 sps:$4 sm:$0xff]  }
 0x12c   :  { %5528 = vmatpush1.bf16.msra.mxu1 %v8730_v1  ;;  %v8825_v1 = vld [vmem:[%s12489_s1 + $0x1004] ss:$28 sps:$4 sm:$0xff]  }
 0x12d   :  { %5313 = vmatpush1.bf16.msra.mxu0 %v8727_v0  ;;  %5529 = vmatprep.subr.bf16.mxu1 %v8738_v3  ;;  %v8822_v0 = vld [vmem:[%s12489_s1 + $0x16fc] ss:$28 sps:$4 sm:$0xff]  }
 0x12e   :  { %5314 = vmatprep.subr.bf16.mxu0 %v8735_v2  ;;  %v8820_v2 = vld [vmem:[%s12489_s1 + $0x16f8] ss:$28 sps:$4 sm:$0xff]   ;;  %v8823_v3 = vld [vmem:[%s12489_s1 + $0x1000] ss:$28 sps:$4 sm:$0xff]  }
 0x130   :  { %5530 = vmatpush1.bf16.msra.mxu1 %v8736_v5  ;;  %v8831_v5 = vld [vmem:[%s12489_s1 + $0x103c] ss:$28 sps:$4 sm:$0xff]  }
 0x131   :  { %5315 = vmatpush1.bf16.msra.mxu0 %v8733_v4  ;;  %5531 = vmatprep.subr.bf16.mxu1 %v8744_v9  ;;  %v8828_v4 = vld [vmem:[%s12489_s1 + $0x1734] ss:$28 sps:$4 sm:$0xff]  }
 0x132   :  { %5316 = vmatprep.subr.bf16.mxu0 %v8741_v8  ;;  %v8826_v8 = vld [vmem:[%s12489_s1 + $0x1730] ss:$28 sps:$4 sm:$0xff]   ;;  %v8829_v9 = vld [vmem:[%s12489_s1 + $0x1038] ss:$28 sps:$4 sm:$0xff]  }
 0x134   :  { %5532 = vmatpush1.bf16.msra.mxu1 %v8742_v11  ;;  %v8837_v11 = vld [vmem:[%s12489_s1 + $0x1074] ss:$28 sps:$4 sm:$0xff]  }
 0x135   :  { %5317 = vmatpush1.bf16.msra.mxu0 %v8739_v10  ;;  %5533 = vmatprep.subr.bf16.mxu1 %v8750_v14  ;;  %v8834_v10 = vld [vmem:[%s12489_s1 + $0x176c] ss:$28 sps:$4 sm:$0xff]  }
 0x136   :  { %5318 = vmatprep.subr.bf16.mxu0 %v8747_v13  ;;  %v8832_v13 = vld [vmem:[%s12489_s1 + $0x1768] ss:$28 sps:$4 sm:$0xff]   ;;  %v8835_v14 = vld [vmem:[%s12489_s1 + $0x1070] ss:$28 sps:$4 sm:$0xff]  }
 0x138   :  { %5534 = vmatpush1.bf16.msra.mxu1 %v8748_v16  ;;  %v8843_v16 = vld [vmem:[%s12489_s1 + $0x10ac] ss:$28 sps:$4 sm:$0xff]  }
 0x139   :  { %5319 = vmatpush1.bf16.msra.mxu0 %v8745_v15  ;;  %5535 = vmatprep.subr.bf16.mxu1 %v8756_v19  ;;  %v8840_v15 = vld [vmem:[%s12489_s1 + $0x17a4] ss:$28 sps:$4 sm:$0xff]  }
 0x13a   :  { %5320 = vmatprep.subr.bf16.mxu0 %v8753_v6  ;;  %v8838_v6 = vld [vmem:[%s12489_s1 + $0x17a0] ss:$28 sps:$4 sm:$0xff]   ;;  %v8841_v19 = vld [vmem:[%s12489_s1 + $0x10a8] ss:$28 sps:$4 sm:$0xff]  }
 0x13c   :  { %5536 = vmatpush1.bf16.msra.mxu1 %v8754_v49  ;;  %v8849_v49 = vld [vmem:[%s12489_s1 + $0x10e4] ss:$28 sps:$4 sm:$0xff]  }
 0x13d   :  { %5321 = vmatpush1.bf16.msra.mxu0 %v8751_v21  ;;  %5537 = vmatprep.subr.bf16.mxu1 %v8762_v7  ;;  %v8846_v21 = vld [vmem:[%s12489_s1 + $0x17dc] ss:$28 sps:$4 sm:$0xff]  }
 0x13e   :  { %5322 = vmatprep.subr.bf16.mxu0 %v8759_v22  ;;  %v8844_v22 = vld [vmem:[%s12489_s1 + $0x17d8] ss:$28 sps:$4 sm:$0xff]   ;;  %v8847_v7 = vld [vmem:[%s12489_s1 + $0x10e0] ss:$28 sps:$4 sm:$0xff]  }
 0x140   :  { %5538 = vmatpush1.bf16.msra.mxu1 %v8760_v24  ;;  %v8855_v24 = vld [vmem:[%s12489_s1 + $0x111c] ss:$28 sps:$4 sm:$0xff]  }
 0x141   :  { %5323 = vmatpush1.bf16.msra.mxu0 %v8757_v23  ;;  %5550 = vmatprep.subr.bf16.mxu1 %v8770_v33  ;;  %v8852_v23 = vld [vmem:[%s12489_s1 + $0x1814] ss:$28 sps:$4 sm:$0xff]  }
 0x142   :  { %5335 = vmatprep.subr.bf16.mxu0 %v8767_v25  ;;  %v8850_v25 = vld [vmem:[%s12489_s1 + $0x1810] ss:$28 sps:$4 sm:$0xff]   ;;  %v8853_v33 = vld [vmem:[%s12489_s1 + $0x1118] ss:$28 sps:$4 sm:$0xff]  }
 0x143   :  { %5540 = vmatmul.mubr.bf16.vlgmr.msra.gmra.mrb[4].mxu1 %v10184_v17  ;;  %v8783_v17 = vld [vmem:[%s12489_s1 + $0xe7c] ss:$28 sps:$4 sm:$0xff]  }
 0x144   :  { %5325 = vmatmul.mubr.bf16.vlgmr.msra.gmra.mrb[0].mxu0 %v8771_v26  ;;  %5551 = vmatpush1.bf16.msra.mxu1 %v8768_v27  ;;  %v8858_v26 = vld [vmem:[%s12489_s1 + $0x184c] ss:$28 sps:$4 sm:$0xff]  }
 0x145   :  { %5336 = vmatpush1.bf16.msra.mxu0 %v8765_v12  ;;  %5552 = vmatprep.subr.bf16.mxu1 %v8777_v29  ;;  %v8861_v12 = vld [vmem:[%s12489_s1 + $0x1154] ss:$28 sps:$4 sm:$0xff]   ;;  %v8856_v27 = vld [vmem:[%s12489_s1 + $0x1848] ss:$28 sps:$4 sm:$0xff]  }
 0x146   :  { %5337 = vmatprep.subr.bf16.mxu0 %v8774_v28  ;;  %5367 = vmatprep.mubr.bf16.mxu0 %v8862_v18  ;;  %v8859_v28 = vld [vmem:[%s12489_s1 + $0x1150] ss:$28 sps:$4 sm:$0xff]  }
 0x147   :  { %5582 = vmatprep.mubr.bf16.mxu1 %v10195_v20  ;;  %v8789_v20 = vld [vmem:[%s12489_s1 + $0xeb4] ss:$28 sps:$4 sm:$0xff]   ;;  %v8867_v18 = vld [vmem:[%s12489_s1 + $0x118c] ss:$28 sps:$4 sm:$0xff]  }
 0x148   :  { %5553 = vmatpush1.bf16.msra.mxu1 %v8775_v31  ;;  %v8864_v29 = vld [vmem:[%s12488_s0 + $0x30] ss:$56 sps:$4 sm:$0xff]  }
 0x149   :  { %5338 = vmatpush1.bf16.msra.mxu0 %v8772_v30  ;;  %5554 = vmatprep.subr.bf16.mxu1 %v8783_v17  ;;  %v8870_v30 = vld [vmem:[%s12489_s1 + $0x14] ss:$28 sps:$4 sm:$0xff]   ;;  %v8865_v31 = vld [vmem:[%s12489_s1 + $0x1188] ss:$28 sps:$4 sm:$0xff]  }
 0x14a   :  { %5339 = vmatprep.subr.bf16.mxu0 %v8780_v32  ;;  %v8868_v32 = vld [vmem:[%s12489_s1 + $0x10] ss:$28 sps:$4 sm:$0xff]   ;;  %v8873_v17 = vld [vmem:[%s12489_s1 + $0x11c4] ss:$28 sps:$4 sm:$0xff]  }
 0x14c   :  { %5555 = vmatpush1.bf16.msra.mxu1 %v8781_v35  ;;  %v8871_v35 = vld [vmem:[%s12489_s1 + $0x11c0] ss:$28 sps:$4 sm:$0xff]  }
 0x14d   :  { %5340 = vmatpush1.bf16.msra.mxu0 %v8778_v34  ;;  %5556 = vmatprep.subr.bf16.mxu1 %v8789_v20  ;;  %v8876_v34 = vld [vmem:[%s12489_s1 + $0x4c] ss:$28 sps:$4 sm:$0xff]  }
 0x14e   :  { %5341 = vmatprep.subr.bf16.mxu0 %v8786_v36  ;;  %v9463_v36 = vld [vmem:[%s12488_s0 + $0x20] ss:$56 sps:$4 sm:$0xff]   ;;  %v8874_v20 = vld [vmem:[%s12489_s1 + $0x48] ss:$28 sps:$4 sm:$0xff]  }
 0x150   :  { %5557 = vmatpush1.bf16.msra.mxu1 %v8787_v38  ;;  %v8882_v38 = vld [vmem:[%s12489_s1 + $0x84] ss:$28 sps:$4 sm:$0xff]  }
 0x151   :  { %5342 = vmatpush1.bf16.msra.mxu0 %v8784_v37  ;;  %5558 = vmatprep.subr.bf16.mxu1 %v8795_v40  ;;  %v8879_v37 = vld [vmem:[%s12489_s1 + $0x11fc] ss:$28 sps:$4 sm:$0xff]   ;;  %v9464_v40 = vld [vmem:[%s12488_s0 + $0x2c] ss:$56 sps:$4 sm:$0xff]  }
 0x152   :  { %5343 = vmatprep.subr.bf16.mxu0 %v8792_v39  ;;  %v8877_v39 = vld [vmem:[%s12489_s1 + $0x11f8] ss:$28 sps:$4 sm:$0xff]  }
 0x154   :  { %5559 = vmatpush1.bf16.msra.mxu1 %v8793_v42  ;;  %v8880_v42 = vld [vmem:[%s12489_s1 + $0x80] ss:$28 sps:$4 sm:$0xff]  }
 0x155   :  { %5344 = vmatpush1.bf16.msra.mxu0 %v8790_v41  ;;  %5560 = vmatprep.subr.bf16.mxu1 %v8801_v46  ;;  %v9465_v41 = vld [vmem:[%s12488_s0 + $0x4] ss:$56 sps:$4 sm:$0xff]  }
 0x156   :  { %5345 = vmatprep.subr.bf16.mxu0 %v8798_v44  ;;  %v8885_v44 = vld [vmem:[%s12489_s1 + $0x1234] ss:$28 sps:$4 sm:$0xff]   ;;  %v8888_v46 = vld [vmem:[%s12489_s1 + $0xbc] ss:$28 sps:$4 sm:$0xff]  }
 0x158   :  { %5561 = vmatpush1.bf16.msra.mxu1 %v8799_v50  ;;  %v8886_v50 = vld [vmem:[%s12489_s1 + $0xb8] ss:$28 sps:$4 sm:$0xff]  }
 0x159   :  { %5346 = vmatpush1.bf16.msra.mxu0 %v8796_v47  ;;  %5562 = vmatprep.subr.bf16.mxu1 %v8807_v53  ;;  %v8883_v47 = vld [vmem:[%s12489_s1 + $0x1230] ss:$28 sps:$4 sm:$0xff]  }
 0x15a   :  { %5347 = vmatprep.subr.bf16.mxu0 %v8804_v52  ;;  %v8891_v52 = vld [vmem:[%s12489_s1 + $0x126c] ss:$28 sps:$4 sm:$0xff]   ;;  %v8894_v53 = vld [vmem:[%s12489_s1 + $0xf4] ss:$28 sps:$4 sm:$0xff]  }
 0x15c   :  { %5563 = vmatpush1.bf16.msra.mxu1 %v8805_v55  ;;  %v8892_v55 = vld [vmem:[%s12489_s1 + $0xf0] ss:$28 sps:$4 sm:$0xff]  }
 0x15d   :  { %5348 = vmatpush1.bf16.msra.mxu0 %v8802_v54  ;;  %5564 = vmatprep.subr.bf16.mxu1 %v8813_v57  ;;  %v8889_v54 = vld [vmem:[%s12489_s1 + $0x1268] ss:$28 sps:$4 sm:$0xff]  }
 0x15e   :  { %5349 = vmatprep.subr.bf16.mxu0 %v8810_v56  ;;  %v8897_v56 = vld [vmem:[%s12489_s1 + $0x12a4] ss:$28 sps:$4 sm:$0xff]   ;;  %v8900_v57 = vld [vmem:[%s12489_s1 + $0x12c] ss:$28 sps:$4 sm:$0xff]  }
 0x160   :  { %5565 = vmatpush1.bf16.msra.mxu1 %v8811_v59  ;;  %v8898_v59 = vld [vmem:[%s12489_s1 + $0x128] ss:$28 sps:$4 sm:$0xff]  }
 0x161   :  { %5350 = vmatpush1.bf16.msra.mxu0 %v8808_v58  ;;  %5566 = vmatprep.subr.bf16.mxu1 %v8819_v61  ;;  %v8895_v58 = vld [vmem:[%s12489_s1 + $0x12a0] ss:$28 sps:$4 sm:$0xff]  }
 0x162   :  { %5351 = vmatprep.subr.bf16.mxu0 %v8816_v60  ;;  %v8903_v60 = vld [vmem:[%s12489_s1 + $0x12dc] ss:$28 sps:$4 sm:$0xff]   ;;  %v8906_v61 = vld [vmem:[%s12489_s1 + $0x164] ss:$28 sps:$4 sm:$0xff]  }
 0x164   :  { %5567 = vmatpush1.bf16.msra.mxu1 %v8817_v63  ;;  %v8904_v63 = vld [vmem:[%s12489_s1 + $0x160] ss:$28 sps:$4 sm:$0xff]  }
 0x165   :  { %5352 = vmatpush1.bf16.msra.mxu0 %v8814_v62  ;;  %5568 = vmatprep.subr.bf16.mxu1 %v8825_v1  ;;  %v8901_v62 = vld [vmem:[%s12489_s1 + $0x12d8] ss:$28 sps:$4 sm:$0xff]  }
 0x166   :  { %5353 = vmatprep.subr.bf16.mxu0 %v8822_v0  ;;  %v8909_v0 = vld [vmem:[%s12489_s1 + $0x1314] ss:$28 sps:$4 sm:$0xff]   ;;  %v8912_v1 = vld [vmem:[%s12489_s1 + $0x19c] ss:$28 sps:$4 sm:$0xff]  }
 0x168   :  { %5569 = vmatpush1.bf16.msra.mxu1 %v8823_v3  ;;  %v8910_v3 = vld [vmem:[%s12489_s1 + $0x198] ss:$28 sps:$4 sm:$0xff]  }
 0x169   :  { %5354 = vmatpush1.bf16.msra.mxu0 %v8820_v2  ;;  %5570 = vmatprep.subr.bf16.mxu1 %v8831_v5  ;;  %v8907_v2 = vld [vmem:[%s12489_s1 + $0x1310] ss:$28 sps:$4 sm:$0xff]  }
 0x16a   :  { %5355 = vmatprep.subr.bf16.mxu0 %v8828_v4  ;;  %v8915_v4 = vld [vmem:[%s12489_s1 + $0x134c] ss:$28 sps:$4 sm:$0xff]   ;;  %v8918_v5 = vld [vmem:[%s12489_s1 + $0x1d4] ss:$28 sps:$4 sm:$0xff]  }
 0x16c   :  { %5571 = vmatpush1.bf16.msra.mxu1 %v8829_v9  ;;  %v8916_v9 = vld [vmem:[%s12489_s1 + $0x1d0] ss:$28 sps:$4 sm:$0xff]  }
 0x16d   :  { %5356 = vmatpush1.bf16.msra.mxu0 %v8826_v8  ;;  %5572 = vmatprep.subr.bf16.mxu1 %v8837_v11  ;;  %v8913_v8 = vld [vmem:[%s12489_s1 + $0x1348] ss:$28 sps:$4 sm:$0xff]  }
 0x16e   :  { %5357 = vmatprep.subr.bf16.mxu0 %v8834_v10  ;;  %v8921_v10 = vld [vmem:[%s12489_s1 + $0x1384] ss:$28 sps:$4 sm:$0xff]   ;;  %v8924_v11 = vld [vmem:[%s12489_s1 + $0x20c] ss:$28 sps:$4 sm:$0xff]  }
 0x170   :  { %5573 = vmatpush1.bf16.msra.mxu1 %v8835_v14  ;;  %v8922_v14 = vld [vmem:[%s12489_s1 + $0x208] ss:$28 sps:$4 sm:$0xff]  }
 0x171   :  { %5358 = vmatpush1.bf16.msra.mxu0 %v8832_v13  ;;  %5574 = vmatprep.subr.bf16.mxu1 %v8843_v16  ;;  %v8919_v13 = vld [vmem:[%s12489_s1 + $0x1380] ss:$28 sps:$4 sm:$0xff]  }
 0x172   :  { %5359 = vmatprep.subr.bf16.mxu0 %v8840_v15  ;;  %v8927_v15 = vld [vmem:[%s12489_s1 + $0x13bc] ss:$28 sps:$4 sm:$0xff]   ;;  %v8930_v16 = vld [vmem:[%s12489_s1 + $0x244] ss:$28 sps:$4 sm:$0xff]  }
 0x174   :  { %5575 = vmatpush1.bf16.msra.mxu1 %v8841_v19  ;;  %v8928_v19 = vld [vmem:[%s12489_s1 + $0x240] ss:$28 sps:$4 sm:$0xff]  }
 0x175   :  { %5360 = vmatpush1.bf16.msra.mxu0 %v8838_v6  ;;  %5576 = vmatprep.subr.bf16.mxu1 %v8849_v49  ;;  %v8925_v6 = vld [vmem:[%s12489_s1 + $0x13b8] ss:$28 sps:$4 sm:$0xff]  }
 0x176   :  { %5361 = vmatprep.subr.bf16.mxu0 %v8846_v21  ;;  %v8933_v21 = vld [vmem:[%s12489_s1 + $0x13f4] ss:$28 sps:$4 sm:$0xff]   ;;  %v8936_v49 = vld [vmem:[%s12489_s1 + $0x27c] ss:$28 sps:$4 sm:$0xff]  }
 0x178   :  { %5577 = vmatpush1.bf16.msra.mxu1 %v8847_v7  ;;  %v8934_v7 = vld [vmem:[%s12489_s1 + $0x278] ss:$28 sps:$4 sm:$0xff]  }
 0x179   :  { %5362 = vmatpush1.bf16.msra.mxu0 %v8844_v22  ;;  %5578 = vmatprep.subr.bf16.mxu1 %v8855_v24  ;;  %v8931_v22 = vld [vmem:[%s12489_s1 + $0x13f0] ss:$28 sps:$4 sm:$0xff]  }
 0x17a   :  { %5363 = vmatprep.subr.bf16.mxu0 %v8852_v23  ;;  %v8939_v23 = vld [vmem:[%s12489_s1 + $0x142c] ss:$28 sps:$4 sm:$0xff]   ;;  %v8942_v24 = vld [vmem:[%s12489_s1 + $0x2b4] ss:$28 sps:$4 sm:$0xff]  }
 0x17c   :  { %5579 = vmatpush1.bf16.msra.mxu1 %v8853_v33  ;;  %v8940_v33 = vld [vmem:[%s12489_s1 + $0x2b0] ss:$28 sps:$4 sm:$0xff]  }
 0x17d   :  { %5364 = vmatpush1.bf16.msra.mxu0 %v8850_v25  ;;  %5580 = vmatprep.subr.bf16.mxu1 %v8861_v12  ;;  %v8937_v25 = vld [vmem:[%s12489_s1 + $0x1428] ss:$28 sps:$4 sm:$0xff]  }
 0x17e   :  { %5365 = vmatprep.subr.bf16.mxu0 %v8858_v26  ;;  %v8945_v26 = vld [vmem:[%s12489_s1 + $0x1464] ss:$28 sps:$4 sm:$0xff]   ;;  %v8948_v12 = vld [vmem:[%s12489_s1 + $0x2ec] ss:$28 sps:$4 sm:$0xff]  }
 0x180   :  { %5581 = vmatpush1.bf16.msra.mxu1 %v8859_v28  ;;  %v8946_v28 = vld [vmem:[%s12489_s1 + $0x2e8] ss:$28 sps:$4 sm:$0xff]  }
 0x181   :  { %5366 = vmatpush1.bf16.msra.mxu0 %v8856_v27  ;;  %5593 = vmatprep.subr.bf16.mxu1 %v8867_v18  ;;  %v8943_v27 = vld [vmem:[%s12489_s1 + $0x1460] ss:$28 sps:$4 sm:$0xff]  }
 0x182   :  { %5679 = vmatprep.subr.bf16.mxu0 %v8870_v30  ;;  %v8954_v18 = vld [vmem:[%s12489_s1 + $0x324] ss:$28 sps:$4 sm:$0xff]   ;;  %v8949_v30 = vld [vmem:[%s12489_s1 + $0x1498] ss:$28 sps:$4 sm:$0xff]  }
 0x183   :  { %5583 = vmatmul.mubr.bf16.vlgmr.msra.gmra.mrb[4].mxu1 %v9463_v36  ;;  %v8963_v36 = vld [vmem:[%s12489_s1 + $0x150c] ss:$28 sps:$4 sm:$0xff]  }
 0x184   :  { %5368 = vmatmul.mubr.bf16.vlgmr.msra.gmra.mrb[0].mxu0 %v8864_v29  ;;  %5594 = vmatpush1.bf16.msra.mxu1 %v8865_v31  ;;  %v8951_v29 = vld [vmem:[%s12489_s1 + $0x149c] ss:$28 sps:$4 sm:$0xff]  }
 0x185   :  { %5680 = vmatpush1.bf16.msra.mxu0 %v8868_v32  ;;  %5595 = vmatprep.subr.bf16.mxu1 %v8873_v17  ;;  %v8952_v31 = vld [vmem:[%s12489_s1 + $0x320] ss:$28 sps:$4 sm:$0xff]   ;;  %v8957_v32 = vld [vmem:[%s12489_s1 + $0x14d4] ss:$28 sps:$4 sm:$0xff]  }
 0x186   :  { %5681 = vmatprep.subr.bf16.mxu0 %v8876_v34  ;;  %5625 = vmatprep.mubr.bf16.mxu1 %v9464_v40  ;;  %v8960_v17 = vld [vmem:[%s12489_s1 + $0x35c] ss:$28 sps:$4 sm:$0xff]   ;;  %v8955_v34 = vld [vmem:[%s12489_s1 + $0x14d0] ss:$28 sps:$4 sm:$0xff]  }
 0x187   :  { %5711 = vmatprep.mubr.bf16.mxu0 %v9465_v41  ;;  %v8972_v40 = vld [vmem:[%s12489_s1 + $0x3cc] ss:$28 sps:$4 sm:$0xff]   ;;  %v8967_v41 = vld [vmem:[%s12489_s1 + $0x1540] ss:$28 sps:$4 sm:$0xff]  }
 0x188   :  { %5596 = vmatpush1.bf16.msra.mxu1 %v8871_v35  ;;  %v8958_v35 = vld [vmem:[%s12489_s1 + $0x358] ss:$28 sps:$4 sm:$0xff]  }
 0x189   :  { %5682 = vmatpush1.bf16.msra.mxu0 %v8874_v20  ;;  %5597 = vmatprep.subr.bf16.mxu1 %v8879_v37  ;;  %v8966_v20 = vld [vmem:[%s12489_s1 + $0x394] ss:$28 sps:$4 sm:$0xff]   ;;  %v8961_v37 = vld [vmem:[%s12489_s1 + $0x1508] ss:$28 sps:$4 sm:$0xff]  }
 0x18a   :  { %5683 = vmatprep.subr.bf16.mxu0 %v8882_v38  ;;  %v8964_v38 = vld [vmem:[%s12489_s1 + $0x390] ss:$28 sps:$4 sm:$0xff]  }
 0x18c   :  { %5598 = vmatpush1.bf16.msra.mxu1 %v8877_v39  ;;  %v8969_v39 = vld [vmem:[%s12489_s1 + $0x1544] ss:$28 sps:$4 sm:$0xff]  }
 0x18d   :  { %5684 = vmatpush1.bf16.msra.mxu0 %v8880_v42  ;;  %5599 = vmatprep.subr.bf16.mxu1 %v8885_v44  ;;  %v9466_v42 = vld [vmem:[%s12488_s0 + $0x28] ss:$56 sps:$4 sm:$0xff]  }
 0x18e   :  { %5685 = vmatprep.subr.bf16.mxu0 %v8888_v46  ;;  %v11014_v44 = vld [vmem:[%s12488_s0] ss:$56 sps:$4 sm:$0xff]   ;;  %v8970_v46 = vld [vmem:[%s12489_s1 + $0x3c8] ss:$28 sps:$4 sm:$0xff]  }
 0x190   :  { %5600 = vmatpush1.bf16.msra.mxu1 %v8883_v47  ;;  %v8975_v47 = vld [vmem:[%s12489_s1 + $0x157c] ss:$28 sps:$4 sm:$0xff]  }
 0x191   :  { %5686 = vmatpush1.bf16.msra.mxu0 %v8886_v50  ;;  %5601 = vmatprep.subr.bf16.mxu1 %v8891_v52  ;;  %v8978_v50 = vld [vmem:[%s12489_s1 + $0x404] ss:$28 sps:$4 sm:$0xff]   ;;  %v8973_v52 = vld [vmem:[%s12489_s1 + $0x1578] ss:$28 sps:$4 sm:$0xff]  }
 0x192   :  { %5687 = vmatprep.subr.bf16.mxu0 %v8894_v53  ;;  %v9468_v53 = vld [vmem:[%s12488_s0 + $0x34] ss:$56 sps:$4 sm:$0xff]  }
 0x194   :  { %5602 = vmatpush1.bf16.msra.mxu1 %v8889_v54  ;;  %v11035_v54 = vld [vmem:[%s12488_s0 + $0xc] ss:$56 sps:$4 sm:$0xff]  }
 0x195   :  { %5688 = vmatpush1.bf16.msra.mxu0 %v8892_v55  ;;  %5603 = vmatprep.subr.bf16.mxu1 %v8897_v56  ;;  %v8976_v55 = vld [vmem:[%s12489_s1 + $0x400] ss:$28 sps:$4 sm:$0xff]   ;;  %v8981_v56 = vld [vmem:[%s12489_s1 + $0x15b4] ss:$28 sps:$4 sm:$0xff]  }
 0x196   :  { %5689 = vmatprep.subr.bf16.mxu0 %v8900_v57  ;;  %v8984_v57 = vld [vmem:[%s12489_s1 + $0x43c] ss:$28 sps:$4 sm:$0xff]  }
 0x198   :  { %5604 = vmatpush1.bf16.msra.mxu1 %v8895_v58  ;;  %v8979_v58 = vld [vmem:[%s12489_s1 + $0x15b0] ss:$28 sps:$4 sm:$0xff]  }
 0x199   :  { %5690 = vmatpush1.bf16.msra.mxu0 %v8898_v59  ;;  %5605 = vmatprep.subr.bf16.mxu1 %v8903_v60  ;;  %v8982_v59 = vld [vmem:[%s12489_s1 + $0x438] ss:$28 sps:$4 sm:$0xff]   ;;  %v8987_v60 = vld [vmem:[%s12489_s1 + $0x15ec] ss:$28 sps:$4 sm:$0xff]  }
 0x19a   :  { %5691 = vmatprep.subr.bf16.mxu0 %v8906_v61  ;;  %v8990_v61 = vld [vmem:[%s12489_s1 + $0x474] ss:$28 sps:$4 sm:$0xff]  }
 0x19c   :  { %5606 = vmatpush1.bf16.msra.mxu1 %v8901_v62  ;;  %v8985_v62 = vld [vmem:[%s12489_s1 + $0x15e8] ss:$28 sps:$4 sm:$0xff]  }
 0x19d   :  { %5692 = vmatpush1.bf16.msra.mxu0 %v8904_v63  ;;  %5607 = vmatprep.subr.bf16.mxu1 %v8909_v0  ;;  %v8988_v63 = vld [vmem:[%s12489_s1 + $0x470] ss:$28 sps:$4 sm:$0xff]   ;;  %v8993_v0 = vld [vmem:[%s12489_s1 + $0x1624] ss:$28 sps:$4 sm:$0xff]  }
 0x19e   :  { %5693 = vmatprep.subr.bf16.mxu0 %v8912_v1  ;;  %v8996_v1 = vld [vmem:[%s12489_s1 + $0x4ac] ss:$28 sps:$4 sm:$0xff]  }
 0x1a0   :  { %5608 = vmatpush1.bf16.msra.mxu1 %v8907_v2  ;;  %v8991_v2 = vld [vmem:[%s12489_s1 + $0x1620] ss:$28 sps:$4 sm:$0xff]  }
 0x1a1   :  { %5694 = vmatpush1.bf16.msra.mxu0 %v8910_v3  ;;  %5609 = vmatprep.subr.bf16.mxu1 %v8915_v4  ;;  %v8994_v3 = vld [vmem:[%s12489_s1 + $0x4a8] ss:$28 sps:$4 sm:$0xff]   ;;  %v8999_v4 = vld [vmem:[%s12489_s1 + $0x165c] ss:$28 sps:$4 sm:$0xff]  }
 0x1a2   :  { %5695 = vmatprep.subr.bf16.mxu0 %v8918_v5  ;;  %v9002_v5 = vld [vmem:[%s12489_s1 + $0x4e4] ss:$28 sps:$4 sm:$0xff]  }
 0x1a4   :  { %5610 = vmatpush1.bf16.msra.mxu1 %v8913_v8  ;;  %v8997_v8 = vld [vmem:[%s12489_s1 + $0x1658] ss:$28 sps:$4 sm:$0xff]  }
 0x1a5   :  { %5696 = vmatpush1.bf16.msra.mxu0 %v8916_v9  ;;  %5611 = vmatprep.subr.bf16.mxu1 %v8921_v10  ;;  %v9000_v9 = vld [vmem:[%s12489_s1 + $0x4e0] ss:$28 sps:$4 sm:$0xff]   ;;  %v9005_v10 = vld [vmem:[%s12489_s1 + $0x1694] ss:$28 sps:$4 sm:$0xff]  }
 0x1a6   :  { %5697 = vmatprep.subr.bf16.mxu0 %v8924_v11  ;;  %v9008_v11 = vld [vmem:[%s12489_s1 + $0x51c] ss:$28 sps:$4 sm:$0xff]  }
 0x1a8   :  { %5612 = vmatpush1.bf16.msra.mxu1 %v8919_v13  ;;  %v9003_v13 = vld [vmem:[%s12489_s1 + $0x1690] ss:$28 sps:$4 sm:$0xff]  }
 0x1a9   :  { %5698 = vmatpush1.bf16.msra.mxu0 %v8922_v14  ;;  %5613 = vmatprep.subr.bf16.mxu1 %v8927_v15  ;;  %v9006_v14 = vld [vmem:[%s12489_s1 + $0x518] ss:$28 sps:$4 sm:$0xff]   ;;  %v9011_v15 = vld [vmem:[%s12489_s1 + $0x16cc] ss:$28 sps:$4 sm:$0xff]  }
 0x1aa   :  { %5699 = vmatprep.subr.bf16.mxu0 %v8930_v16  ;;  %v9014_v16 = vld [vmem:[%s12489_s1 + $0x554] ss:$28 sps:$4 sm:$0xff]  }
 0x1ac   :  { %5614 = vmatpush1.bf16.msra.mxu1 %v8925_v6  ;;  %v9009_v6 = vld [vmem:[%s12489_s1 + $0x16c8] ss:$28 sps:$4 sm:$0xff]  }
 0x1ad   :  { %5700 = vmatpush1.bf16.msra.mxu0 %v8928_v19  ;;  %5615 = vmatprep.subr.bf16.mxu1 %v8933_v21  ;;  %v9012_v19 = vld [vmem:[%s12489_s1 + $0x550] ss:$28 sps:$4 sm:$0xff]   ;;  %v9017_v21 = vld [vmem:[%s12489_s1 + $0x1704] ss:$28 sps:$4 sm:$0xff]  }
 0x1ae   :  { %5701 = vmatprep.subr.bf16.mxu0 %v8936_v49  ;;  %v9020_v49 = vld [vmem:[%s12489_s1 + $0x58c] ss:$28 sps:$4 sm:$0xff]  }
 0x1b0   :  { %5616 = vmatpush1.bf16.msra.mxu1 %v8931_v22  ;;  %v9015_v22 = vld [vmem:[%s12489_s1 + $0x1700] ss:$28 sps:$4 sm:$0xff]  }
 0x1b1   :  { %5702 = vmatpush1.bf16.msra.mxu0 %v8934_v7  ;;  %5617 = vmatprep.subr.bf16.mxu1 %v8939_v23  ;;  %v9018_v7 = vld [vmem:[%s12489_s1 + $0x588] ss:$28 sps:$4 sm:$0xff]   ;;  %v9023_v23 = vld [vmem:[%s12489_s1 + $0x173c] ss:$28 sps:$4 sm:$0xff]  }
 0x1b2   :  { %5703 = vmatprep.subr.bf16.mxu0 %v8942_v24  ;;  %v9026_v24 = vld [vmem:[%s12489_s1 + $0x5c4] ss:$28 sps:$4 sm:$0xff]  }
 0x1b4   :  { %5618 = vmatpush1.bf16.msra.mxu1 %v8937_v25  ;;  %v9021_v25 = vld [vmem:[%s12489_s1 + $0x1738] ss:$28 sps:$4 sm:$0xff]  }
 0x1b5   :  { %5704 = vmatpush1.bf16.msra.mxu0 %v8940_v33  ;;  %5619 = vmatprep.subr.bf16.mxu1 %v8945_v26  ;;  %v9024_v33 = vld [vmem:[%s12489_s1 + $0x5c0] ss:$28 sps:$4 sm:$0xff]   ;;  %v9029_v26 = vld [vmem:[%s12489_s1 + $0x1774] ss:$28 sps:$4 sm:$0xff]  }
 0x1b6   :  { %5705 = vmatprep.subr.bf16.mxu0 %v8948_v12  ;;  %v9032_v12 = vld [vmem:[%s12489_s1 + $0x5fc] ss:$28 sps:$4 sm:$0xff]  }
 0x1b8   :  { %5620 = vmatpush1.bf16.msra.mxu1 %v8943_v27  ;;  %v9027_v27 = vld [vmem:[%s12489_s1 + $0x1770] ss:$28 sps:$4 sm:$0xff]  }
 0x1b9   :  { %5706 = vmatpush1.bf16.msra.mxu0 %v8946_v28  ;;  %5621 = vmatprep.subr.bf16.mxu1 %v8951_v29  ;;  %v9030_v28 = vld [vmem:[%s12489_s1 + $0x5f8] ss:$28 sps:$4 sm:$0xff]   ;;  %v9035_v29 = vld [vmem:[%s12489_s1 + $0x17ac] ss:$28 sps:$4 sm:$0xff]  }
 0x1ba   :  { %5707 = vmatprep.subr.bf16.mxu0 %v8954_v18  ;;  %v9038_v18 = vld [vmem:[%s12489_s1 + $0x634] ss:$28 sps:$4 sm:$0xff]  }
 0x1bc   :  { %5622 = vmatpush1.bf16.msra.mxu1 %v8949_v30  ;;  %v9033_v30 = vld [vmem:[%s12489_s1 + $0x17a8] ss:$28 sps:$4 sm:$0xff]  }
 0x1bd   :  { %5708 = vmatpush1.bf16.msra.mxu0 %v8952_v31  ;;  %5623 = vmatprep.subr.bf16.mxu1 %v8957_v32  ;;  %v9036_v31 = vld [vmem:[%s12489_s1 + $0x630] ss:$28 sps:$4 sm:$0xff]   ;;  %v9041_v32 = vld [vmem:[%s12489_s1 + $0x17e4] ss:$28 sps:$4 sm:$0xff]  }
 0x1be   :  { %5709 = vmatprep.subr.bf16.mxu0 %v8960_v17  ;;  %v9044_v17 = vld [vmem:[%s12489_s1 + $0x66c] ss:$28 sps:$4 sm:$0xff]  }
 0x1c0   :  { %5624 = vmatpush1.bf16.msra.mxu1 %v8955_v34  ;;  %v9039_v34 = vld [vmem:[%s12489_s1 + $0x17e0] ss:$28 sps:$4 sm:$0xff]  }
 0x1c1   :  { %5710 = vmatpush1.bf16.msra.mxu0 %v8958_v35  ;;  %5636 = vmatprep.subr.bf16.mxu1 %v8963_v36  ;;  %v9042_v35 = vld [vmem:[%s12489_s1 + $0x668] ss:$28 sps:$4 sm:$0xff]   ;;  %v9047_v36 = vld [vmem:[%s12489_s1 + $0x181c] ss:$28 sps:$4 sm:$0xff]  }
 0x1c2   :  { %5722 = vmatprep.subr.bf16.mxu0 %v8966_v20  ;;  %v9050_v20 = vld [vmem:[%s12489_s1 + $0x6a4] ss:$28 sps:$4 sm:$0xff]  }
 0x1c3   :  { %5626 = vmatmul.mubr.bf16.vlgmr.msra.gmra.mrb[4].mxu1 %v9466_v42  ;;  %v9054_v42 = vld [vmem:[%s12489_s1 + $0x6d8] ss:$28 sps:$4 sm:$0xff]  }
 0x1c4   :  { %5712 = vmatmul.mubr.bf16.vlgmr.msra.gmra.mrb[4].mxu0 %v11014_v44  ;;  %5637 = vmatpush1.bf16.msra.mxu1 %v8961_v37  ;;  %v9045_v37 = vld [vmem:[%s12489_s1 + $0x1818] ss:$28 sps:$4 sm:$0xff]  }
 0x1c5   :  { %5723 = vmatpush1.bf16.msra.mxu0 %v8964_v38  ;;  %5638 = vmatprep.subr.bf16.mxu1 %v8969_v39  ;;  %v9048_v38 = vld [vmem:[%s12489_s1 + $0x6a0] ss:$28 sps:$4 sm:$0xff]   ;;  %v9053_v39 = vld [vmem:[%s12489_s1 + $0x1854] ss:$28 sps:$4 sm:$0xff]  }
 0x1c6   :  { %5724 = vmatprep.subr.bf16.mxu0 %v8972_v40  ;;  %5668 = vmatprep.mubr.bf16.mxu1 %v9468_v53  ;;  %v9056_v40 = vld [vmem:[%s12489_s1 + $0x6dc] ss:$28 sps:$4 sm:$0xff]   ;;  %v9064_v53 = vld [vmem:[%s12489_s1 + $0x74c] ss:$28 sps:$4 sm:$0xff]  }
 0x1c7   :  { %5754 = vmatprep.mubr.bf16.mxu0 %v11035_v54 }
 0x1c8   :  { %5639 = vmatpush1.bf16.msra.mxu1 %v8967_v41  ;;  %v9051_v41 = vld [vmem:[%s12489_s1 + $0x1850] ss:$28 sps:$4 sm:$0xff]  }
 0x1c9   :  { %5725 = vmatpush1.bf16.msra.mxu0 %v8970_v46  ;;  %5640 = vmatprep.subr.bf16.mxu1 %v8975_v47  ;;  %v9059_v46 = vld [vmem:[%s12489_s1 + $0x714] ss:$28 sps:$4 sm:$0xff]  }
 0x1ca   :  { %5726 = vmatprep.subr.bf16.mxu0 %v8978_v50  ;;  %v9060_v47 = vld [vmem:[%s12489_s1 + $0x1d8] ss:$28 sps:$4 sm:$0xff]   ;;  %v9057_v50 = vld [vmem:[%s12489_s1 + $0x710] ss:$28 sps:$4 sm:$0xff]  }
 0x1cc   :  { %5641 = vmatpush1.bf16.msra.mxu1 %v8973_v52  ;;  %v9061_v52 = vld [vmem:[%s12489_s1 + $0x18] ss:$28 sps:$4 sm:$0xff]  }
 0x1cd   :  { %5727 = vmatpush1.bf16.msra.mxu0 %v8976_v55  ;;  %5642 = vmatprep.subr.bf16.mxu1 %v8981_v56  ;;  %v9065_v55 = vld [vmem:[%s12489_s1 + $0x210] ss:$28 sps:$4 sm:$0xff]   ;;  %v9062_v56 = vld [vmem:[%s12489_s1 + $0x748] ss:$28 sps:$4 sm:$0xff]  }
 0x1ce   :  { %5728 = vmatprep.subr.bf16.mxu0 %v8984_v57  ;;  %v9470_v57 = vld [vmem:[%s12488_s0 + $0x30] ss:$56 sps:$4 sm:$0xff]  }
 0x1d0   :  { %5643 = vmatpush1.bf16.msra.mxu1 %v8979_v58  ;;  %v11224_v58 = vld [vmem:[%s12488_s0 + $0x8] ss:$56 sps:$4 sm:$0xff]  }
 0x1d1   :  { %5729 = vmatpush1.bf16.msra.mxu0 %v8982_v59  ;;  %5644 = vmatprep.subr.bf16.mxu1 %v8987_v60  ;;  %v9066_v59 = vld [vmem:[%s12489_s1 + $0x50] ss:$28 sps:$4 sm:$0xff]   ;;  %v9069_v60 = vld [vmem:[%s12489_s1 + $0x784] ss:$28 sps:$4 sm:$0xff]  }
 0x1d2   :  { %5730 = vmatprep.subr.bf16.mxu0 %v8990_v61  ;;  %v9070_v61 = vld [vmem:[%s12489_s1 + $0x248] ss:$28 sps:$4 sm:$0xff]  }
 0x1d4   :  { %5645 = vmatpush1.bf16.msra.mxu1 %v8985_v62  ;;  %v9067_v62 = vld [vmem:[%s12489_s1 + $0x780] ss:$28 sps:$4 sm:$0xff]  }
 0x1d5   :  { %5731 = vmatpush1.bf16.msra.mxu0 %v8988_v63  ;;  %5646 = vmatprep.subr.bf16.mxu1 %v8993_v0  ;;  %v9472_v63 = vld [vmem:[%s12488_s0 + $0x4] ss:$56 sps:$4 sm:$0xff]   ;;  %v11245_v0 = vld [vmem:[%s12488_s0 + $0x14] ss:$56 sps:$4 sm:$0xff]  }
 0x1d6   :  { %5732 = vmatprep.subr.bf16.mxu0 %v8996_v1  ;;  %v9071_v1 = vld [vmem:[%s12489_s1 + $0x88] ss:$28 sps:$4 sm:$0xff]  }
 0x1d8   :  { %5647 = vmatpush1.bf16.msra.mxu1 %v8991_v2  ;;  %v9074_v2 = vld [vmem:[%s12489_s1 + $0x7bc] ss:$28 sps:$4 sm:$0xff]  }
 0x1d9   :  { %5733 = vmatpush1.bf16.msra.mxu0 %v8994_v3  ;;  %5648 = vmatprep.subr.bf16.mxu1 %v8999_v4  ;;  %v9075_v3 = vld [vmem:[%s12489_s1 + $0x280] ss:$28 sps:$4 sm:$0xff]   ;;  %v9072_v4 = vld [vmem:[%s12489_s1 + $0x7b8] ss:$28 sps:$4 sm:$0xff]  }
 0x1da   :  { %5734 = vmatprep.subr.bf16.mxu0 %v9002_v5  ;;  %v9076_v5 = vld [vmem:[%s12489_s1 + $0xc0] ss:$28 sps:$4 sm:$0xff]  }
 0x1dc   :  { %5649 = vmatpush1.bf16.msra.mxu1 %v8997_v8  ;;  %v9079_v8 = vld [vmem:[%s12489_s1 + $0x7f4] ss:$28 sps:$4 sm:$0xff]  }
 0x1dd   :  { %5735 = vmatpush1.bf16.msra.mxu0 %v9000_v9  ;;  %5650 = vmatprep.subr.bf16.mxu1 %v9005_v10  ;;  %v9080_v9 = vld [vmem:[%s12489_s1 + $0x2b8] ss:$28 sps:$4 sm:$0xff]   ;;  %v9077_v10 = vld [vmem:[%s12489_s1 + $0x7f0] ss:$28 sps:$4 sm:$0xff]  }
 0x1de   :  { %5736 = vmatprep.subr.bf16.mxu0 %v9008_v11  ;;  %v9081_v11 = vld [vmem:[%s12489_s1 + $0xf8] ss:$28 sps:$4 sm:$0xff]  }
 0x1e0   :  { %5651 = vmatpush1.bf16.msra.mxu1 %v9003_v13  ;;  %v9084_v13 = vld [vmem:[%s12489_s1 + $0x82c] ss:$28 sps:$4 sm:$0xff]  }
 0x1e1   :  { %5737 = vmatpush1.bf16.msra.mxu0 %v9006_v14  ;;  %5652 = vmatprep.subr.bf16.mxu1 %v9011_v15  ;;  %v9085_v14 = vld [vmem:[%s12489_s1 + $0x2f0] ss:$28 sps:$4 sm:$0xff]   ;;  %v9082_v15 = vld [vmem:[%s12489_s1 + $0x828] ss:$28 sps:$4 sm:$0xff]  }
 0x1e2   :  { %5738 = vmatprep.subr.bf16.mxu0 %v9014_v16  ;;  %v9086_v16 = vld [vmem:[%s12489_s1 + $0x130] ss:$28 sps:$4 sm:$0xff]  }
 0x1e4   :  { %5653 = vmatpush1.bf16.msra.mxu1 %v9009_v6  ;;  %v9089_v6 = vld [vmem:[%s12489_s1 + $0x864] ss:$28 sps:$4 sm:$0xff]  }
 0x1e5   :  { %5739 = vmatpush1.bf16.msra.mxu0 %v9012_v19  ;;  %5654 = vmatprep.subr.bf16.mxu1 %v9017_v21  ;;  %v9090_v19 = vld [vmem:[%s12489_s1 + $0x328] ss:$28 sps:$4 sm:$0xff]   ;;  %v9087_v21 = vld [vmem:[%s12489_s1 + $0x860] ss:$28 sps:$4 sm:$0xff]  }
 0x1e6   :  { %5740 = vmatprep.subr.bf16.mxu0 %v9020_v49  ;;  %v9091_v49 = vld [vmem:[%s12489_s1 + $0x168] ss:$28 sps:$4 sm:$0xff]  }
 0x1e8   :  { %5655 = vmatpush1.bf16.msra.mxu1 %v9015_v22  ;;  %v9094_v22 = vld [vmem:[%s12489_s1 + $0x89c] ss:$28 sps:$4 sm:$0xff]  }
 0x1e9   :  { %5741 = vmatpush1.bf16.msra.mxu0 %v9018_v7  ;;  %5656 = vmatprep.subr.bf16.mxu1 %v9023_v23  ;;  %v9095_v7 = vld [vmem:[%s12489_s1 + $0x360] ss:$28 sps:$4 sm:$0xff]   ;;  %v9092_v23 = vld [vmem:[%s12489_s1 + $0x898] ss:$28 sps:$4 sm:$0xff]  }
 0x1ea   :  { %5742 = vmatprep.subr.bf16.mxu0 %v9026_v24  ;;  %v9096_v24 = vld [vmem:[%s12489_s1 + $0x1a0] ss:$28 sps:$4 sm:$0xff]  }
 0x1ec   :  { %5657 = vmatpush1.bf16.msra.mxu1 %v9021_v25  ;;  %v9099_v25 = vld [vmem:[%s12489_s1 + $0x8d4] ss:$28 sps:$4 sm:$0xff]  }
 0x1ed   :  { %5743 = vmatpush1.bf16.msra.mxu0 %v9024_v33  ;;  %5658 = vmatprep.subr.bf16.mxu1 %v9029_v26  ;;  %v9100_v33 = vld [vmem:[%s12489_s1 + $0x558] ss:$28 sps:$4 sm:$0xff]   ;;  %v9097_v26 = vld [vmem:[%s12489_s1 + $0x8d0] ss:$28 sps:$4 sm:$0xff]  }
 0x1ee   :  { %5744 = vmatprep.subr.bf16.mxu0 %v9032_v12  ;;  %v9101_v12 = vld [vmem:[%s12489_s1 + $0x398] ss:$28 sps:$4 sm:$0xff]  }
 0x1f0   :  { %5659 = vmatpush1.bf16.msra.mxu1 %v9027_v27  ;;  %v9104_v27 = vld [vmem:[%s12489_s1 + $0x90c] ss:$28 sps:$4 sm:$0xff]  }
 0x1f1   :  { %5745 = vmatpush1.bf16.msra.mxu0 %v9030_v28  ;;  %5660 = vmatprep.subr.bf16.mxu1 %v9035_v29  ;;  %v9105_v28 = vld [vmem:[%s12489_s1 + $0x590] ss:$28 sps:$4 sm:$0xff]   ;;  %v9102_v29 = vld [vmem:[%s12489_s1 + $0x908] ss:$28 sps:$4 sm:$0xff]  }
 0x1f2   :  { %5746 = vmatprep.subr.bf16.mxu0 %v9038_v18  ;;  %v9106_v18 = vld [vmem:[%s12489_s1 + $0x3d0] ss:$28 sps:$4 sm:$0xff]  }
 0x1f4   :  { %5661 = vmatpush1.bf16.msra.mxu1 %v9033_v30  ;;  %v9109_v30 = vld [vmem:[%s12489_s1 + $0x944] ss:$28 sps:$4 sm:$0xff]  }
 0x1f5   :  { %5747 = vmatpush1.bf16.msra.mxu0 %v9036_v31  ;;  %5662 = vmatprep.subr.bf16.mxu1 %v9041_v32  ;;  %v9110_v31 = vld [vmem:[%s12489_s1 + $0x5c8] ss:$28 sps:$4 sm:$0xff]  }
 0x1f6   :  { %5748 = vmatprep.subr.bf16.mxu0 %v9044_v17  ;;  %v9111_v32 = vld [vmem:[%s12489_s1 + $0x408] ss:$28 sps:$4 sm:$0xff]   ;;  %v9114_v17 = vld [vmem:[%s12489_s1 + $0x97c] ss:$28 sps:$4 sm:$0xff]  }
 0x1f8   :  { %5663 = vmatpush1.bf16.msra.mxu1 %v9039_v34  ;;  %v9115_v34 = vld [vmem:[%s12489_s1 + $0x600] ss:$28 sps:$4 sm:$0xff]  }
 0x1f9   :  { %5749 = vmatpush1.bf16.msra.mxu0 %v9042_v35  ;;  %5664 = vmatprep.subr.bf16.mxu1 %v9047_v36  ;;  %v9116_v35 = vld [vmem:[%s12489_s1 + $0x440] ss:$28 sps:$4 sm:$0xff]   ;;  %v9119_v36 = vld [vmem:[%s12489_s1 + $0x9b4] ss:$28 sps:$4 sm:$0xff]  }
 0x1fa   :  { %5750 = vmatprep.subr.bf16.mxu0 %v9050_v20  ;;  %v9120_v20 = vld [vmem:[%s12489_s1 + $0x638] ss:$28 sps:$4 sm:$0xff]  }
 0x1fc   :  { %5665 = vmatpush1.bf16.msra.mxu1 %v9045_v37  ;;  %v9117_v37 = vld [vmem:[%s12489_s1 + $0x9b0] ss:$28 sps:$4 sm:$0xff]  }
 0x1fd   :  { %5751 = vmatpush1.bf16.msra.mxu0 %v9048_v38  ;;  %5666 = vmatprep.subr.bf16.mxu1 %v9053_v39  ;;  %v9121_v38 = vld [vmem:[%s12489_s1 + $0x478] ss:$28 sps:$4 sm:$0xff]   ;;  %v9124_v39 = vld [vmem:[%s12489_s1 + $0x9ec] ss:$28 sps:$4 sm:$0xff]  }
 0x1fe   :  { %5752 = vmatprep.subr.bf16.mxu0 %v9056_v40  ;;  %v9125_v40 = vld [vmem:[%s12489_s1 + $0x670] ss:$28 sps:$4 sm:$0xff]  }
 0x200   :  { %5667 = vmatpush1.bf16.msra.mxu1 %v9051_v41  ;;  %v9122_v41 = vld [vmem:[%s12489_s1 + $0x9e8] ss:$28 sps:$4 sm:$0xff]  }
 0x201   :  { %5753 = vmatpush1.bf16.msra.mxu0 %v9054_v42  ;;  %7948 = vmatprep.subr.bf16.mxu1 %v9060_v47  ;;  %v9126_v42 = vld [vmem:[%s12489_s1 + $0x4b0] ss:$28 sps:$4 sm:$0xff]   ;;  %v9130_v47 = vld [vmem:[%s12489_s1 + $0x6a8] ss:$28 sps:$4 sm:$0xff]  }
 0x202   :  { %5765 = vmatprep.subr.bf16.mxu0 %v9059_v46  ;;  %v9129_v46 = vld [vmem:[%s12489_s1 + $0xa24] ss:$28 sps:$4 sm:$0xff]  }
 0x203   :  { %5669 = vmatmul.mubr.bf16.vlgmr.msra.gmra.mrb[4].mxu1 %v9470_v57  ;;  %v9136_v57 = vld [vmem:[%s12489_s1 + $0x520] ss:$28 sps:$4 sm:$0xff]  }
 0x204   :  { %5755 = vmatmul.mubr.bf16.vlgmr.msra.gmra.mrb[4].mxu0 %v11224_v58  ;;  %7949 = vmatpush3.bf16.msra.mxu1 %v9061_v52  ;;  %v9131_v52 = vld [vmem:[%s12489_s1 + $0x4e8] ss:$28 sps:$4 sm:$0xff]  }
 0x205   :  { %5766 = vmatpush1.bf16.msra.mxu0 %v9057_v50  ;;  %7950 = vmatprep.subr.bf16.mxu1 %v9065_v55  ;;  %v9127_v50 = vld [vmem:[%s12489_s1 + $0xa20] ss:$28 sps:$4 sm:$0xff]  }
 0x206   :  { %5767 = vmatprep.subr.bf16.mxu0 %v9064_v53  ;;  %6012 = vmatprep.mubr.bf16.mxu1 %v9472_v63  ;;  %v9134_v53 = vld [vmem:[%s12489_s1 + $0xa5c] ss:$28 sps:$4 sm:$0xff]   ;;  %v9144_v63 = vld [vmem:[%s12489_s1 + $0xacc] ss:$28 sps:$4 sm:$0xff]  }
 0x207   :  { %5797 = vmatprep.mubr.bf16.mxu0 %v11245_v0  ;;  %v9135_v55 = vld [vmem:[%s12489_s1 + $0x6e0] ss:$28 sps:$4 sm:$0xff]  }
 0x208   :  { %7951 = vmatpush3.bf16.msra.mxu1 %v9066_v59  ;;  %v9139_v59 = vld [vmem:[%s12489_s1 + $0xa94] ss:$28 sps:$4 sm:$0xff]  }
 0x209   :  { %5768 = vmatpush1.bf16.msra.mxu0 %v9062_v56  ;;  %7952 = vmatprep.subr.bf16.mxu1 %v9070_v61  ;;  %v9132_v56 = vld [vmem:[%s12489_s1 + $0xa58] ss:$28 sps:$4 sm:$0xff]   ;;  %v9137_v61 = vld [vmem:[%s12489_s1 + $0xa90] ss:$28 sps:$4 sm:$0xff]  }
 0x20a   :  { %5769 = vmatprep.subr.bf16.mxu0 %v9069_v60  ;;  %v9140_v60 = vld [vmem:[%s12489_s1 + $0x8d8] ss:$28 sps:$4 sm:$0xff]  }
 0x20c   :  { %7953 = vmatpush3.bf16.msra.mxu1 %v9071_v1  ;;  %v9145_v1 = vld [vmem:[%s12489_s1 + $0x910] ss:$28 sps:$4 sm:$0xff]  }
 0x20d   :  { %5770 = vmatpush1.bf16.msra.mxu0 %v9067_v62  ;;  %7954 = vmatprep.subr.bf16.mxu1 %v9075_v3  ;;  %v9141_v62 = vld [vmem:[%s12489_s1 + $0x718] ss:$28 sps:$4 sm:$0xff]  }
 0x20e   :  { %5771 = vmatprep.subr.bf16.mxu0 %v9074_v2 }
 0x210   :  { %7955 = vmatpush3.bf16.msra.mxu1 %v9076_v5 }
 0x211   :  { %5772 = vmatpush1.bf16.msra.mxu0 %v9072_v4  ;;  %7956 = vmatprep.subr.bf16.mxu1 %v9080_v9 }
 0x212   :  { %5773 = vmatprep.subr.bf16.mxu0 %v9079_v8 }
 0x214   :  { %7957 = vmatpush3.bf16.msra.mxu1 %v9081_v11 }
 0x215   :  { %5774 = vmatpush1.bf16.msra.mxu0 %v9077_v10  ;;  %7958 = vmatprep.subr.bf16.mxu1 %v9085_v14 }
 0x216   :  { %5775 = vmatprep.subr.bf16.mxu0 %v9084_v13 }
 0x218   :  { %7959 = vmatpush3.bf16.msra.mxu1 %v9086_v16 }
 0x219   :  { %5776 = vmatpush1.bf16.msra.mxu0 %v9082_v15  ;;  %7960 = vmatprep.subr.bf16.mxu1 %v9090_v19 }
 0x21a   :  { %5777 = vmatprep.subr.bf16.mxu0 %v9089_v6 }
 0x21c   :  { %7961 = vmatpush3.bf16.msra.mxu1 %v9091_v49 }
 0x21d   :  { %5778 = vmatpush1.bf16.msra.mxu0 %v9087_v21  ;;  %7962 = vmatprep.subr.bf16.mxu1 %v9095_v7 }
 0x21e   :  { %5779 = vmatprep.subr.bf16.mxu0 %v9094_v22 }
 0x220   :  { %7963 = vmatpush3.bf16.msra.mxu1 %v9096_v24 }
 0x221   :  { %5780 = vmatpush1.bf16.msra.mxu0 %v9092_v23  ;;  %7970 = vmatprep.subr.bf16.mxu1 %v9100_v33 }
 0x222   :  { %5781 = vmatprep.subr.bf16.mxu0 %v9099_v25 }
 0x223   :  { %6013 = vmatmul.mubr.bf16.vlgmr.msra.gmra.mrb[8].mxu1 %v11014_v44  ;;  %v9107_v44 = vld [vmem:[%s12489_s1 + $0x940] ss:$28 sps:$4 sm:$0xff]  }
 0x224   :  { %7971 = vmatpush3.bf16.msra.mxu1 %v9101_v12  ;;  %6053 = vmatprep.mubr.bf16.mxu1 %v11035_v54  ;;  %v9112_v54 = vld [vmem:[%s12489_s1 + $0x978] ss:$28 sps:$4 sm:$0xff]  }
 0x225   :  { %5782 = vmatpush1.bf16.msra.mxu0 %v9097_v26  ;;  %7972 = vmatprep.subr.bf16.mxu1 %v9105_v28 }
 0x226   :  { %5783 = vmatprep.subr.bf16.mxu0 %v9104_v27 }
 0x228   :  { %7973 = vmatpush3.bf16.msra.mxu1 %v9106_v18 }
 0x229   :  { %5784 = vmatpush1.bf16.msra.mxu0 %v9102_v29  ;;  %7974 = vmatprep.subr.bf16.mxu1 %v9110_v31 }
 0x22a   :  { %5785 = vmatprep.subr.bf16.mxu0 %v9109_v30 }
 0x22c   :  { %7975 = vmatpush3.bf16.msra.mxu1 %v9111_v32 }
 0x22d   :  { %5786 = vmatpush1.bf16.msra.mxu0 %v9107_v44  ;;  %7976 = vmatprep.subr.bf16.mxu1 %v9115_v34 }
 0x22e   :  { %5787 = vmatprep.subr.bf16.mxu0 %v9114_v17 }
 0x230   :  { %7977 = vmatpush3.bf16.msra.mxu1 %v9116_v35 }
 0x231   :  { %5788 = vmatpush1.bf16.msra.mxu0 %v9112_v54  ;;  %7978 = vmatprep.subr.bf16.mxu1 %v9120_v20 }
 0x232   :  { %5789 = vmatprep.subr.bf16.mxu0 %v9119_v36 }
 0x234   :  { %7979 = vmatpush3.bf16.msra.mxu1 %v9121_v38 }
 0x235   :  { %5790 = vmatpush1.bf16.msra.mxu0 %v9117_v37  ;;  %7980 = vmatprep.subr.bf16.mxu1 %v9125_v40 }
 0x236   :  { %5791 = vmatprep.subr.bf16.mxu0 %v9124_v39 }
 0x238   :  { %7981 = vmatpush3.bf16.msra.mxu1 %v9126_v42 }
 0x239   :  { %5792 = vmatpush1.bf16.msra.mxu0 %v9122_v41  ;;  %7982 = vmatprep.subr.bf16.mxu1 %v9130_v47 }
 0x23a   :  { %5793 = vmatprep.subr.bf16.mxu0 %v9129_v46 }
 0x23c   :  { %7983 = vmatpush3.bf16.msra.mxu1 %v9131_v52 }
 0x23d   :  { %5794 = vmatpush1.bf16.msra.mxu0 %v9127_v50  ;;  %7984 = vmatprep.subr.bf16.mxu1 %v9135_v55 }
 0x23e   :  { %5795 = vmatprep.subr.bf16.mxu0 %v9134_v53 }
 0x240   :  { %7985 = vmatpush3.bf16.msra.mxu1 %v9136_v57 }
 0x241   :  { %5796 = vmatpush1.bf16.msra.mxu0 %v9132_v56  ;;  %7992 = vmatprep.subr.bf16.mxu1 %v9140_v60 }
 0x242   :  { %5808 = vmatprep.subr.bf16.mxu0 %v9139_v59 }
 0x243   :  { %12 = vsyncpa [#allocation3], 0  ;;  %v11430_v2 = vld [vmem:[%s12488_s0 + $0x10] ss:$56 sps:$4 sm:$0xff]   ;;  %6054 = vmatmul.mubr.bf16.vlgmr.msra.gmra.mrb[12].mxu1 %v11224_v58  ;;  %v940_v5 = vlaneseq  ;;  %v9149_v8 = vld [vmem:[%s12489_s1 + $0xb04] ss:$28 sps:$4 sm:$0xff]  }
 0x244   :  { %5798 = vmatmul.mubr.bf16.vlgmr.msra.gmra.mrb[4].mxu0 %v11430_v2  ;;  %7993 = vmatpush3.bf16.msra.mxu1 %v9141_v62  ;;  %v9142_v3 = vld [vmem:[%s12489_s1 + $0xac8] ss:$28 sps:$4 sm:$0xff]   ;;  %v9146_v4 = vld [vmem:[%s12489_s1 + $0x750] ss:$28 sps:$4 sm:$0xff]   ;;  %v11450_v9 = vld [vmem:[%s12488_s0 + $0x1c] ss:$56 sps:$4 sm:$0xff]  }
 0x245   :  { %5809 = vmatpush1.bf16.msra.mxu0 %v9137_v61  ;;  %7994 = vmatprep.subr.bf16.mxu1 %v9145_v1  ;;  %v9150_v58 = vld [vmem:[%s12489_s1 + $0x948] ss:$28 sps:$4 sm:$0xff]   ;;  %v9147_v10 = vld [vmem:[%s12489_s1 + $0xb00] ss:$28 sps:$4 sm:$0xff]   ;;  %v11459_v13 = vshrl.u32 %v940_v5, 7  ;;  %vm6272_vm0 = vcmask 261120  }
 0x246   :  { %5810 = vmatprep.subr.bf16.mxu0 %v9144_v63  ;;  %6094 = vmatprep.mubr.bf16.mxu1 %v11245_v0  ;;  %v9151_v11 = vld [vmem:[%s12489_s1 + $0x788] ss:$28 sps:$4 sm:$0xff]   ;;  %v9154_v0 = vld [vmem:[%s12489_s1 + $0xb3c] ss:$28 sps:$4 sm:$0xff]   ;;  %v9159_v19 = vld [vmem:[%s12489_s1 + $0xb74] ss:$28 sps:$4 sm:$0xff]  }
 0x247   :  { %5840 = vmatprep.mubr.bf16.mxu0 %v11450_v9  ;;  %v9155_v14 = vld [vmem:[%s12489_s1 + $0x980] ss:$28 sps:$4 sm:$0xff]   ;;  %v9152_v15 = vld [vmem:[%s12489_s1 + $0xb38] ss:$28 sps:$4 sm:$0xff]   ;;  %v11474_v6 = vsub.s32 0, %v11459_v13  ;;  %v11488_v22 = vsub.s32 1, %v11459_v13 }
 0x248   :  { %7995 = vmatpush3.bf16.msra.mxu1 %v9146_v4  ;;  %v9156_v16 = vld [vmem:[%s12489_s1 + $0x7c0] ss:$28 sps:$4 sm:$0xff]   ;;  %v9160_v21 = vld [vmem:[%s12489_s1 + $0x9b8] ss:$28 sps:$4 sm:$0xff]   ;;  %v9157_v7 = vld [vmem:[%s12489_s1 + $0xb70] ss:$28 sps:$4 sm:$0xff]  }
 0x249   :  { %5811 = vmatpush1.bf16.msra.mxu0 %v9142_v3  ;;  %7996 = vmatprep.subr.bf16.mxu1 %v9150_v58  ;;  %v11485_v49 = vld [vmem:[%s12490_s2] sm:$0x7f]  ;;  %v9161_v23 = vld [vmem:[%s12489_s1 + $0x7f8] ss:$28 sps:$4 sm:$0xff]   ;;  %v9164_v25 = vld [vmem:[%s12489_s1 + $0xbac] ss:$28 sps:$4 sm:$0xff]  }
 0x24a   :  { %5812 = vmatprep.subr.bf16.mxu0 %v9149_v8  ;;  %v943_v24 = vrot.slane %v11485_v49, %v11474_v6  ;;  %v9165_v33 = vld [vmem:[%s12489_s1 + $0x9f0] ss:$28 sps:$4 sm:$0xff]   ;;  %v947_v26 = vrot.slane %v11485_v49, %v11488_v22  ;;  %v9162_v12 = vld [vmem:[%s12489_s1 + $0xba8] ss:$28 sps:$4 sm:$0xff]   ;;  %v9167_v35 = vld [vmem:[%s12489_s1 + $0xbe0] ss:$28 sps:$4 sm:$0xff]  }
 0x24b   :  { %v9166_v27 = vld [vmem:[%s12489_s1 + $0x830] ss:$28 sps:$4 sm:$0xff]   ;;  %v9169_v29 = vld [vmem:[%s12489_s1 + $0xbe4] ss:$28 sps:$4 sm:$0xff]   ;;  %v9172_v38 = vld [vmem:[%s12489_s1 + $0xc18] ss:$28 sps:$4 sm:$0xff]  }
 0x24c   :  { %7997 = vmatpush3.bf16.msra.mxu1 %v9151_v11  ;;  %v5112_v28 = vadd.f32 %v10461_v43, %v943_v24  ;;  %v9170_v18 = vld [vmem:[%s12489_s1 + $0xa28] ss:$28 sps:$4 sm:$0xff]   ;;  %v5114_v30 = vadd.f32 %v10466_v45, %v947_v26  ;;  %v5116_v44 = vadd.f32 %v10474_v48, %v943_v24  ;;  %v5118_v43 = vadd.f32 %v10479_v51, %v947_v26  ;;  %v9174_v51 = vld [vmem:[%s12489_s1 + $0xc1c] ss:$28 sps:$4 sm:$0xff]   ;;  %v9179_v40 = vld [vmem:[%s12489_s1 + $0xc54] ss:$28 sps:$4 sm:$0xff]  }
 0x24d   :  { %5813 = vmatpush1.bf16.msra.mxu0 %v9147_v10  ;;  %7998 = vmatprep.subr.bf16.mxu1 %v9155_v14  ;;  %v9171_v45 = vld [vmem:[%s12489_s1 + $0x868] ss:$28 sps:$4 sm:$0xff]   ;;  %v9175_v20 = vld [vmem:[%s12489_s1 + $0xa60] ss:$28 sps:$4 sm:$0xff]   ;;  %v9180_v41 = vld [vmem:[%s12489_s1 + $0xc58] ss:$28 sps:$4 sm:$0xff]  }
 0x24e   :  { %5814 = vmatprep.subr.bf16.mxu0 %v9154_v0  ;;  %v9176_v39 = vld [vmem:[%s12489_s1 + $0x8a0] ss:$28 sps:$4 sm:$0xff]   ;;  %v9177_v42 = vld [vmem:[%s12489_s1 + $0xc50] ss:$28 sps:$4 sm:$0xff]   ;;  %v9181_v46 = vld [vmem:[%s12489_s1 + $0xa98] ss:$28 sps:$4 sm:$0xff]  }
 0x24f   :  { %v9184_v47 = vld [vmem:[%s12489_s1 + $0xc8c] ss:$28 sps:$4 sm:$0xff]   ;;  %v9189_v55 = vld [vmem:[%s12489_s1 + $0xcc4] ss:$28 sps:$4 sm:$0xff]   ;;  %v9194_v60 = vld [vmem:[%s12489_s1 + $0xcfc] ss:$28 sps:$4 sm:$0xff]  }
 0x250   :  { %7999 = vmatpush3.bf16.msra.mxu1 %v9156_v16  ;;  %v9185_v50 = vld [vmem:[%s12489_s1 + $0xc90] ss:$28 sps:$4 sm:$0xff]   ;;  %v9182_v52 = vld [vmem:[%s12489_s1 + $0xc88] ss:$28 sps:$4 sm:$0xff]   ;;  %v9187_v57 = vld [vmem:[%s12489_s1 + $0xcc0] ss:$28 sps:$4 sm:$0xff]  }
 0x251   :  { %5815 = vmatpush1.bf16.msra.mxu0 %v9152_v15  ;;  %8000 = vmatprep.subr.bf16.mxu1 %v9160_v21  ;;  %v9186_v53 = vld [vmem:[%s12489_s1 + $0xad0] ss:$28 sps:$4 sm:$0xff]   ;;  %v9190_v56 = vld [vmem:[%s12489_s1 + $0xcc8] ss:$28 sps:$4 sm:$0xff]   ;;  %v9195_v61 = vld [vmem:[%s12489_s1 + $0xd00] ss:$28 sps:$4 sm:$0xff]  }
 0x252   :  { %5816 = vmatprep.subr.bf16.mxu0 %v9159_v19  ;;  %v9191_v59 = vld [vmem:[%s12489_s1 + $0xb08] ss:$28 sps:$4 sm:$0xff]   ;;  %v9192_v62 = vld [vmem:[%s12489_s1 + $0xcf8] ss:$28 sps:$4 sm:$0xff]   ;;  %v9196_v63 = vld [vmem:[%s12489_s1 + $0xb40] ss:$28 sps:$4 sm:$0xff]  }
 0x253   :  { %v9199_v1 = vld [vmem:[%s12489_s1 + $0xd34] ss:$28 sps:$4 sm:$0xff]   ;;  %v9204_v5 = vld [vmem:[%s12489_s1 + $0xd6c] ss:$28 sps:$4 sm:$0xff]   ;;  %v9209_v10 = vld [vmem:[%s12489_s1 + $0xda4] ss:$28 sps:$4 sm:$0xff]  }
 0x254   :  { %8001 = vmatpush3.bf16.msra.mxu1 %v9161_v23  ;;  %v9197_v3 = vld [vmem:[%s12489_s1 + $0xd30] ss:$28 sps:$4 sm:$0xff]   ;;  %v9201_v4 = vld [vmem:[%s12489_s1 + $0xb78] ss:$28 sps:$4 sm:$0xff]   ;;  %v9202_v58 = vld [vmem:[%s12489_s1 + $0xd68] ss:$28 sps:$4 sm:$0xff]  }
 0x255   :  { %5817 = vmatpush1.bf16.msra.mxu0 %v9157_v7  ;;  %8002 = vmatprep.subr.bf16.mxu1 %v9165_v33  ;;  %v9205_v8 = vld [vmem:[%s12489_s1 + $0xd70] ss:$28 sps:$4 sm:$0xff]   ;;  %v9210_v11 = vld [vmem:[%s12489_s1 + $0xda8] ss:$28 sps:$4 sm:$0xff]   ;;  %v9207_v0 = vld [vmem:[%s12489_s1 + $0xda0] ss:$28 sps:$4 sm:$0xff]  }
 0x256   :  { %5818 = vmatprep.subr.bf16.mxu0 %v9164_v25  ;;  %v9211_v14 = vld [vmem:[%s12489_s1 + $0xbe8] ss:$28 sps:$4 sm:$0xff]   ;;  %v9214_v15 = vld [vmem:[%s12489_s1 + $0xddc] ss:$28 sps:$4 sm:$0xff]   ;;  %v9219_v7 = vld [vmem:[%s12489_s1 + $0xe14] ss:$28 sps:$4 sm:$0xff]  }
 0x257   :  { %v5369_v31 = vpop.f32.mrb[0].mxu0  ;;  %v9215_v16 = vld [vmem:[%s12489_s1 + $0xde0] ss:$28 sps:$4 sm:$0xff]   ;;  %v9212_v19 = vld [vmem:[%s12489_s1 + $0xdd8] ss:$28 sps:$4 sm:$0xff]   ;;  %vm9508_vm15 = vmmov 0  }
 0x258   :  { %v11521_v32 = vadd.f32 %v5369_v31, %v5112_v28  ;;  %v5371_v17 = vpop.f32.mrb[1].mxu0  ;;  %8003 = vmatpush3.bf16.msra.mxu1 %v9166_v27  ;;  %v9216_v21 = vld [vmem:[%s12489_s1 + $0xc20] ss:$28 sps:$4 sm:$0xff]   ;;  %v9220_v23 = vld [vmem:[%s12489_s1 + $0xfd8] ss:$28 sps:$4 sm:$0xff]  }
 0x259   :  { %v11524_v34 = vadd.f32 %v5371_v17, %v5114_v30  ;;  %v5373_v54 = vpop.f32.mrb[2].mxu0  ;;  %5819 = vmatpush1.bf16.msra.mxu0 %v9162_v12  ;;  %8004 = vmatprep.subr.bf16.mxu1 %v9170_v18  ;;  %v9217_v24 = vld [vmem:[%s12489_s1 + $0xe10] ss:$28 sps:$4 sm:$0xff]   ;;  %v9221_v25 = vld [vmem:[%s12489_s1 + $0xe18] ss:$28 sps:$4 sm:$0xff]  }
 0x25a   :  { %v11532_v36 = vadd.f32 %v5373_v54, %v5116_v44  ;;  %v5375_v48 = vpop.f32.mrb[3].mxu0  ;;  %5820 = vmatprep.subr.bf16.mxu0 %v9169_v29  ;;  %v9224_v33 = vld [vmem:[%s12489_s1 + $0xe4c] ss:$28 sps:$4 sm:$0xff]   ;;  %v9476_v12 = vld [vmem:[%s12488_s0 + $0x18] ss:$56 sps:$4 sm:$0xff]  }
 0x25b   :  { %v11540_v37 = vadd.f32 %v5375_v48, %v5118_v43  ;;  %v9225_v26 = vld [vmem:[%s12489_s1 + $0x1010] ss:$28 sps:$4 sm:$0xff]   ;;  %v9222_v27 = vld [vmem:[%s12489_s1 + $0xe48] ss:$28 sps:$4 sm:$0xff]   ;;  %v9227_v31 = vld [vmem:[%s12489_s1 + $0xe80] ss:$28 sps:$4 sm:$0xff]  }
 0x25c   :  { %8005 = vmatpush3.bf16.msra.mxu1 %v9171_v45  ;;  %v9226_v28 = vld [vmem:[%s12489_s1 + $0xe50] ss:$28 sps:$4 sm:$0xff]   ;;  %v9229_v29 = vld [vmem:[%s12489_s1 + $0xe84] ss:$28 sps:$4 sm:$0xff]   ;;  %v9234_v17 = vld [vmem:[%s12489_s1 + $0xebc] ss:$28 sps:$4 sm:$0xff]  }
 0x25d   :  { %5821 = vmatpush1.bf16.msra.mxu0 %v9167_v35  ;;  %8006 = vmatprep.subr.bf16.mxu1 %v9175_v20  ;;  %v9230_v18 = vld [vmem:[%s12489_s1 + $0x1048] ss:$28 sps:$4 sm:$0xff]   ;;  %v9235_v43 = vld [vmem:[%s12489_s1 + $0x1080] ss:$28 sps:$4 sm:$0xff]   ;;  %v9232_v54 = vld [vmem:[%s12489_s1 + $0xeb8] ss:$28 sps:$4 sm:$0xff]  }
 0x25e   :  { %5822 = vmatprep.subr.bf16.mxu0 %v9174_v51  ;;  %v9477_v30 = vld [vmem:[%s12488_s0 + $0x24] ss:$56 sps:$4 sm:$0xff]   ;;  %v9239_v45 = vld [vmem:[%s12489_s1 + $0xef4] ss:$28 sps:$4 sm:$0xff]  }
 0x25f   :  { %v9231_v44 = vld [vmem:[%s12489_s1 + $0xe88] ss:$28 sps:$4 sm:$0xff]   ;;  %v9236_v35 = vld [vmem:[%s12489_s1 + $0xec0] ss:$28 sps:$4 sm:$0xff]   ;;  %v9240_v48 = vld [vmem:[%s12489_s1 + $0x10b8] ss:$28 sps:$4 sm:$0xff]  }
 0x260   :  { %8007 = vmatpush3.bf16.msra.mxu1 %v9176_v39  ;;  %v9237_v51 = vld [vmem:[%s12489_s1 + $0xef0] ss:$28 sps:$4 sm:$0xff]   ;;  %v9241_v20 = vld [vmem:[%s12489_s1 + $0xef8] ss:$28 sps:$4 sm:$0xff]  }
 0x261   :  { %5823 = vmatpush1.bf16.msra.mxu0 %v9172_v38  ;;  %8014 = vmatprep.subr.bf16.mxu1 %v9180_v41  ;;  %v9244_v38 = vld [vmem:[%s12489_s1 + $0xf2c] ss:$28 sps:$4 sm:$0xff]  }
 0x262   :  { %5824 = vmatprep.subr.bf16.mxu0 %v9179_v40  ;;  %v9245_v39 = vld [vmem:[%s12489_s1 + $0x10f0] ss:$28 sps:$4 sm:$0xff]   ;;  %v9242_v40 = vld [vmem:[%s12489_s1 + $0xf28] ss:$28 sps:$4 sm:$0xff]  }
 0x263   :  { %6095 = vmatmul.mubr.bf16.vlgmr.msra.gmra.mrb[16].mxu1 %v11430_v2  ;;  %v9200_v2 = vld [vmem:[%s12489_s1 + $0xd38] ss:$28 sps:$4 sm:$0xff]   ;;  %v9246_v41 = vld [vmem:[%s12489_s1 + $0xf30] ss:$28 sps:$4 sm:$0xff]  }
 0x264   :  { %8015 = vmatpush3.bf16.msra.mxu1 %v9181_v46  ;;  %6135 = vmatprep.mubr.bf16.mxu1 %v11450_v9  ;;  %v9206_v9 = vld [vmem:[%s12489_s1 + $0xbb0] ss:$28 sps:$4 sm:$0xff]   ;;  %v9250_v46 = vld [vmem:[%s12489_s1 + $0x1128] ss:$28 sps:$4 sm:$0xff]  }
 0x265   :  { %5825 = vmatpush1.bf16.msra.mxu0 %v9177_v42  ;;  %8016 = vmatprep.subr.bf16.mxu1 %v9185_v50  ;;  %v9249_v42 = vld [vmem:[%s12489_s1 + $0xf64] ss:$28 sps:$4 sm:$0xff]  }
 0x266   :  { %5826 = vmatprep.subr.bf16.mxu0 %v9184_v47  ;;  %v9247_v47 = vld [vmem:[%s12489_s1 + $0xf60] ss:$28 sps:$4 sm:$0xff]   ;;  %v9251_v50 = vld [vmem:[%s12489_s1 + $0xf68] ss:$28 sps:$4 sm:$0xff]  }
 0x268   :  { %8017 = vmatpush3.bf16.msra.mxu1 %v9186_v53  ;;  %v9255_v53 = vld [vmem:[%s12489_s1 + $0x1160] ss:$28 sps:$4 sm:$0xff]  }
 0x269   :  { %5827 = vmatpush1.bf16.msra.mxu0 %v9182_v52  ;;  %8018 = vmatprep.subr.bf16.mxu1 %v9190_v56  ;;  %v9254_v52 = vld [vmem:[%s12489_s1 + $0xf9c] ss:$28 sps:$4 sm:$0xff]  }
 0x26a   :  { %5828 = vmatprep.subr.bf16.mxu0 %v9189_v55  ;;  %v9252_v55 = vld [vmem:[%s12489_s1 + $0xf98] ss:$28 sps:$4 sm:$0xff]   ;;  %v9256_v56 = vld [vmem:[%s12489_s1 + $0xfa0] ss:$28 sps:$4 sm:$0xff]  }
 0x26c   :  { %8019 = vmatpush3.bf16.msra.mxu1 %v9191_v59  ;;  %v9260_v59 = vld [vmem:[%s12489_s1 + $0x1358] ss:$28 sps:$4 sm:$0xff]  }
 0x26d   :  { %5829 = vmatpush1.bf16.msra.mxu0 %v9187_v57  ;;  %8020 = vmatprep.subr.bf16.mxu1 %v9195_v61  ;;  %v9259_v57 = vld [vmem:[%s12489_s1 + $0xfd4] ss:$28 sps:$4 sm:$0xff]  }
 0x26e   :  { %5830 = vmatprep.subr.bf16.mxu0 %v9194_v60  ;;  %v9257_v60 = vld [vmem:[%s12489_s1 + $0xfd0] ss:$28 sps:$4 sm:$0xff]   ;;  %v9261_v61 = vld [vmem:[%s12489_s1 + $0x1198] ss:$28 sps:$4 sm:$0xff]  }
 0x270   :  { %8021 = vmatpush3.bf16.msra.mxu1 %v9196_v63  ;;  %v9265_v63 = vld [vmem:[%s12489_s1 + $0x1390] ss:$28 sps:$4 sm:$0xff]  }
 0x271   :  { %5831 = vmatpush1.bf16.msra.mxu0 %v9192_v62  ;;  %8022 = vmatprep.subr.bf16.mxu1 %v9200_v2  ;;  %v9264_v62 = vld [vmem:[%s12489_s1 + $0x100c] ss:$28 sps:$4 sm:$0xff]  }
 0x272   :  { %5832 = vmatprep.subr.bf16.mxu0 %v9199_v1  ;;  %v11769_v1 = vld [vmem:[%s12488_s0 + $0x20] ss:$56 sps:$4 sm:$0xff]   ;;  %v9262_v2 = vld [vmem:[%s12489_s1 + $0x1008] ss:$28 sps:$4 sm:$0xff]  }
 0x274   :  { %8023 = vmatpush3.bf16.msra.mxu1 %v9201_v4  ;;  %v9269_v4 = vld [vmem:[%s12489_s1 + $0x1044] ss:$28 sps:$4 sm:$0xff]  }
 0x275   :  { %5833 = vmatpush1.bf16.msra.mxu0 %v9197_v3  ;;  %8024 = vmatprep.subr.bf16.mxu1 %v9205_v8  ;;  %v9266_v3 = vld [vmem:[%s12489_s1 + $0x11d0] ss:$28 sps:$4 sm:$0xff]  }
 0x276   :  { %5834 = vmatprep.subr.bf16.mxu0 %v9204_v5  ;;  %v9270_v5 = vld [vmem:[%s12489_s1 + $0x13c8] ss:$28 sps:$4 sm:$0xff]  }
 0x277   :  { %v11787_v8 = vld [vmem:[%s12488_s0 + $0x2c] ss:$56 sps:$4 sm:$0xff]  }
 0x278   :  { %8025 = vmatpush3.bf16.msra.mxu1 %v9206_v9  ;;  %v9271_v9 = vld [vmem:[%s12489_s1 + $0x1208] ss:$28 sps:$4 sm:$0xff]  }
 0x279   :  { %5835 = vmatpush1.bf16.msra.mxu0 %v9202_v58  ;;  %8026 = vmatprep.subr.bf16.mxu1 %v9210_v11  ;;  %v9267_v58 = vld [vmem:[%s12489_s1 + $0x1040] ss:$28 sps:$4 sm:$0xff]  }
 0x27a   :  { %5836 = vmatprep.subr.bf16.mxu0 %v9209_v10  ;;  %v9274_v10 = vld [vmem:[%s12489_s1 + $0x107c] ss:$28 sps:$4 sm:$0xff]  }
 0x27b   :  { %v9275_v11 = vld [vmem:[%s12489_s1 + $0x1400] ss:$28 sps:$4 sm:$0xff]  }
 0x27c   :  { %8027 = vmatpush3.bf16.msra.mxu1 %v9211_v14  ;;  %v9276_v14 = vld [vmem:[%s12489_s1 + $0x1240] ss:$28 sps:$4 sm:$0xff]  }
 0x27d   :  { %5837 = vmatpush1.bf16.msra.mxu0 %v9207_v0  ;;  %8028 = vmatprep.subr.bf16.mxu1 %v9215_v16  ;;  %v9272_v0 = vld [vmem:[%s12489_s1 + $0x1078] ss:$28 sps:$4 sm:$0xff]  }
 0x27e   :  { %5838 = vmatprep.subr.bf16.mxu0 %v9214_v15  ;;  %v9279_v15 = vld [vmem:[%s12489_s1 + $0x10b4] ss:$28 sps:$4 sm:$0xff]  }
 0x27f   :  { %v9280_v16 = vld [vmem:[%s12489_s1 + $0x1438] ss:$28 sps:$4 sm:$0xff]  }
 0x280   :  { %8029 = vmatpush3.bf16.msra.mxu1 %v9216_v21  ;;  %v9281_v21 = vld [vmem:[%s12489_s1 + $0x1278] ss:$28 sps:$4 sm:$0xff]  }
 0x281   :  { %5839 = vmatpush1.bf16.msra.mxu0 %v9212_v19  ;;  %8036 = vmatprep.subr.bf16.mxu1 %v9220_v23  ;;  %v9277_v19 = vld [vmem:[%s12489_s1 + $0x10b0] ss:$28 sps:$4 sm:$0xff]  }
 0x282   :  { %5851 = vmatprep.subr.bf16.mxu0 %v9219_v7  ;;  %v9284_v7 = vld [vmem:[%s12489_s1 + $0x10ec] ss:$28 sps:$4 sm:$0xff]  }
 0x283   :  { %6136 = vmatmul.mubr.bf16.vlgmr.msra.gmra.mrb[20].mxu1 %v9476_v12  ;;  %v9285_v23 = vld [vmem:[%s12489_s1 + $0x1470] ss:$28 sps:$4 sm:$0xff]  }
 0x284   :  { %5841 = vmatmul.mubr.bf16.vlgmr.msra.gmra.mrb[4].mxu0 %v9476_v12  ;;  %8037 = vmatpush3.bf16.msra.mxu1 %v9221_v25  ;;  %v9286_v25 = vld [vmem:[%s12489_s1 + $0x12b0] ss:$28 sps:$4 sm:$0xff]   ;;  %v9287_v12 = vld [vmem:[%s12489_s1 + $0x1120] ss:$28 sps:$4 sm:$0xff]  }
 0x285   :  { %5852 = vmatpush1.bf16.msra.mxu0 %v9217_v24  ;;  %8038 = vmatprep.subr.bf16.mxu1 %v9225_v26  ;;  %v9282_v24 = vld [vmem:[%s12489_s1 + $0x10e8] ss:$28 sps:$4 sm:$0xff]  }
 0x286   :  { %5853 = vmatprep.subr.bf16.mxu0 %v9224_v33  ;;  %6176 = vmatprep.mubr.bf16.mxu1 %v9477_v30  ;;  %v9289_v33 = vld [vmem:[%s12489_s1 + $0x1124] ss:$28 sps:$4 sm:$0xff]  }
 0x287   :  { %5883 = vmatprep.mubr.bf16.mxu0 %v9477_v30  ;;  %v9290_v26 = vld [vmem:[%s12489_s1 + $0x14a8] ss:$28 sps:$4 sm:$0xff]   ;;  %v9296_v30 = vld [vmem:[%s12489_s1 + $0x1320] ss:$28 sps:$4 sm:$0xff]  }
 0x288   :  { %8039 = vmatpush3.bf16.msra.mxu1 %v9226_v28  ;;  %v9294_v28 = vld [vmem:[%s12489_s1 + $0x115c] ss:$28 sps:$4 sm:$0xff]  }
 0x289   :  { %5854 = vmatpush1.bf16.msra.mxu0 %v9222_v27  ;;  %8040 = vmatprep.subr.bf16.mxu1 %v9230_v18  ;;  %v9291_v27 = vld [vmem:[%s12489_s1 + $0x12e8] ss:$28 sps:$4 sm:$0xff]   ;;  %v9292_v18 = vld [vmem:[%s12489_s1 + $0x1158] ss:$28 sps:$4 sm:$0xff]  }
 0x28a   :  { %5855 = vmatprep.subr.bf16.mxu0 %v9229_v29  ;;  %v9295_v29 = vld [vmem:[%s12489_s1 + $0x14e0] ss:$28 sps:$4 sm:$0xff]  }
 0x28c   :  { %8041 = vmatpush3.bf16.msra.mxu1 %v9231_v44  ;;  %v9300_v44 = vld [vmem:[%s12489_s1 + $0x16d8] ss:$28 sps:$4 sm:$0xff]  }
 0x28d   :  { %5856 = vmatpush1.bf16.msra.mxu0 %v9227_v31  ;;  %8042 = vmatprep.subr.bf16.mxu1 %v9235_v43  ;;  %v9299_v31 = vld [vmem:[%s12489_s1 + $0x1194] ss:$28 sps:$4 sm:$0xff]  }
 0x28e   :  { %5857 = vmatprep.subr.bf16.mxu0 %v9234_v17  ;;  %v9297_v17 = vld [vmem:[%s12489_s1 + $0x1190] ss:$28 sps:$4 sm:$0xff]   ;;  %v9301_v43 = vld [vmem:[%s12489_s1 + $0x1518] ss:$28 sps:$4 sm:$0xff]  }
 0x290   :  { %8043 = vmatpush3.bf16.msra.mxu1 %v9236_v35  ;;  %v9305_v35 = vld [vmem:[%s12489_s1 + $0x1710] ss:$28 sps:$4 sm:$0xff]  }
 0x291   :  { %5858 = vmatpush1.bf16.msra.mxu0 %v9232_v54  ;;  %8044 = vmatprep.subr.bf16.mxu1 %v9240_v48  ;;  %v9304_v54 = vld [vmem:[%s12489_s1 + $0x11cc] ss:$28 sps:$4 sm:$0xff]  }
 0x292   :  { %5859 = vmatprep.subr.bf16.mxu0 %v9239_v45  ;;  %v11877_v45 = vld [vmem:[%s12488_s0 + $0x28] ss:$56 sps:$4 sm:$0xff]  }
 0x293   :  { %v9302_v48 = vld [vmem:[%s12489_s1 + $0x11c8] ss:$28 sps:$4 sm:$0xff]  }
 0x294   :  { %8045 = vmatpush3.bf16.msra.mxu1 %v9241_v20  ;;  %v9309_v20 = vld [vmem:[%s12489_s1 + $0x1204] ss:$28 sps:$4 sm:$0xff]  }
 0x295   :  { %5860 = vmatpush1.bf16.msra.mxu0 %v9237_v51  ;;  %8046 = vmatprep.subr.bf16.mxu1 %v9245_v39  ;;  %v9306_v51 = vld [vmem:[%s12489_s1 + $0x1550] ss:$28 sps:$4 sm:$0xff]  }
 0x296   :  { %5861 = vmatprep.subr.bf16.mxu0 %v9244_v38  ;;  %v9310_v38 = vld [vmem:[%s12489_s1 + $0x1748] ss:$28 sps:$4 sm:$0xff]   ;;  %v11896_v39 = vld [vmem:[%s12488_s0 + $0x34] ss:$56 sps:$4 sm:$0xff]  }
 0x298   :  { %8047 = vmatpush3.bf16.msra.mxu1 %v9246_v41  ;;  %v9311_v41 = vld [vmem:[%s12489_s1 + $0x1588] ss:$28 sps:$4 sm:$0xff]  }
 0x299   :  { %5862 = vmatpush1.bf16.msra.mxu0 %v9242_v40  ;;  %8048 = vmatprep.subr.bf16.mxu1 %v9250_v46  ;;  %v9307_v40 = vld [vmem:[%s12489_s1 + $0x1200] ss:$28 sps:$4 sm:$0xff]  }
 0x29a   :  { %5863 = vmatprep.subr.bf16.mxu0 %v9249_v42  ;;  %v9314_v42 = vld [vmem:[%s12489_s1 + $0x123c] ss:$28 sps:$4 sm:$0xff]  }
 0x29b   :  { %v9315_v46 = vld [vmem:[%s12489_s1 + $0x1780] ss:$28 sps:$4 sm:$0xff]  }
 0x29c   :  { %8049 = vmatpush3.bf16.msra.mxu1 %v9251_v50  ;;  %v9316_v50 = vld [vmem:[%s12489_s1 + $0x15c0] ss:$28 sps:$4 sm:$0xff]  }
 0x29d   :  { %5864 = vmatpush1.bf16.msra.mxu0 %v9247_v47  ;;  %8050 = vmatprep.subr.bf16.mxu1 %v9255_v53  ;;  %v9312_v47 = vld [vmem:[%s12489_s1 + $0x1238] ss:$28 sps:$4 sm:$0xff]  }
 0x29e   :  { %5865 = vmatprep.subr.bf16.mxu0 %v9254_v52  ;;  %v9319_v52 = vld [vmem:[%s12489_s1 + $0x1274] ss:$28 sps:$4 sm:$0xff]  }
 0x29f   :  { %v9320_v53 = vld [vmem:[%s12489_s1 + $0x17b8] ss:$28 sps:$4 sm:$0xff]  }
 0x2a0   :  { %8051 = vmatpush3.bf16.msra.mxu1 %v9256_v56  ;;  %v9321_v56 = vld [vmem:[%s12489_s1 + $0x15f8] ss:$28 sps:$4 sm:$0xff]  }
 0x2a1   :  { %5866 = vmatpush1.bf16.msra.mxu0 %v9252_v55  ;;  %8058 = vmatprep.subr.bf16.mxu1 %v9260_v59  ;;  %v9317_v55 = vld [vmem:[%s12489_s1 + $0x1270] ss:$28 sps:$4 sm:$0xff]  }
 0x2a2   :  { %5867 = vmatprep.subr.bf16.mxu0 %v9259_v57  ;;  %v9324_v57 = vld [vmem:[%s12489_s1 + $0x12ac] ss:$28 sps:$4 sm:$0xff]  }
 0x2a3   :  { %6177 = vmatmul.mubr.bf16.vlgmr.msra.gmra.mrb[24].mxu1 %v11769_v1  ;;  %v9325_v59 = vld [vmem:[%s12489_s1 + $0x17f0] ss:$28 sps:$4 sm:$0xff]  }
 0x2a4   :  { %8059 = vmatpush3.bf16.msra.mxu1 %v9261_v61  ;;  %6217 = vmatprep.mubr.bf16.mxu1 %v11787_v8  ;;  %v9326_v61 = vld [vmem:[%s12489_s1 + $0x1630] ss:$28 sps:$4 sm:$0xff]  }
 0x2a5   :  { %5868 = vmatpush1.bf16.msra.mxu0 %v9257_v60  ;;  %8060 = vmatprep.subr.bf16.mxu1 %v9265_v63  ;;  %v9322_v60 = vld [vmem:[%s12489_s1 + $0x12a8] ss:$28 sps:$4 sm:$0xff]  }
 0x2a6   :  { %5869 = vmatprep.subr.bf16.mxu0 %v9264_v62  ;;  %v9329_v62 = vld [vmem:[%s12489_s1 + $0x12e4] ss:$28 sps:$4 sm:$0xff]  }
 0x2a7   :  { %v9330_v63 = vld [vmem:[%s12489_s1 + $0x1828] ss:$28 sps:$4 sm:$0xff]  }
 0x2a8   :  { %8061 = vmatpush3.bf16.msra.mxu1 %v9266_v3 }
 0x2a9   :  { %5870 = vmatpush1.bf16.msra.mxu0 %v9262_v2  ;;  %8062 = vmatprep.subr.bf16.mxu1 %v9270_v5  ;;  %v9331_v5 = vld [vmem:[%s12489_s1 + $0x1668] ss:$28 sps:$4 sm:$0xff]  }
 0x2aa   :  { %5871 = vmatprep.subr.bf16.mxu0 %v9269_v4  ;;  %v9327_v4 = vld [vmem:[%s12489_s1 + $0x12e0] ss:$28 sps:$4 sm:$0xff]  }
 0x2ac   :  { %8063 = vmatpush3.bf16.msra.mxu1 %v9271_v9  ;;  %v9335_v9 = vld [vmem:[%s12489_s1 + $0x1860] ss:$28 sps:$4 sm:$0xff]  }
 0x2ad   :  { %5872 = vmatpush1.bf16.msra.mxu0 %v9267_v58  ;;  %8064 = vmatprep.subr.bf16.mxu1 %v9275_v11  ;;  %v9334_v58 = vld [vmem:[%s12489_s1 + $0x131c] ss:$28 sps:$4 sm:$0xff]  }
 0x2ae   :  { %5873 = vmatprep.subr.bf16.mxu0 %v9274_v10  ;;  %v9332_v10 = vld [vmem:[%s12489_s1 + $0x1318] ss:$28 sps:$4 sm:$0xff]   ;;  %v9336_v11 = vld [vmem:[%s12489_s1 + $0x16a0] ss:$28 sps:$4 sm:$0xff]  }
 0x2b0   :  { %8065 = vmatpush3.bf16.msra.mxu1 %v9276_v14  ;;  %v9337_v14 = vld [vmem:[%s12489_s1 + $0x1350] ss:$28 sps:$4 sm:$0xff]  }
 0x2b1   :  { %5874 = vmatpush1.bf16.msra.mxu0 %v9272_v0  ;;  %8066 = vmatprep.subr.bf16.mxu1 %v9280_v16  ;;  %v9339_v0 = vld [vmem:[%s12489_s1 + $0x1354] ss:$28 sps:$4 sm:$0xff]  }
 0x2b2   :  { %5875 = vmatprep.subr.bf16.mxu0 %v9279_v15  ;;  %v9342_v15 = vld [vmem:[%s12489_s1 + $0x138c] ss:$28 sps:$4 sm:$0xff]  }
 0x2b3   :  { %v11986_v16 = vld [vmem:[%s12488_s0 + $0x30] ss:$56 sps:$4 sm:$0xff]  }
 0x2b4   :  { %8067 = vmatpush3.bf16.msra.mxu1 %v9281_v21  ;;  %v9345_v21 = vld [vmem:[%s12489_s1 + $0x13c4] ss:$28 sps:$4 sm:$0xff]  }
 0x2b5   :  { %5876 = vmatpush1.bf16.msra.mxu0 %v9277_v19  ;;  %8068 = vmatprep.subr.bf16.mxu1 %v9285_v23  ;;  %v9340_v19 = vld [vmem:[%s12489_s1 + $0x1388] ss:$28 sps:$4 sm:$0xff]   ;;  %v9348_v23 = vld [vmem:[%s12489_s1 + $0x13fc] ss:$28 sps:$4 sm:$0xff]  }
 0x2b6   :  { %5877 = vmatprep.subr.bf16.mxu0 %v9284_v7  ;;  %v9343_v7 = vld [vmem:[%s12489_s1 + $0x13c0] ss:$28 sps:$4 sm:$0xff]  }
 0x2b8   :  { %8069 = vmatpush3.bf16.msra.mxu1 %v9286_v25  ;;  %v9351_v25 = vld [vmem:[%s12489_s1 + $0x1434] ss:$28 sps:$4 sm:$0xff]  }
 0x2b9   :  { %5878 = vmatpush1.bf16.msra.mxu0 %v9282_v24  ;;  %8070 = vmatprep.subr.bf16.mxu1 %v9290_v26  ;;  %v9346_v24 = vld [vmem:[%s12489_s1 + $0x13f8] ss:$28 sps:$4 sm:$0xff]   ;;  %v9354_v26 = vld [vmem:[%s12489_s1 + $0x146c] ss:$28 sps:$4 sm:$0xff]  }
 0x2ba   :  { %5879 = vmatprep.subr.bf16.mxu0 %v9289_v33  ;;  %v9349_v33 = vld [vmem:[%s12489_s1 + $0x1430] ss:$28 sps:$4 sm:$0xff]  }
 0x2bc   :  { %8071 = vmatpush3.bf16.msra.mxu1 %v9291_v27  ;;  %v9357_v27 = vld [vmem:[%s12489_s1 + $0x14a4] ss:$28 sps:$4 sm:$0xff]  }
 0x2bd   :  { %5880 = vmatpush1.bf16.msra.mxu0 %v9287_v12  ;;  %8072 = vmatprep.subr.bf16.mxu1 %v9295_v29  ;;  %v9352_v12 = vld [vmem:[%s12489_s1 + $0x1468] ss:$28 sps:$4 sm:$0xff]  }
 0x2be   :  { %5881 = vmatprep.subr.bf16.mxu0 %v9294_v28 }
 0x2c0   :  { %8073 = vmatpush3.bf16.msra.mxu1 %v9296_v30 }
 0x2c1   :  { %5882 = vmatpush1.bf16.msra.mxu0 %v9292_v18  ;;  %8080 = vmatprep.subr.bf16.mxu1 %v9300_v44  ;;  %v9355_v18 = vld [vmem:[%s12489_s1 + $0x14a0] ss:$28 sps:$4 sm:$0xff]  }
 0x2c2   :  { %5894 = vmatprep.subr.bf16.mxu0 %v9299_v31  ;;  %v9360_v44 = vld [vmem:[%s12489_s1 + $0x14dc] ss:$28 sps:$4 sm:$0xff]  }
 0x2c3   :  { %6218 = vmatmul.mubr.bf16.vlgmr.msra.gmra.mrb[28].mxu1 %v11877_v45 }
 0x2c4   :  { %5884 = vmatmul.mubr.bf16.vlgmr.msra.gmra.mrb[4].mxu0 %v11769_v1  ;;  %8081 = vmatpush3.bf16.msra.mxu1 %v9301_v43 }
 0x2c5   :  { %5895 = vmatpush1.bf16.msra.mxu0 %v9297_v17  ;;  %8082 = vmatprep.subr.bf16.mxu1 %v9305_v35  ;;  %v9363_v35 = vld [vmem:[%s12489_s1 + $0x1514] ss:$28 sps:$4 sm:$0xff]  }
 0x2c6   :  { %5896 = vmatprep.subr.bf16.mxu0 %v9304_v54  ;;  %6258 = vmatprep.mubr.bf16.mxu1 %v11896_v39  ;;  %v9358_v54 = vld [vmem:[%s12489_s1 + $0x14d8] ss:$28 sps:$4 sm:$0xff]  }
 0x2c7   :  { %5926 = vmatprep.mubr.bf16.mxu0 %v11787_v8 }
 0x2c8   :  { %8083 = vmatpush3.bf16.msra.mxu1 %v9306_v51  ;;  %v9366_v51 = vld [vmem:[%s12489_s1 + $0x154c] ss:$28 sps:$4 sm:$0xff]  }
 0x2c9   :  { %5897 = vmatpush1.bf16.msra.mxu0 %v9302_v48  ;;  %8084 = vmatprep.subr.bf16.mxu1 %v9310_v38  ;;  %v9361_v48 = vld [vmem:[%s12489_s1 + $0x1510] ss:$28 sps:$4 sm:$0xff]   ;;  %v9369_v38 = vld [vmem:[%s12489_s1 + $0x1584] ss:$28 sps:$4 sm:$0xff]  }
 0x2ca   :  { %5898 = vmatprep.subr.bf16.mxu0 %v9309_v20  ;;  %v9364_v20 = vld [vmem:[%s12489_s1 + $0x1548] ss:$28 sps:$4 sm:$0xff]  }
 0x2cc   :  { %8085 = vmatpush3.bf16.msra.mxu1 %v9311_v41  ;;  %v9375_v41 = vld [vmem:[%s12489_s1 + $0x15f4] ss:$28 sps:$4 sm:$0xff]  }
 0x2cd   :  { %5899 = vmatpush1.bf16.msra.mxu0 %v9307_v40  ;;  %8086 = vmatprep.subr.bf16.mxu1 %v9315_v46  ;;  %v9367_v40 = vld [vmem:[%s12489_s1 + $0x1580] ss:$28 sps:$4 sm:$0xff]   ;;  %v9373_v46 = vld [vmem:[%s12489_s1 + $0x15f0] ss:$28 sps:$4 sm:$0xff]  }
 0x2ce   :  { %5900 = vmatprep.subr.bf16.mxu0 %v9314_v42  ;;  %v12058_v42 = vsub.s32 6, %v11459_v13 }
 0x2d0   :  { %8087 = vmatpush3.bf16.msra.mxu1 %v9316_v50  ;;  %v967_v50 = vrot.slane %v11485_v49, %v12058_v42 }
 0x2d1   :  { %5901 = vmatpush1.bf16.msra.mxu0 %v9312_v47  ;;  %8088 = vmatprep.subr.bf16.mxu1 %v9320_v53  ;;  %v9378_v47 = vld [vmem:[%s12489_s1 + $0x162c] ss:$28 sps:$4 sm:$0xff]   ;;  %v9381_v53 = vld [vmem:[%s12489_s1 + $0x1664] ss:$28 sps:$4 sm:$0xff]  }
 0x2d2   :  { %5902 = vmatprep.subr.bf16.mxu0 %v9319_v52  ;;  %v9376_v52 = vld [vmem:[%s12489_s1 + $0x1628] ss:$28 sps:$4 sm:$0xff]  }
 0x2d4   :  { %8089 = vmatpush3.bf16.msra.mxu1 %v9321_v56 }
 0x2d5   :  { %5903 = vmatpush1.bf16.msra.mxu0 %v9317_v55  ;;  %8090 = vmatprep.subr.bf16.mxu1 %v9325_v59  ;;  %v9379_v59 = vld [vmem:[%s12489_s1 + $0x1660] ss:$28 sps:$4 sm:$0xff]  }
 0x2d6   :  { %5904 = vmatprep.subr.bf16.mxu0 %v9324_v57  ;;  %v11948_v1 = vpop.f32.mrb[4].mxu1 }
 0x2d7   :  { %v11950_v2 = vpop.f32.mrb[5].mxu1 }
 0x2d8   :  { %v11952_v3 = vpop.f32.mrb[6].mxu1  ;;  %8091 = vmatpush3.bf16.msra.mxu1 %v9326_v61 }
 0x2d9   :  { %5905 = vmatpush1.bf16.msra.mxu0 %v9322_v60  ;;  %v11960_v8 = vpop.f32.mrb[7].mxu1  ;;  %8092 = vmatprep.subr.bf16.mxu1 %v9330_v63  ;;  %v9384_v63 = vld [vmem:[%s12489_s1 + $0x169c] ss:$28 sps:$4 sm:$0xff]  }
 0x2da   :  { %5906 = vmatprep.subr.bf16.mxu0 %v9329_v62 }
 0x2dc   :  { %8093 = vmatpush3.bf16.msra.mxu1 %v9331_v5 }
 0x2dd   :  { %5907 = vmatpush1.bf16.msra.mxu0 %v9327_v4  ;;  %8094 = vmatprep.subr.bf16.mxu1 %v9335_v9  ;;  %v9382_v9 = vld [vmem:[%s12489_s1 + $0x1698] ss:$28 sps:$4 sm:$0xff]  }
 0x2de   :  { %5908 = vmatprep.subr.bf16.mxu0 %v9334_v58 }
 0x2e0   :  { %8095 = vmatpush3.bf16.msra.mxu1 %v9336_v11  ;;  %v9387_v11 = vld [vmem:[%s12489_s1 + $0x16d4] ss:$28 sps:$4 sm:$0xff]  }
 0x2e1   :  { %5909 = vmatpush1.bf16.msra.mxu0 %v9332_v10 }
 0x2e2   :  { %5910 = vmatprep.subr.bf16.mxu0 %v9339_v0  ;;  %v9385_v0 = vld [vmem:[%s12489_s1 + $0x16d0] ss:$28 sps:$4 sm:$0xff]  }
 0x2e3   :  { %6259 = vmatmul.mubr.bf16.vlgmr.msra.gmra.mrb[32].mxu1 %v11986_v16 }
 0x2e5   :  { %5911 = vmatpush1.bf16.msra.mxu0 %v9337_v14  ;;  %v9390_v14 = vld [vmem:[%s12489_s1 + $0x170c] ss:$28 sps:$4 sm:$0xff]  }
 0x2e6   :  { %5912 = vmatprep.subr.bf16.mxu0 %v9342_v15  ;;  %v9388_v15 = vld [vmem:[%s12489_s1 + $0x1708] ss:$28 sps:$4 sm:$0xff]  }
 0x2e9   :  { %5913 = vmatpush1.bf16.msra.mxu0 %v9340_v19  ;;  %v9393_v19 = vld [vmem:[%s12489_s1 + $0x1744] ss:$28 sps:$4 sm:$0xff]  }
 0x2ea   :  { %5914 = vmatprep.subr.bf16.mxu0 %v9345_v21  ;;  %v9391_v21 = vld [vmem:[%s12489_s1 + $0x1740] ss:$28 sps:$4 sm:$0xff]  }
 0x2ed   :  { %5915 = vmatpush1.bf16.msra.mxu0 %v9343_v7  ;;  %v9396_v7 = vld [vmem:[%s12489_s1 + $0x177c] ss:$28 sps:$4 sm:$0xff]  }
 0x2ee   :  { %5916 = vmatprep.subr.bf16.mxu0 %v9348_v23  ;;  %v9394_v23 = vld [vmem:[%s12489_s1 + $0x1778] ss:$28 sps:$4 sm:$0xff]  }
 0x2f1   :  { %5917 = vmatpush1.bf16.msra.mxu0 %v9346_v24  ;;  %v9399_v24 = vld [vmem:[%s12489_s1 + $0x17b4] ss:$28 sps:$4 sm:$0xff]  }
 0x2f2   :  { %5918 = vmatprep.subr.bf16.mxu0 %v9351_v25  ;;  %v9397_v25 = vld [vmem:[%s12489_s1 + $0x17b0] ss:$28 sps:$4 sm:$0xff]  }
 0x2f5   :  { %5919 = vmatpush1.bf16.msra.mxu0 %v9349_v33  ;;  %v9402_v33 = vld [vmem:[%s12489_s1 + $0x17ec] ss:$28 sps:$4 sm:$0xff]  }
 0x2f6   :  { %5920 = vmatprep.subr.bf16.mxu0 %v9354_v26  ;;  %v7964_v28 = vpop.f32.mrb[8].mxu1  ;;  %v9400_v26 = vld [vmem:[%s12489_s1 + $0x17e8] ss:$28 sps:$4 sm:$0xff]  }
 0x2f7   :  { %v7965_v29 = vpop.f32.mrb[9].mxu1 }
 0x2f8   :  { %v7966_v30 = vadd.f32 %v7965_v29, %v7964_v28  ;;  %v7967_v31 = vpop.f32.mrb[10].mxu1  ;;  %v9403_v29 = vld [vmem:[%s12489_s1 + $0x1820] ss:$28 sps:$4 sm:$0xff]  }
 0x2f9   :  { %5921 = vmatpush1.bf16.msra.mxu0 %v9352_v12  ;;  %v7968_v17 = vpop.f32.mrb[11].mxu1  ;;  %v9405_v12 = vld [vmem:[%s12489_s1 + $0x1824] ss:$28 sps:$4 sm:$0xff]  }
 0x2fa   :  { %5922 = vmatprep.subr.bf16.mxu0 %v9357_v27  ;;  %v7969_v43 = vadd.f32 %v7968_v17, %v7967_v31  ;;  %v6015_v55 = vadd.f32 %v7966_v30, %v967_v50  ;;  %v9408_v31 = vld [vmem:[%s12489_s1 + $0x185c] ss:$28 sps:$4 sm:$0xff]  }
 0x2fc   :  { %v6018_v60 = vadd.f32 %v7969_v43, %v967_v50 }
 0x2fd   :  { %5923 = vmatpush1.bf16.msra.mxu0 %v9355_v18 }
 0x2fe   :  { %5924 = vmatprep.subr.bf16.mxu0 %v9360_v44 }
 0x301   :  { %5925 = vmatpush1.bf16.msra.mxu0 %v9358_v54  ;;  %v9406_v54 = vld [vmem:[%s12489_s1 + $0x1858] ss:$28 sps:$4 sm:$0xff]  }
 0x302   :  { %5937 = vmatprep.subr.bf16.mxu0 %v9363_v35 }
 0x304   :  { %5927 = vmatmul.mubr.bf16.vlgmr.msra.gmra.mrb[4].mxu0 %v11877_v45  ;;  %v9372_v45 = vld [vmem:[%s12489_s1 + $0x15bc] ss:$28 sps:$4 sm:$0xff]  }
 0x305   :  { %5938 = vmatpush1.bf16.msra.mxu0 %v9361_v48  ;;  %5969 = vmatprep.mubr.bf16.mxu0 %v11896_v39  ;;  %v9370_v39 = vld [vmem:[%s12489_s1 + $0x15b8] ss:$28 sps:$4 sm:$0xff]  }
 0x306   :  { %5939 = vmatprep.subr.bf16.mxu0 %v9366_v51 }
 0x309   :  { %5940 = vmatpush1.bf16.msra.mxu0 %v9364_v20 }
 0x30a   :  { %5941 = vmatprep.subr.bf16.mxu0 %v9369_v38 }
 0x30d   :  { %5942 = vmatpush1.bf16.msra.mxu0 %v9367_v40 }
 0x30e   :  { %5943 = vmatprep.subr.bf16.mxu0 %v9372_v45 }
 0x311   :  { %5944 = vmatpush1.bf16.msra.mxu0 %v9370_v39 }
 0x312   :  { %5945 = vmatprep.subr.bf16.mxu0 %v9375_v41 }
 0x315   :  { %5946 = vmatpush1.bf16.msra.mxu0 %v9373_v46 }
 0x316   :  { %5947 = vmatprep.subr.bf16.mxu0 %v9378_v47  ;;  %v7986_v56 = vpop.f32.mrb[12].mxu1 }
 0x317   :  { %v7987_v57 = vpop.f32.mrb[13].mxu1 }
 0x318   :  { %v7988_v61 = vadd.f32 %v7987_v57, %v7986_v56  ;;  %v7989_v62 = vpop.f32.mrb[14].mxu1 }
 0x319   :  { %5948 = vmatpush1.bf16.msra.mxu0 %v9376_v52  ;;  %v7990_v4 = vpop.f32.mrb[15].mxu1 }
 0x31a   :  { %5949 = vmatprep.subr.bf16.mxu0 %v9381_v53  ;;  %v6056_v5 = vadd.f32 %v7988_v61, %v6015_v55  ;;  %v7991_v58 = vadd.f32 %v7990_v4, %v7989_v62 }
 0x31c   :  { %v6059_v10 = vadd.f32 %v7991_v58, %v6018_v60 }
 0x31d   :  { %5950 = vmatpush1.bf16.msra.mxu0 %v9379_v59 }
 0x31e   :  { %5951 = vmatprep.subr.bf16.mxu0 %v9384_v63 }
 0x321   :  { %5952 = vmatpush1.bf16.msra.mxu0 %v9382_v9 }
 0x322   :  { %5953 = vmatprep.subr.bf16.mxu0 %v9387_v11 }
 0x325   :  { %5954 = vmatpush1.bf16.msra.mxu0 %v9385_v0 }
 0x326   :  { %5955 = vmatprep.subr.bf16.mxu0 %v9390_v14 }
 0x329   :  { %5956 = vmatpush1.bf16.msra.mxu0 %v9388_v15 }
 0x32a   :  { %5957 = vmatprep.subr.bf16.mxu0 %v9393_v19 }
 0x32d   :  { %5958 = vmatpush1.bf16.msra.mxu0 %v9391_v21  ;;  %v12135_v21 = vsub.s32 2, %v11459_v13 }
 0x32e   :  { %5959 = vmatprep.subr.bf16.mxu0 %v9396_v7 }
 0x32f   :  { %v951_v7 = vrot.slane %v11485_v49, %v12135_v21 }
 0x331   :  { %5960 = vmatpush1.bf16.msra.mxu0 %v9394_v23  ;;  %v12140_v23 = vsub.s32 3, %v11459_v13 }
 0x332   :  { %5961 = vmatprep.subr.bf16.mxu0 %v9399_v24  ;;  %v8187_v24 = vadd.f32 %v11948_v1, %v951_v7 }
 0x335   :  { %5962 = vmatpush1.bf16.msra.mxu0 %v9397_v25  ;;  %v955_v25 = vrot.slane %v11485_v49, %v12140_v23 }
 0x336   :  { %5963 = vmatprep.subr.bf16.mxu0 %v9402_v33  ;;  %v8008_v27 = vpop.f32.mrb[16].mxu1  ;;  %v12146_v33 = vsub.s32 4, %v11459_v13 }
 0x337   :  { %v8009_v28 = vpop.f32.mrb[17].mxu1  ;;  %v8188_v1 = vadd.f32 %v11950_v2, %v955_v25 }
 0x338   :  { %v8010_v18 = vadd.f32 %v8009_v28, %v8008_v27  ;;  %v8011_v30 = vpop.f32.mrb[18].mxu1  ;;  %v8189_v27 = vadd.f32 %v11952_v3, %v951_v7  ;;  %v6277_v28 = vadd.f32 %v11540_v37, %v11532_v36 }
 0x339   :  { %5964 = vmatpush1.bf16.msra.mxu0 %v9400_v26  ;;  %v8012_v44 = vpop.f32.mrb[19].mxu1  ;;  %v12149_v26 = vsub.s32 5, %v11459_v13  ;;  %v8190_v13 = vadd.f32 %v11960_v8, %v955_v25 }
 0x33a   :  { %5965 = vmatprep.subr.bf16.mxu0 %v9405_v12  ;;  %v6097_v17 = vadd.f32 %v8010_v18, %v6056_v5  ;;  %v8013_v43 = vadd.f32 %v8012_v44, %v8011_v30  ;;  %v6267_v12 = vadd.f32 %v11524_v34, %v11521_v32  ;;  %v959_v18 = vrot.slane %v11485_v49, %v12146_v33 }
 0x33b   :  { %v963_v30 = vrot.slane %v11485_v49, %v12149_v26 }
 0x33c   :  { %v6100_v35 = vadd.f32 %v8013_v43, %v6059_v10 }
 0x33d   :  { %5966 = vmatpush1.bf16.msra.mxu0 %v9403_v29  ;;  %v6268_v29 = vadd.f32 %v8187_v24, %v6267_v12 }
 0x33e   :  { %5967 = vmatprep.subr.bf16.mxu0 %v9408_v31  ;;  %v6278_v31 = vadd.f32 %v8189_v27, %v6277_v28 }
 0x341   :  { %5968 = vmatpush1.bf16.msra.mxu0 %v9406_v54 }
 0x344   :  { %5970 = vmatmul.mubr.bf16.vlgmr.msra.gmra.mrb[4].mxu0 %v11986_v16 }
 0x356   :  { %v8030_v48 = vpop.f32.mrb[20].mxu1 }
 0x357   :  { %v8031_v51 = vpop.f32.mrb[21].mxu1 }
 0x358   :  { %v8032_v20 = vadd.f32 %v8031_v51, %v8030_v48  ;;  %v8033_v38 = vpop.f32.mrb[22].mxu1  ;;  %v6279_v48 = vadd.f32 %v8190_v13, %v6278_v31 }
 0x359   :  { %v8034_v40 = vpop.f32.mrb[23].mxu1 }
 0x35a   :  { %v6138_v45 = vadd.f32 %v8032_v20, %v6097_v17  ;;  %v8035_v39 = vadd.f32 %v8034_v40, %v8033_v38  ;;  %v6269_v17 = vadd.f32 %v8188_v1, %v6268_v29 }
 0x35c   :  { %v6141_v41 = vadd.f32 %v8035_v39, %v6100_v35 }
 0x376   :  { %v8052_v46 = vpop.f32.mrb[24].mxu1 }
 0x377   :  { %v8053_v47 = vpop.f32.mrb[25].mxu1 }
 0x378   :  { %v8054_v50 = vadd.f32 %v8053_v47, %v8052_v46  ;;  %v8055_v52 = vpop.f32.mrb[26].mxu1  ;;  %v9409_v47 = vld [vmem:[%s12493_s5 + $0x40] sm:$0xff]  }
 0x379   :  { %v8056_v53 = vpop.f32.mrb[27].mxu1  ;;  %8102 = vmatprep.subr.bf16.mxu1 %v9409_v47  ;;  %v9420_v47 = vld [vmem:[%s12493_s5 + $0x28] sm:$0xff]  }
 0x37a   :  { %v6179_v55 = vadd.f32 %v8054_v50, %v6138_v45  ;;  %v8057_v56 = vadd.f32 %v8056_v53, %v8055_v52  ;;  %v9410_v50 = vld [vmem:[%s12493_s5] sm:$0xff]  }
 0x37b   :  { %8103 = vmatpush3.bf16.msra.mxu1 %v9410_v50  ;;  %v9421_v50 = vld [vmem:[%s12493_s5 + $0x70] sm:$0xff]  }
 0x37c   :  { %v6182_v57 = vadd.f32 %v8057_v56, %v6141_v41 }
 0x396   :  { %v8074_v59 = vpop.f32.mrb[28].mxu1 }
 0x397   :  { %v8075_v60 = vpop.f32.mrb[29].mxu1 }
 0x398   :  { %v8076_v61 = vadd.f32 %v8075_v60, %v8074_v59  ;;  %v8077_v16 = vpop.f32.mrb[30].mxu1 }
 0x399   :  { %v8078_v62 = vpop.f32.mrb[31].mxu1 }
 0x39a   :  { %v6220_v63 = vadd.f32 %v8076_v61, %v6179_v55  ;;  %v8079_v4 = vadd.f32 %v8078_v62, %v8077_v16 }
 0x39c   :  { %v6223_v5 = vadd.f32 %v8079_v4, %v6182_v57 }
 0x3b6   :  { %v8096_v58 = vpop.f32.mrb[32].mxu1 }
 0x3b7   :  { %v8097_v9 = vpop.f32.mrb[33].mxu1 }
 0x3b8   :  { %v8098_v10 = vadd.f32 %v8097_v9, %v8096_v58  ;;  %v8099_v11 = vpop.f32.mrb[34].mxu1 }
 0x3b9   :  { %v8100_v0 = vpop.f32.mrb[35].mxu1 }
 0x3ba   :  { %v6261_v14 = vadd.f32 %v8098_v10, %v6220_v63  ;;  %v8101_v15 = vadd.f32 %v8100_v0, %v8099_v11 }
 0x3bc   :  { %v12132_v19 = vadd.f32 %v8101_v15, %v6223_v5  ;;  %v6273_v39 = vsel %vm6272_vm0, %v6261_v14, 0.0 }
 0x3be   :  { %v6282_v8 = vsel %vm6272_vm0, %v12132_v19, 0.0 }
 0x417   :  { %v5971_v44 = vpop.f32.mrb[4].mxu0 }
 0x418   :  { %v8191_v43 = vadd.f32 %v5971_v44, %v959_v18  ;;  %v5973_v54 = vpop.f32.mrb[5].mxu0 }
 0x419   :  { %v8192_v3 = vadd.f32 %v5973_v54, %v963_v30  ;;  %v5975_v35 = vpop.f32.mrb[6].mxu0 }
 0x41a   :  { %v6270_v51 = vadd.f32 %v8191_v43, %v6269_v17  ;;  %v8193_v20 = vadd.f32 %v5975_v35, %v959_v18  ;;  %v5977_v38 = vpop.f32.mrb[7].mxu0 }
 0x41b   :  { %v8194_v2 = vadd.f32 %v5977_v38, %v963_v30  ;;  %v9411_v38 = vld [vmem:[%s12493_s5 + $0x48] sm:$0xff]  }
 0x41c   :  { %v6280_v40 = vadd.f32 %v8193_v20, %v6279_v48  ;;  %v6271_v45 = vadd.f32 %v8192_v3, %v6270_v51  ;;  %8104 = vmatprep.subr.bf16.mxu1 %v9411_v38 }
 0x41e   :  { %v6281_v49 = vadd.f32 %v8194_v2, %v6280_v40  ;;  %v6274_v41 = vadd.f32 %v6273_v39, %v6271_v45  ;;  %v9413_v40 = vld [vmem:[%s12493_s5 + $0x50] sm:$0xff]   ;;  %v9415_v39 = vld [vmem:[%s12493_s5 + $0x58] sm:$0xff]  }
 0x41f   :  { %v9414_v45 = vld [vmem:[%s12493_s5 + $0x10] sm:$0xff]  }
 0x420   :  { %6275 = vadd.xlane.f32.xlu0 %v6274_v41  ;;  %v6283_v46 = vadd.f32 %v6282_v8, %v6281_v49  ;;  %v9416_v49 = vld [vmem:[%s12493_s5 + $0x18] sm:$0xff]   ;;  %v9417_v41 = vld [vmem:[%s12493_s5 + $0x60] sm:$0xff]  }
 0x421   :  { %v9418_v8 = vld [vmem:[%s12493_s5 + $0x20] sm:$0xff]  }
 0x424   :  { %6284 = vadd.xlane.f32.xlu0 %v6283_v46  ;;  %v9419_v46 = vld [vmem:[%s12493_s5 + $0x68] sm:$0xff]  }
 0x4ad   :  { %v6276_v52 = vpop.xlane.xlu0 %6275 }
 0x4ae   :  { %v6287_v53 = vmul.f32 0.00125, %v6276_v52  ;;  %v9422_v52 = vld [vmem:[%s12493_s5 + $0x30] sm:$0xff]  }
 0x4b0   :  { %v12172_v55 = vsub.f32 %v11521_v32, %v6287_v53  ;;  %v12175_v56 = vsub.f32 %v11524_v34, %v6287_v53  ;;  %v12177_v57 = vsub.f32 %v8187_v24, %v6287_v53  ;;  %v12179_v60 = vsub.f32 %v8188_v1, %v6287_v53 }
 0x4b1   :  { %v6285_v59 = vpop.xlane.xlu0 %6284  ;;  %v12185_v63 = vsub.f32 %v8191_v43, %v6287_v53  ;;  %v12197_v9 = vsub.f32 %v8192_v3, %v6287_v53  ;;  %v12199_v10 = vsub.f32 %v6261_v14, %v6287_v53  ;;  %v9423_v53 = vld [vmem:[%s12493_s5 + $0x78] sm:$0xff]  }
 0x4b2   :  { %v6288_v61 = vmul.f32 0.00125, %v6285_v59  ;;  %v6303_v16 = vmul.f32 %v12172_v55, %v12172_v55  ;;  %v6304_v62 = vmul.f32 %v12175_v56, %v12175_v56  ;;  %v6305_v32 = vmul.f32 %v12177_v57, %v12177_v57  ;;  %v9424_v59 = vld [vmem:[%s12493_s5 + $0x38] sm:$0xff]  }
 0x4b3   :  { %v6306_v11 = vmul.f32 %v12179_v60, %v12179_v60  ;;  %v6309_v28 = vmul.f32 %v12199_v10, %v12199_v10 }
 0x4b4   :  { %v6317_v4 = vadd.f32 %v6304_v62, %v6303_v16  ;;  %v12190_v34 = vsub.f32 %v11532_v36, %v6288_v61  ;;  %v12193_v5 = vsub.f32 %v11540_v37, %v6288_v61  ;;  %v12195_v58 = vsub.f32 %v8189_v27, %v6288_v61 }
 0x4b5   :  { %v12203_v15 = vsub.f32 %v8190_v13, %v6288_v61  ;;  %v6307_v37 = vmul.f32 %v12185_v63, %v12185_v63  ;;  %v12211_v25 = vsub.f32 %v8193_v20, %v6288_v61  ;;  %v6308_v27 = vmul.f32 %v12197_v9, %v12197_v9 }
 0x4b6   :  { %v6318_v0 = vadd.f32 %v6317_v4, %v6305_v32  ;;  %v6310_v7 = vmul.f32 %v12190_v34, %v12190_v34  ;;  %v6311_v36 = vmul.f32 %v12193_v5, %v12193_v5  ;;  %v6312_v14 = vmul.f32 %v12195_v58, %v12195_v58 }
 0x4b7   :  { %v12220_v29 = vsub.f32 %v12132_v19, %v6288_v61  ;;  %v12222_v18 = vsub.f32 %v8194_v2, %v6288_v61  ;;  %v6313_v30 = vmul.f32 %v12203_v15, %v12203_v15  ;;  %v6314_v44 = vmul.f32 %v12211_v25, %v12211_v25  ;;  %v9412_v2 = vld [vmem:[%s12493_s5 + $0x8] sm:$0xff]   ;;  %v9425_v61 = vld [vmem:[%s12493_s5 + $0xc0] sm:$0xff]  }
 0x4b8   :  { %v6319_v24 = vadd.f32 %v6318_v0, %v6306_v11  ;;  %v6326_v12 = vadd.f32 %v6311_v36, %v6310_v7  ;;  %v6322_v43 = vsel %vm6272_vm0, %v6309_v28, 0.0  ;;  %8105 = vmatpush3.bf16.msra.mxu1 %v9412_v2  ;;  %v12282_v7 = vld [vmem:[%s12491_s3] sm:$0x7f] }
 0x4b9   :  { %v6316_v54 = vmul.f32 %v12220_v29, %v12220_v29  ;;  %v6315_v19 = vmul.f32 %v12222_v18, %v12222_v18  ;;  %8106 = vmatprep.subr.bf16.mxu1 %v9413_v40  ;;  %v12287_v36 = vld [vmem:[%s12492_s4] sm:$0x7f]  ;;  %v12301_v28 = vrot.slane %v12282_v7, %v12058_v42 }
 0x4ba   :  { %v6320_v1 = vadd.f32 %v6319_v24, %v6307_v37  ;;  %v6327_v31 = vadd.f32 %v6326_v12, %v6312_v14  ;;  %v6360_v37 = vrot.slane %v12282_v7, %v11474_v6  ;;  %v6364_v24 = vrot.slane %v12282_v7, %v11488_v22 }
 0x4bb   :  { %v6331_v51 = vsel %vm6272_vm0, %v6316_v54, 0.0  ;;  %v6372_v14 = vrot.slane %v12282_v7, %v12140_v23 }
 0x4bc   :  { %v6321_v13 = vadd.f32 %v6320_v1, %v6308_v27  ;;  %v6328_v17 = vadd.f32 %v6327_v31, %v6313_v30  ;;  %8107 = vmatpush3.bf16.msra.mxu1 %v9414_v45  ;;  %v6411_v27 = vrot.slane %v12287_v36, %v11474_v6  ;;  %v6415_v30 = vrot.slane %v12287_v36, %v11488_v22 }
 0x4bd   :  { %8108 = vmatprep.subr.bf16.mxu1 %v9415_v39 }
 0x4be   :  { %v6323_v3 = vadd.f32 %v6322_v43, %v6321_v13  ;;  %v6329_v35 = vadd.f32 %v6328_v17, %v6314_v44  ;;  %v6423_v44 = vrot.slane %v12287_v36, %v12140_v23 }
 0x4c0   :  { %6324 = vadd.xlane.f32.xlu1 %v6323_v3  ;;  %v6330_v48 = vadd.f32 %v6329_v35, %v6315_v19  ;;  %8109 = vmatpush3.bf16.msra.mxu1 %v9416_v49 }
 0x4c1   :  { %8110 = vmatprep.subr.bf16.mxu1 %v9417_v41 }
 0x4c2   :  { %v6332_v20 = vadd.f32 %v6331_v51, %v6330_v48 }
 0x4c4   :  { %6333 = vadd.xlane.f32.xlu1 %v6332_v20  ;;  %8111 = vmatpush3.bf16.msra.mxu1 %v9418_v8  ;;  %v6376_v20 = vrot.slane %v12282_v7, %v12146_v33 }
 0x4c5   :  { %8112 = vmatprep.subr.bf16.mxu1 %v9419_v46 }
 0x4c8   :  { %8113 = vmatpush3.bf16.msra.mxu1 %v9420_v47 }
 0x4c9   :  { %8114 = vmatprep.subr.bf16.mxu1 %v9421_v50 }
 0x4cc   :  { %8115 = vmatpush3.bf16.msra.mxu1 %v9422_v52 }
 0x4cd   :  { %8116 = vmatprep.subr.bf16.mxu1 %v9423_v53 }
 0x4d0   :  { %8117 = vmatpush3.bf16.msra.mxu1 %v9424_v59  ;;  %v9426_v59 = vld [vmem:[%s12493_s5 + $0x80] sm:$0xff]  }
 0x4d1   :  { %8124 = vmatprep.subr.bf16.mxu1 %v9425_v61 }
 0x54d   :  { %v6325_v16 = vpop.xlane.xlu1 %6324 }
 0x54e   :  { %v6335_v62 = vmul.f32 0.00125, %v6325_v16 }
 0x550   :  { %v6337_v32 = vadd.f32 1e-05, %v6335_v62  ;;  %v9427_v62 = vld [vmem:[%s12493_s5 + $0xc8] sm:$0xff]  }
 0x551   :  { %v6334_v4 = vpop.xlane.xlu1 %6333 }
 0x552   :  { %9459 = vrsqrt.f32 %v6337_v32  ;;  %v6336_v11 = vmul.f32 0.00125, %v6334_v4 }
 0x554   :  { %v6338_v0 = vadd.f32 1e-05, %v6336_v11 }
 0x556   :  { %9461 = vrsqrt.f32 %v6338_v0 }
 0x55c   :  { %v12295_v12 = vpop.eup %9459 }
 0x55d   :  { %v6342_v1 = vmul.f32 %v12295_v12, %v12175_v56  ;;  %v6341_v31 = vmul.f32 %v12295_v12, %v12172_v55  ;;  %v6344_v13 = vmul.f32 %v12295_v12, %v12179_v60  ;;  %v6347_v6 = vmul.f32 %v12295_v12, %v12199_v10 }
 0x55e   :  { %v6435_v10 = vrot.slane %v12287_v36, %v12058_v42 }
 0x55f   :  { %v6393_v17 = vmul.f32 %v6364_v24, %v6342_v1  ;;  %v6392_v43 = vmul.f32 %v6360_v37, %v6341_v31  ;;  %v6395_v54 = vmul.f32 %v6372_v14, %v6344_v13  ;;  %v6398_v56 = vmul.f32 %v12301_v28, %v6347_v6  ;;  %v9431_v6 = vld [vmem:[%s12493_s5 + $0xd8] sm:$0xff]  }
 0x560   :  { %v12315_v3 = vpop.eup %9461 }
 0x561   :  { %v6349_v22 = vmul.f32 %v12315_v3, %v12193_v5  ;;  %v6444_v55 = vadd.f32 %v6415_v30, %v6393_v17  ;;  %v6348_v60 = vmul.f32 %v12315_v3, %v12190_v34  ;;  %v6443_v19 = vadd.f32 %v6411_v27, %v6392_v43 }
 0x562   :  { %v6351_v23 = vmul.f32 %v12315_v3, %v12203_v15  ;;  %v6446_v35 = vadd.f32 %v6423_v44, %v6395_v54  ;;  %v6427_v5 = vrot.slane %v12287_v36, %v12146_v33  ;;  %v6345_v34 = vmul.f32 %v12295_v12, %v12185_v63 }
 0x563   :  { %v6400_v48 = vmul.f32 %v6364_v24, %v6349_v22  ;;  %v6399_v51 = vmul.f32 %v6360_v37, %v6348_v60  ;;  %v6472_v40 = vmul.f32 0.2, %v6444_v55  ;;  %v6471_v15 = vmul.f32 0.2, %v6443_v19  ;;  %v9428_v24 = vld [vmem:[%s12493_s5 + $0x88] sm:$0xff]   ;;  %v9433_v60 = vld [vmem:[%s12493_s5 + $0xe0] sm:$0xff]  }
 0x564   :  { %v6402_v38 = vmul.f32 %v6372_v14, %v6351_v23  ;;  %vm6458_vm1 = vcmp.ge.f32.partialorder %v6444_v55, 0.0  ;;  %vm6457_vm2 = vcmp.ge.f32.partialorder %v6443_v19, 0.0  ;;  %v6474_v42 = vmul.f32 0.2, %v6446_v35 }
 0x565   :  { %v6451_v2 = vadd.f32 %v6415_v30, %v6400_v48  ;;  %v6450_v45 = vadd.f32 %v6411_v27, %v6399_v51  ;;  %vm6460_vm5 = vcmp.ge.f32.partialorder %v6446_v35, 0.0  ;;  %v6396_v33 = vmul.f32 %v6376_v20, %v6345_v34  ;;  %v9429_v27 = vld [vmem:[%s12493_s5 + $0xd0] sm:$0xff]   ;;  %v9434_v48 = vld [vmem:[%s12493_s5 + $0xa0] sm:$0xff]  }
 0x566   :  { %v6453_v39 = vadd.f32 %v6423_v44, %v6402_v38  ;;  %v6486_v46 = vsel %vm6458_vm1, %v6444_v55, %v6472_v40  ;;  %v6485_v50 = vsel %vm6457_vm2, %v6443_v19, %v6471_v15  ;;  %v6488_v16 = vsel %vm6460_vm5, %v6446_v35, %v6474_v42  ;;  %v9439_v15 = vld [vmem:[%s12493_s5 + $0xf8] sm:$0xff]  }
 0x567   :  { %vm6465_vm3 = vcmp.ge.f32.partialorder %v6451_v2, 0.0  ;;  %v6479_v49 = vmul.f32 0.2, %v6451_v2  ;;  %vm6464_vm4 = vcmp.ge.f32.partialorder %v6450_v45, 0.0  ;;  %v6478_v41 = vmul.f32 0.2, %v6450_v45 }
 0x568   :  { %vm6467_vm6 = vcmp.ge.f32.partialorder %v6453_v39, 0.0  ;;  %v6481_v8 = vmul.f32 0.2, %v6453_v39  ;;  %v6352_v4 = vmul.f32 %v12315_v3, %v12211_v25  ;;  %v6447_v11 = vadd.f32 %v6427_v5, %v6396_v33 }
 0x569   :  { %v6493_v47 = vsel %vm6465_vm3, %v6451_v2, %v6479_v49  ;;  %v6492_v63 = vsel %vm6464_vm4, %v6450_v45, %v6478_v41  ;;  %v6354_v0 = vmul.f32 %v12315_v3, %v12220_v29  ;;  %v6449_v37 = vadd.f32 %v6435_v10, %v6398_v56  ;;  %v9430_v29 = vld [vmem:[%s12493_s5 + $0x90] sm:$0xff]   ;;  %v9432_v56 = vld [vmem:[%s12493_s5 + $0x98] sm:$0xff]   ;;  %v9441_v41 = vld [vmem:[%s12493_s5 + $0x140] sm:$0xff]  }
 0x56a   :  { %v6500_v52 = vpack.c.bf16 %v6493_v47, %v6486_v46  ;;  %v6499_v53 = vpack.c.bf16 %v6492_v63, %v6485_v50  ;;  %v6495_v61 = vsel %vm6467_vm6, %v6453_v39, %v6481_v8  ;;  %v6403_v14 = vmul.f32 %v6376_v20, %v6352_v4  ;;  %v9442_v50 = vld [vmem:[%s12493_s5 + $0x100] sm:$0xff]   ;;  %v9448_v4 = vld [vmem:[%s12493_s5 + $0x118] sm:$0xff]  }
 0x56b   :  { %v6502_v32 = vpack.c.bf16 %v6495_v61, %v6488_v16  ;;  %v6475_v25 = vmul.f32 0.2, %v6447_v11  ;;  %v6405_v30 = vmul.f32 %v12301_v28, %v6354_v0  ;;  %vm6461_vm7 = vcmp.ge.f32.partialorder %v6447_v11, 0.0  ;;  %v9444_v61 = vld [vmem:[%s12493_s5 + $0x108] sm:$0xff]   ;;  %v9445_v16 = vld [vmem:[%s12493_s5 + $0x150] sm:$0xff]   ;;  %v9450_v0 = vld [vmem:[%s12493_s5 + $0x120] sm:$0xff]  }
 0x56c   :  { %6948 = vmatprep.mubr.bf16.mxu1 %v6500_v52  ;;  %v6454_v1 = vadd.f32 %v6427_v5, %v6403_v14  ;;  %v6477_v44 = vmul.f32 0.2, %v6449_v37  ;;  %vm6463_vm9 = vcmp.ge.f32.partialorder %v6449_v37, 0.0  ;;  %v6350_v23 = vmul.f32 %v12315_v3, %v12195_v58  ;;  %v9435_v58 = vld [vmem:[%s12493_s5 + $0xe8] sm:$0xff]   ;;  %v9453_v14 = vld [vmem:[%s12493_s5 + $0x170] sm:$0xff]  }
 0x56d   :  { %6949 = vmatmul.mubr.bf16.vlgmr.msra.gmra.mrb[36].mxu1 %v6499_v53  ;;  %v6456_v13 = vadd.f32 %v6435_v10, %v6405_v30  ;;  %v12355_v17 = vsel %vm6461_vm7, %v6447_v11, %v6475_v25  ;;  %v6353_v35 = vmul.f32 %v12315_v3, %v12222_v18  ;;  %v6368_v10 = vrot.slane %v12282_v7, %v12135_v21  ;;  %v9443_v53 = vld [vmem:[%s12493_s5 + $0x148] sm:$0xff]   ;;  %v9449_v11 = vld [vmem:[%s12493_s5 + $0x160] sm:$0xff]   ;;  %v9456_v25 = vld [vmem:[%s12493_s5 + $0x138] sm:$0xff]  }
 0x56e   :  { %8125 = vmatpush3.bf16.msra.mxu1 %v9426_v59  ;;  %6989 = vmatprep.mubr.bf16.mxu1 %v6502_v32  ;;  %vm6468_vm8 = vcmp.ge.f32.partialorder %v6454_v1, 0.0  ;;  %v6482_v31 = vmul.f32 0.2, %v6454_v1  ;;  %v12364_v22 = vsel %vm6463_vm9, %v6449_v37, %v6477_v44  ;;  %v6343_v51 = vmul.f32 %v12295_v12, %v12177_v57  ;;  %v9436_v57 = vld [vmem:[%s12493_s5 + $0xa8] sm:$0xff]   ;;  %v9447_v32 = vld [vmem:[%s12493_s5 + $0x158] sm:$0xff]   ;;  %v9457_v30 = vld [vmem:[%s12493_s5 + $0x180] sm:$0xff]  }
 0x56f   :  { %8126 = vmatprep.subr.bf16.mxu1 %v9427_v62  ;;  %vm6470_vm10 = vcmp.ge.f32.partialorder %v6456_v13, 0.0  ;;  %v6484_v28 = vmul.f32 0.2, %v6456_v13  ;;  %v6380_v20 = vrot.slane %v12282_v7, %v12149_v26  ;;  %v6346_v18 = vmul.f32 %v12295_v12, %v12197_v9  ;;  %v9437_v7 = vld [vmem:[%s12493_s5 + $0xf0] sm:$0xff]   ;;  %v9451_v37 = vld [vmem:[%s12493_s5 + $0x168] sm:$0xff]  }
 0x570   :  { %v12357_v43 = vsel %vm6468_vm8, %v6454_v1, %v6482_v31  ;;  %v6401_v3 = vmul.f32 %v6368_v10, %v6350_v23  ;;  %v6419_v38 = vrot.slane %v12287_v36, %v12135_v21  ;;  %v6394_v34 = vmul.f32 %v6368_v10, %v6343_v51  ;;  %v9438_v21 = vld [vmem:[%s12493_s5 + $0xb0] sm:$0xff]   ;;  %v9455_v1 = vld [vmem:[%s12493_s5 + $0x178] sm:$0xff]   ;;  %v9458_v31 = vld [vmem:[%s12493_s5 + $0x188] sm:$0xff]  }
 0x571   :  { %v6503_v54 = vpack.c.bf16 %v12357_v43, %v12355_v17  ;;  %v12366_v55 = vsel %vm6470_vm10, %v6456_v13, %v6484_v28  ;;  %v6404_v5 = vmul.f32 %v6380_v20, %v6353_v35  ;;  %v6397_v2 = vmul.f32 %v6380_v20, %v6346_v18  ;;  %v9446_v62 = vld [vmem:[%s12493_s5 + $0x110] sm:$0xff]  }
 0x572   :  { %8127 = vmatpush3.bf16.msra.mxu1 %v9428_v24  ;;  %v6505_v19 = vpack.c.bf16 %v12366_v55, %v12364_v22  ;;  %v6431_v9 = vrot.slane %v12287_v36, %v12149_v26  ;;  %v6452_v12 = vadd.f32 %v6419_v38, %v6401_v3  ;;  %v6445_v45 = vadd.f32 %v6419_v38, %v6394_v34  ;;  %v9440_v26 = vld [vmem:[%s12493_s5 + $0xb8] sm:$0xff]   ;;  %v9452_v24 = vld [vmem:[%s12493_s5 + $0x128] sm:$0xff]  }
 0x573   :  { %8128 = vmatprep.subr.bf16.mxu1 %v9429_v27  ;;  %v9454_v27 = vld [vmem:[%s12493_s5 + $0x130] sm:$0xff]   ;;  %s9509_s5 = smov [#allocation2]  }
 0x574   :  { %v6455_v40 = vadd.f32 %v6431_v9, %v6404_v5  ;;  %v6448_v39 = vadd.f32 %v6431_v9, %v6397_v2  ;;  %v6480_v42 = vmul.f32 0.2, %v6452_v12  ;;  %vm6466_vm11 = vcmp.ge.f32.partialorder %v6452_v12, 0.0 }
 0x575   :  { %v6473_v36 = vmul.f32 0.2, %v6445_v45  ;;  %vm6459_vm13 = vcmp.ge.f32.partialorder %v6445_v45, 0.0 }
 0x576   :  { %8129 = vmatpush3.bf16.msra.mxu1 %v9430_v29  ;;  %v6483_v49 = vmul.f32 0.2, %v6455_v40  ;;  %vm6469_vm12 = vcmp.ge.f32.partialorder %v6455_v40, 0.0  ;;  %v6476_v8 = vmul.f32 0.2, %v6448_v39  ;;  %v6494_v33 = vsel %vm6466_vm11, %v6452_v12, %v6480_v42 }
 0x577   :  { %8130 = vmatprep.subr.bf16.mxu1 %v9431_v6  ;;  %vm6462_vm14 = vcmp.ge.f32.partialorder %v6448_v39, 0.0  ;;  %v6487_v47 = vsel %vm6459_vm13, %v6445_v45, %v6473_v36  ;;  %v9507_v29 = vmov 0.0  }
 0x578   :  { %v6497_v46 = vsel %vm6469_vm12, %v6455_v40, %v6483_v49  ;;  %v6501_v63 = vpack.c.bf16 %v6494_v33, %v6487_v47  ;;  %v6490_v52 = vsel %vm6462_vm14, %v6448_v39, %v6476_v8 }
 0x579   :  { %v6504_v59 = vpack.c.bf16 %v6497_v46, %v6490_v52 }
 0x57a   :  { %8131 = vmatpush3.bf16.msra.mxu1 %v9432_v56 }
 0x57b   :  { %8132 = vmatprep.subr.bf16.mxu1 %v9433_v60 }
 0x57e   :  { %8133 = vmatpush3.bf16.msra.mxu1 %v9434_v48 }
 0x57f   :  { %8134 = vmatprep.subr.bf16.mxu1 %v9435_v58 }
 0x582   :  { %8135 = vmatpush3.bf16.msra.mxu1 %v9436_v57 }
 0x583   :  { %8136 = vmatprep.subr.bf16.mxu1 %v9437_v7 }
 0x586   :  { %8137 = vmatpush3.bf16.msra.mxu1 %v9438_v21 }
 0x587   :  { %8138 = vmatprep.subr.bf16.mxu1 %v9439_v15 }
 0x58a   :  { %8139 = vmatpush3.bf16.msra.mxu1 %v9440_v26 }
 0x58b   :  { %8146 = vmatprep.subr.bf16.mxu1 %v9441_v41 }
 0x58d   :  { %6990 = vmatmul.mubr.bf16.vlgmr.msra.gmra.mrb[40].mxu1 %v6501_v63 }
 0x58e   :  { %8147 = vmatpush3.bf16.msra.mxu1 %v9442_v50  ;;  %7030 = vmatprep.mubr.bf16.mxu1 %v6504_v59 }
 0x58f   :  { %8148 = vmatprep.subr.bf16.mxu1 %v9443_v53 }
 0x592   :  { %8149 = vmatpush3.bf16.msra.mxu1 %v9444_v61 }
 0x593   :  { %8150 = vmatprep.subr.bf16.mxu1 %v9445_v16 }
 0x596   :  { %8151 = vmatpush3.bf16.msra.mxu1 %v9446_v62 }
 0x597   :  { %8152 = vmatprep.subr.bf16.mxu1 %v9447_v32 }
 0x59a   :  { %8153 = vmatpush3.bf16.msra.mxu1 %v9448_v4 }
 0x59b   :  { %8154 = vmatprep.subr.bf16.mxu1 %v9449_v11 }
 0x59e   :  { %8155 = vmatpush3.bf16.msra.mxu1 %v9450_v0 }
 0x59f   :  { %8156 = vmatprep.subr.bf16.mxu1 %v9451_v37 }
 0x5a2   :  { %8157 = vmatpush3.bf16.msra.mxu1 %v9452_v24 }
 0x5a3   :  { %8158 = vmatprep.subr.bf16.mxu1 %v9453_v14 }
 0x5a6   :  { %8159 = vmatpush3.bf16.msra.mxu1 %v9454_v27 }
 0x5a7   :  { %8160 = vmatprep.subr.bf16.mxu1 %v9455_v1 }
 0x5aa   :  { %8161 = vmatpush3.bf16.msra.mxu1 %v9456_v25 }
 0x5ab   :  { %8171 = vmatprep.subr.bf16.mxu1 %v9507_v29 }
 0x5ad   :  { %7031 = vmatmul.mubr.bf16.vlgmr.msra.gmra.mrb[44].mxu1 %v6503_v54  ;;  %v7896_v54 = vld [vmem:[%s12494_s6] ss:$0 sm:$0xff]  ;;  %s7087_s6 = sshll.u32 %s9509_s5, 4  ;;  %s7088_s6 = int_to_ptr.vmem [resolvable:$true] %s7087_s6 }
 0x5ae   :  { %8172 = vmatpush3.bf16.msra.mxu1 %v9457_v30  ;;  %8175 = vmatprep.mubr.msk.bf16.mxu1 %vm9508_vm15, %v9507_v29  ;;  %s9483_s28 = scalar_lea.vmem %s7088_s6, 256  ;;  %p9488_p1 = scmp.lt.s32.totalorder %s7088_s6, %s7088_s6 }
 0x5af   :  { %8173 = vmatprep.subr.bf16.mxu1 %v9507_v29  ;;  %p9484_p0 = scmp.ne.s32.totalorder %s7088_s6, %s9483_s28  ;;  %p9489_p2 = scmp.lt.s32.totalorder %s9483_s28, %s9483_s28 }
 0x5b1   :  { %p9490_p3 = por %p9489_p2, %p9488_p1 }
 0x5b2   :  { %8174 = vmatpush3.bf16.msra.mxu1 %v9458_v31 }
 0x5b3   :  { %p9491_p4 = pnand %p9490_p3, %p9484_p0 }
 0x5b5   :  { %8176 = vmatmul.mubr.msk.bf16.vlgmr.msra.gmra.mrb[48].mxu1 %vm6272_vm0, %v6505_v19 }
 0x640   :  { %v8118_v13 = vpop.f32.mrb[36].mxu1 }
 0x641   :  { %v8119_v44 = vpop.f32.mrb[37].mxu1 }
 0x642   :  { %v8120_v6 = vadd.f32 %v8119_v44, %v8118_v13  ;;  %v8121_v28 = vpop.f32.mrb[38].mxu1 }
 0x643   :  { %v8122_v17 = vpop.f32.mrb[39].mxu1 }
 0x644   :  { %v8123_v43 = vadd.f32 %v8122_v17, %v8121_v28  ;;  %v6951_v23 = vadd.f32 %v8120_v6, %v7896_v54 }
 0x646   :  { %v6954_v51 = vadd.f32 %v8123_v43, %v7896_v54 }
 0x660   :  { %v8140_v56 = vpop.f32.mrb[40].mxu1 }
 0x661   :  { %v8141_v60 = vpop.f32.mrb[41].mxu1 }
 0x662   :  { %v8142_v35 = vadd.f32 %v8141_v60, %v8140_v56  ;;  %v8143_v10 = vpop.f32.mrb[42].mxu1 }
 0x663   :  { %v8144_v48 = vpop.f32.mrb[43].mxu1 }
 0x664   :  { %v6992_v22 = vadd.f32 %v8142_v35, %v6951_v23  ;;  %v8145_v55 = vadd.f32 %v8144_v48, %v8143_v10 }
 0x666   :  { %v6995_v19 = vadd.f32 %v8145_v55, %v6954_v51 }
 0x680   :  { %v8162_v20 = vpop.f32.mrb[44].mxu1 }
 0x681   :  { %v8163_v58 = vpop.f32.mrb[45].mxu1 }
 0x682   :  { %v8164_v18 = vadd.f32 %v8163_v58, %v8162_v20  ;;  %v8165_v3 = vpop.f32.mrb[46].mxu1 }
 0x683   :  { %v8166_v5 = vpop.f32.mrb[47].mxu1 }
 0x684   :  { %v8167_v38 = vadd.f32 %v8166_v5, %v8165_v3  ;;  %v7033_v57 = vadd.f32 %v8164_v18, %v6992_v22 }
 0x686   :  { %v7036_v34 = vadd.f32 %v8167_v38, %v6995_v19 }
 0x688   :  { %v7073_v7 = vpop.f32.mrb[48].mxu1 }
 0x689   :  { %v7074_v2 = vadd.f32 %v7073_v7, %v7033_v57  ;;  %v8177_v9 = vpop.f32.mrb[49].mxu1 }
 0x68a   :  { %v7076_v12 = vpop.f32.mrb[50].mxu1 }
 0x68b   :  { %7080 = vst.msk [vmem:[#allocation2] sm:$0xff] %vm6272_vm0, %v7074_v2  ;;  %v7077_v40 = vadd.f32 %v7076_v12, %v7036_v34  ;;  %v8178_v21 = vpop.f32.mrb[51].mxu1 }
 0x68d   :  { %7081 = vst.msk [vmem:[#allocation2 + $0x8] sm:$0xff] %vm6272_vm0, %v7077_v40 }
 0x68e   :  { %9494 = shalt.err (!%p9491_p4)
}
 0x68f   :  { %s9495_s30 = scalar_lea.hbm %s12495_s7, 256 }
 0x690   :  { %p9496_p5 = scmp.ne.s32.totalorder %s12495_s7, %s9495_s30  ;;  %p9499_p6 = scmp.lt.u32.totalorder %s9495_s30, %s12495_s7 }
 0x692   :  { %p9501_p7 = pnand %p9499_p6, %p9496_p5 }
 0x694   :  { %9504 = shalt.err (!%p9501_p7)
}
 0x695   :  { %s9510_s11 = smov 128   ;;  %s9511_s12 = smov 8  }
 0x696   :  { %7093 = dma.vmem_to_hbm [thread:$0]  %s7088_s6, 256, %s12495_s7, [#allocation3], %s9510_s11, %s9510_s11, %s9511_s12  }
 0x697   :  { %9505 = dma.done.wait [#allocation3], 256  }
 0x698   :  { %9506 = vsyncadd [#allocation3], 4294967040 }
 0x699   :  { %7097 = vsyncpa [#allocation3], 1 }

</bundles_post_ra>
